<compile_context>
chip_gen: v5e
topology: v5e:2x2
jax: 0.10.0
libtpu: 0.0.40
codegen_flags: <defaults>
</compile_context>

<pallas_src>
import jax
import jax.numpy as jnp
from jax.experimental import pallas as pl
from jax.experimental.pallas import tpu as pltpu

INPUT_SIZE = 32


def _round_up(x, m):
    return (x + m - 1) // m * m


def _cdiv(a, b):
    return (a + b - 1) // b


def _conv_output_size(i, f, s, p):
    return (i - f + 2 * p) // s + 1


def _after_convs(i):
    i = _conv_output_size(i, 3, 1, 0)
    i = _conv_output_size(i, 2, 2, 0)
    i = _conv_output_size(i, 3, 3, 0)
    i = _conv_output_size(i, 2, 2, 0)
    return i


# ---------------------------------------------------------------------------
# Pallas kernels
# ---------------------------------------------------------------------------
def conv_pool_kernel(x_ref, w_ref, b_ref, o_ref):
    """Conv (im2col matmul, BN scale folded into w) + MaxPool(2,2) + bias + ReLU.

    x_ref: (4, TM, K) bf16 -- 4 pool-window corners x TM pooled positions.
    Single (4*TM, K) @ (K, OC) MXU dot (f32 acc), free reshapes (TM % 8 == 0),
    max over the corner axis, +bias, ReLU.  The un-pooled conv activation
    never touches HBM.
    """
    _, tm, k = x_ref.shape
    x = x_ref[...].reshape(4 * tm, k)
    y = jnp.dot(x, w_ref[...], preferred_element_type=jnp.float32)
    y = y.reshape(4, tm, y.shape[-1])
    y = jnp.maximum(jnp.maximum(y[0], y[1]), jnp.maximum(y[2], y[3]))
    o_ref[...] = jnp.maximum(y + b_ref[...], 0.0).astype(o_ref.dtype)


def conv2_fc_fused_kernel(x_ref, wc_ref, bc_ref, w1_ref, b1_ref,
                          w2_ref, b2_ref, o_ref):
    """conv2+BN+ReLU+pool -> flatten -> fc1 -> sigmoid -> (dropout=id) -> fc2
    -> sigmoid, all fused (conv2's per-image compute is tiny).

    x_ref: (4*NPOS, B, K2) bf16, (corner, pool-position)-major im2col patches.
    fc1 is a sum of NPOS per-position (64, 1024) dots so PyTorch's (c, h, w)
    flatten order needs no in-kernel relayout (weights pre-permuted).
    """
    ncp, bt, k2 = x_ref.shape
    npos = ncp // 4
    x = x_ref[...].reshape(ncp * bt, k2)
    y = jnp.dot(x, wc_ref[...], preferred_element_type=jnp.float32)   # (ncp*B, 64)
    y = y.reshape(4, npos * bt, y.shape[-1])
    y = jnp.maximum(jnp.maximum(y[0], y[1]), jnp.maximum(y[2], y[3]))  # (npos*B, 64)
    h2 = jnp.maximum(y + bc_ref[...], 0.0).astype(jnp.bfloat16)

    acc = b1_ref[...]                                    # (1, 1024) f32
    for p in range(npos):
        acc = acc + jnp.dot(h2[p * bt:(p + 1) * bt, :], w1_ref[p],
                            preferred_element_type=jnp.float32)
    h = jax.nn.sigmoid(acc).astype(jnp.bfloat16)         # (B, 1024)
    # TODO(synk): Dropout(0.5) is identity in eval mode; training-mode RNG mask not implemented.
    z = jnp.dot(h, w2_ref[...], preferred_element_type=jnp.float32)
    o_ref[...] = jax.nn.sigmoid(z + b2_ref[...])


# ---------------------------------------------------------------------------
# Wrappers (layout / patch-extraction glue; compute lives in the kernels)
# ---------------------------------------------------------------------------
def conv1_forward(x_nhwc, w, bias):
    """Fused Conv2d(3->32, k3, s1, p0) + eval BN + ReLU + MaxPool2d(2,2).
    x_nhwc: (N, H, W, 3) bf16.  Returns (N, PH, PW, 32) bf16."""
    n, h, wd, cin = x_nhwc.shape
    oh, ow = h - 2, wd - 2
    ph, pw = oh // 2, ow // 2
    k = 9 * cin                                    # 27, kept unpadded in HBM
    # TODO(synk): im2col corner gather still runs in XLA (strided slices); a fully
    # in-kernel DMA/VMEM patch build was not implemented.
    corners = []
    for di in (0, 1):
        for dj in (0, 1):
            cols = []
            for i in range(3):
                for j in range(3):
                    cols.append(x_nhwc[:, di + i: di + i + 2 * ph - 1: 2,
                                          dj + j: dj + j + 2 * pw - 1: 2, :])
            corners.append(jnp.concatenate(cols, axis=-1).reshape(n, ph * pw, k))
    patches = jnp.stack(corners, axis=0).reshape(4, n * ph * pw, k)

    rows = n * ph * pw
    n_steps = max(_cdiv(rows, 2048), 2 if rows >= 1024 else 1)
    tm = _round_up(_cdiv(rows, n_steps), 8)
    rows_pad = n_steps * tm
    patches = jnp.pad(patches, ((0, 0), (0, rows_pad - rows), (0, 0)))
    oc = w.shape[1]

    out = pl.pallas_call(
        conv_pool_kernel,
        out_shape=jax.ShapeDtypeStruct((rows_pad, oc), jnp.bfloat16),
        grid=(n_steps,),
        in_specs=[pl.BlockSpec((4, tm, k), lambda i: (0, i, 0)),
                  pl.BlockSpec((k, oc), lambda i: (0, 0)),
                  pl.BlockSpec((1, oc), lambda i: (0, 0))],
        out_specs=pl.BlockSpec((tm, oc), lambda i: (i, 0)),
        compiler_params=pltpu.CompilerParams(dimension_semantics=("parallel",)),
    )(patches, w, bias)
    # TODO(synk): output store is 32-lane masked; transposed (OC, rows) store
    # formulation not implemented (absolute traffic is tiny).
    return out[:rows].reshape(n, ph, pw, oc)


def conv2_fc_forward(x1, wc, bc, w1p, b1, w2p, b2):
    """Fused conv2(32->64, k3, s3) + BN + ReLU + pool(2,2) + flatten +
    fc1/sigmoid + fc2/sigmoid.  x1: (N, 15, 15, 32) bf16.  Returns (N, 30) f32."""
    n, hh, ww, c1 = x1.shape
    oh = (hh - 3) // 3 + 1                # 5
    ph = oh // 2                          # 2 pooled positions per axis
    k2 = 9 * c1                           # 288, kept unpadded in HBM
    oc2 = wc.shape[1]                     # 64
    pieces = []
    for di in (0, 1):
        for dj in (0, 1):
            for pi in range(ph):
                for pj in range(ph):
                    r0 = 3 * (2 * pi + di)
                    c0 = 3 * (2 * pj + dj)
                    pieces.append(x1[:, r0:r0 + 3, c0:c0 + 3, :].reshape(n, 1, k2))
    patches = jnp.concatenate(pieces, axis=1).transpose(1, 0, 2)   # (16, N, k2)

    n_steps = max(_cdiv(n, 256), 2 if n >= 16 else 1)
    bt = _round_up(_cdiv(n, n_steps), 8)
    npad = n_steps * bt
    patches = jnp.pad(patches, ((0, 0), (0, npad - n), (0, 0)))
    npos = ph * ph
    dh = w1p.shape[-1]                    # 1024
    dpad = w2p.shape[-1]                  # 128

    out = pl.pallas_call(
        conv2_fc_fused_kernel,
        out_shape=jax.ShapeDtypeStruct((npad, dpad), jnp.float32),
        grid=(n_steps,),
        in_specs=[pl.BlockSpec((4 * npos, bt, k2), lambda i: (0, i, 0)),
                  pl.BlockSpec((k2, oc2), lambda i: (0, 0)),
                  pl.BlockSpec((1, oc2), lambda i: (0, 0)),
                  pl.BlockSpec((npos, oc2, dh), lambda i: (0, 0, 0)),
                  pl.BlockSpec((1, dh), lambda i: (0, 0)),
                  pl.BlockSpec((dh, dpad), lambda i: (0, 0)),
                  pl.BlockSpec((1, dpad), lambda i: (0, 0))],
        out_specs=pl.BlockSpec((bt, dpad), lambda i: (i, 0)),
        compiler_params=pltpu.CompilerParams(dimension_semantics=("parallel",)),
    )(patches, wc, bc, w1p, b1, w2p, b2)
    return out[:n, :30]


# ---------------------------------------------------------------------------
# Parameters: PyTorch-layout init, then one-time kernel-layout preparation
# ---------------------------------------------------------------------------
def _xavier_uniform(key, shape):
    fan_in = shape[1] * shape[2] * shape[3]
    fan_out = shape[0] * shape[2] * shape[3]
    limit = (6.0 / (fan_in + fan_out)) ** 0.5
    return jax.random.uniform(key, shape, jnp.float32, -limit, limit)


def init_torch_params(key):
    """Deterministic parameters in PyTorch layout (matching MyCNN.__init__)."""
    ks = jax.random.split(key, 8)
    fc1_in = _after_convs(INPUT_SIZE) ** 2 * 64   # = 256 for INPUT_SIZE=32

    p = {}
    p["conv1_w"] = _xavier_uniform(ks[0], (32, 3, 3, 3))
    p["conv1_b"] = jax.random.uniform(ks[1], (32,), jnp.float32,
                                      -1.0 / (27.0 ** 0.5), 1.0 / (27.0 ** 0.5))
    p["conv2_w"] = _xavier_uniform(ks[2], (64, 32, 3, 3))
    p["conv2_b"] = jax.random.uniform(ks[3], (64,), jnp.float32,
                                      -1.0 / (288.0 ** 0.5), 1.0 / (288.0 ** 0.5))
    # BatchNorm2d defaults (eval mode): weight=1, bias=0, mean=0, var=1
    p["bn1_gamma"] = jnp.ones((32,), jnp.float32)
    p["bn1_beta"] = jnp.zeros((32,), jnp.float32)
    p["bn1_mean"] = jnp.zeros((32,), jnp.float32)
    p["bn1_var"] = jnp.ones((32,), jnp.float32)
    p["bn2_gamma"] = jnp.ones((64,), jnp.float32)
    p["bn2_beta"] = jnp.zeros((64,), jnp.float32)
    p["bn2_mean"] = jnp.zeros((64,), jnp.float32)
    p["bn2_var"] = jnp.ones((64,), jnp.float32)
    p["fc1_w"] = 0.01 * jax.random.normal(ks[4], (1024, fc1_in), jnp.float32)
    p["fc1_b"] = jax.random.uniform(ks[5], (1024,), jnp.float32,
                                    -1.0 / (fc1_in ** 0.5), 1.0 / (fc1_in ** 0.5))
    p["fc2_w"] = 0.01 * jax.random.normal(ks[6], (30, 1024), jnp.float32)
    p["fc2_b"] = jax.random.uniform(ks[7], (30,), jnp.float32,
                                    -1.0 / (1024.0 ** 0.5), 1.0 / (1024.0 ** 0.5))
    return p


def prepare_params(tp, eps=1e-5):
    """One-time layout prep: fold BN scale into conv weights (f32, pre-cast),
    reshape to (K, OC) bf16, per-position fc1 blocks, fc2 padded to 128 lanes."""
    p = {}

    def fold_conv(w, b, gamma, beta, mean, var):
        oc, c, kh, kw = w.shape
        k = kh * kw * c
        scale = gamma / jnp.sqrt(var + eps)                 # (oc,)
        bias = beta + (b - mean) * scale
        wm = w.transpose(2, 3, 1, 0).reshape(k, oc)         # K order = (kh, kw, c)
        wm = wm * scale[None, :]                            # fold BN scale in f32
        return wm.astype(jnp.bfloat16), bias.reshape(1, oc).astype(jnp.float32)

    p["conv1_w"], p["conv1_bias"] = fold_conv(
        tp["conv1_w"], tp["conv1_b"], tp["bn1_gamma"], tp["bn1_beta"],
        tp["bn1_mean"], tp["bn1_var"])
    p["conv2_w"], p["conv2_bias"] = fold_conv(
        tp["conv2_w"], tp["conv2_b"], tp["bn2_gamma"], tp["bn2_beta"],
        tp["bn2_mean"], tp["bn2_var"])

    # fc1: PyTorch flattens (c, h, w) -> column index = c*NPOS + p.  Reshape to
    # per-pool-position (64, 1024) blocks so the kernel contracts each
    # position's channel vector directly (no in-kernel relayout).
    s2 = _after_convs(INPUT_SIZE)          # 2
    npos = s2 * s2                         # 4
    w1 = tp["fc1_w"].reshape(tp["fc1_w"].shape[0], 64, npos)        # [o, c, p]
    p["fc1_w"] = jnp.transpose(w1, (2, 1, 0)).astype(jnp.bfloat16)  # (npos, 64, 1024)
    p["fc1_b"] = tp["fc1_b"].reshape(1, -1).astype(jnp.float32)

    dpad = 128
    w2t = tp["fc2_w"].T                    # (1024, 30)
    p["fc2_w"] = jnp.pad(w2t, ((0, 0), (0, dpad - w2t.shape[1]))).astype(jnp.bfloat16)
    p["fc2_b"] = jnp.pad(tp["fc2_b"], (0, dpad - tp["fc2_b"].shape[0])
                         ).reshape(1, dpad).astype(jnp.float32)
    return p


# ---------------------------------------------------------------------------
# Forward pass (mirrors MyCNN.forward, eval mode)
# ---------------------------------------------------------------------------
@jax.jit
def mycnn_forward(x_nchw, p):
    x = x_nchw.transpose(0, 2, 3, 1).astype(jnp.bfloat16)        # NHWC bf16
    x = conv1_forward(x, p["conv1_w"], p["conv1_bias"])          # (N, 15, 15, 32)
    return conv2_fc_forward(x, p["conv2_w"], p["conv2_bias"],
                            p["fc1_w"], p["fc1_b"], p["fc2_w"], p["fc2_b"])


# ---------------------------------------------------------------------------
# Pure-JAX reference (XLA) for a sanity check
# ---------------------------------------------------------------------------
def reference_forward(x_nchw, tp, eps=1e-5):
    x = x_nchw.transpose(0, 2, 3, 1).astype(jnp.bfloat16).astype(jnp.float32)

    def conv_bn_relu_pool(x, w, b, gamma, beta, mean, var, stride):
        wh = jnp.transpose(w, (2, 3, 1, 0)).astype(jnp.float32)   # HWIO
        y = jax.lax.conv_general_dilated(
            x, wh, window_strides=(stride, stride), padding="VALID",
            dimension_numbers=("NHWC", "HWIO", "NHWC"))
        y = y + b
        y = (y - mean) / jnp.sqrt(var + eps) * gamma + beta
        y = jnp.maximum(y, 0.0)
        return jax.lax.reduce_window(y, -jnp.inf, jax.lax.max,
                                     (1, 2, 2, 1), (1, 2, 2, 1), "VALID")

    x = conv_bn_relu_pool(x, tp["conv1_w"], tp["conv1_b"], tp["bn1_gamma"],
                          tp["bn1_beta"], tp["bn1_mean"], tp["bn1_var"], 1)
    x = conv_bn_relu_pool(x, tp["conv2_w"], tp["conv2_b"], tp["bn2_gamma"],
                          tp["bn2_beta"], tp["bn2_mean"], tp["bn2_var"], 3)
    x = jnp.transpose(x, (0, 3, 1, 2)).reshape(x.shape[0], -1)    # torch (c,h,w) flatten
    x = jax.nn.sigmoid(x @ tp["fc1_w"].T + tp["fc1_b"])
    return jax.nn.sigmoid(x @ tp["fc2_w"].T + tp["fc2_b"])


if __name__ == "__main__":
    key = jax.random.PRNGKey(0)
    k_x, k_p = jax.random.split(key)
    x = jax.random.normal(k_x, (2, 3, INPUT_SIZE, INPUT_SIZE), jnp.float32)  # NCHW
    torch_params = init_torch_params(k_p)
    params = prepare_params(torch_params)

    out = jax.block_until_ready(mycnn_forward(x, params))
    assert out.shape == (2, 30), out.shape
    assert bool(jnp.all(jnp.isfinite(out)))

    ref = reference_forward(x, torch_params)
    max_err = float(jnp.max(jnp.abs(out - ref)))
    assert max_err < 5e-2, f"max abs err vs reference: {max_err}"
    print("KERNEL_OK")
</pallas_src>

<mosaic_0001>
module attributes {stable_mosaic.version = 11 : i64} {
  func.func @conv_pool_kernel(%arg0: i32, %arg1: memref<4x456x27xbf16, #tpu.memory_space<vmem>>, %arg2: memref<27x32xbf16, #tpu.memory_space<vmem>>, %arg3: memref<1x32xf32, #tpu.memory_space<vmem>>, %arg4: memref<456x32xbf16, #tpu.memory_space<vmem>>) attributes {dimension_semantics = [#tpu.dimension_semantics<parallel>], iteration_bounds = array<i64: 1>, scalar_prefetch = 0 : i64, scratch_operands = 0 : i64, tpu.core_type = #tpu.core_type<tc>, window_params = [{transform_indices = @transform_0, window_bounds = array<i64: 4, 456, 27>}, {pipeline_mode = #tpu.pipeline_mode<synchronous>, transform_indices = @transform_1, window_bounds = array<i64: 27, 32>}, {pipeline_mode = #tpu.pipeline_mode<synchronous>, transform_indices = @transform_2, window_bounds = array<i64: 1, 32>}, {transform_indices = @transform_3, window_bounds = array<i64: 456, 32>}]} {
    %c0 = arith.constant 0 : index
    %c0_0 = arith.constant 0 : index
    %c0_1 = arith.constant 0 : index
    %0 = vector.load %arg1[%c0, %c0_0, %c0_1] : memref<4x456x27xbf16, #tpu.memory_space<vmem>>, vector<4x456x27xbf16>
    %1 = vector.shape_cast %0 : vector<4x456x27xbf16> to vector<1824x27xbf16>
    %c0_2 = arith.constant 0 : index
    %c0_3 = arith.constant 0 : index
    %2 = vector.load %arg2[%c0_2, %c0_3] : memref<27x32xbf16, #tpu.memory_space<vmem>>, vector<27x32xbf16>
    %cst = arith.constant dense<0.000000e+00> : vector<1824x32xf32>
    %3 = tpu.matmul %1, %2, %cst {dimension_numbers = #tpu.dot_dimension_numbers<[1], [0], [0], [1], [0, 0, 1, 1], [], []>} : vector<1824x27xbf16>, vector<27x32xbf16>, vector<1824x32xf32> -> vector<1824x32xf32>
    %4 = vector.shape_cast %3 : vector<1824x32xf32> to vector<4x456x32xf32>
    %5 = vector.extract_strided_slice %4 {offsets = [0, 0, 0], sizes = [1, 456, 32], strides = [1, 1, 1]} : vector<4x456x32xf32> to vector<1x456x32xf32>
    %6 = vector.shape_cast %5 : vector<1x456x32xf32> to vector<456x32xf32>
    %7 = vector.extract_strided_slice %4 {offsets = [1, 0, 0], sizes = [1, 456, 32], strides = [1, 1, 1]} : vector<4x456x32xf32> to vector<1x456x32xf32>
    %8 = vector.shape_cast %7 : vector<1x456x32xf32> to vector<456x32xf32>
    %9 = arith.maximumf %6, %8 : vector<456x32xf32>
    %10 = vector.extract_strided_slice %4 {offsets = [2, 0, 0], sizes = [1, 456, 32], strides = [1, 1, 1]} : vector<4x456x32xf32> to vector<1x456x32xf32>
    %11 = vector.shape_cast %10 : vector<1x456x32xf32> to vector<456x32xf32>
    %12 = vector.extract_strided_slice %4 {offsets = [3, 0, 0], sizes = [1, 456, 32], strides = [1, 1, 1]} : vector<4x456x32xf32> to vector<1x456x32xf32>
    %13 = vector.shape_cast %12 : vector<1x456x32xf32> to vector<456x32xf32>
    %14 = arith.maximumf %11, %13 : vector<456x32xf32>
    %15 = arith.maximumf %9, %14 : vector<456x32xf32>
    %c0_4 = arith.constant 0 : index
    %c0_5 = arith.constant 0 : index
    %16 = vector.load %arg3[%c0_4, %c0_5] : memref<1x32xf32, #tpu.memory_space<vmem>>, vector<1x32xf32>
    %17 = vector.broadcast %16 : vector<1x32xf32> to vector<456x32xf32>
    %18 = arith.addf %15, %17 : vector<456x32xf32>
    %cst_6 = arith.constant 0.000000e+00 : f32
    %19 = vector.broadcast %cst_6 : f32 to vector<456x32xf32>
    %20 = arith.maximumf %18, %19 : vector<456x32xf32>
    %21 = arith.truncf %20 : vector<456x32xf32> to vector<456x32xbf16>
    %c0_7 = arith.constant 0 : index
    %c0_8 = arith.constant 0 : index
    %22 = vector.load %arg4[%c0_7, %c0_8] : memref<456x32xbf16, #tpu.memory_space<vmem>>, vector<456x32xbf16>
    tpu.vector_store %arg4[%c0_7, %c0_8], %21 {strides = array<i32>} : memref<456x32xbf16, #tpu.memory_space<vmem>>, vector<456x32xbf16>,
    return
  }
  func.func @transform_0(%arg0: i32) -> (i32, i32, i32) {
    %c0_i32 = arith.constant 0 : i32
    %c0_i32_0 = arith.constant 0 : i32
    %c0_i32_1 = arith.constant 0 : i32
    return %c0_i32, %arg0, %c0_i32_0 : i32, i32, i32
  }
  func.func @transform_1(%arg0: i32) -> (i32, i32) {
    %c0_i32 = arith.constant 0 : i32
    %c0_i32_0 = arith.constant 0 : i32
    %c0_i32_1 = arith.constant 0 : i32
    return %c0_i32, %c0_i32_0 : i32, i32
  }
  func.func @transform_2(%arg0: i32) -> (i32, i32) {
    %c0_i32 = arith.constant 0 : i32
    %c0_i32_0 = arith.constant 0 : i32
    %c0_i32_1 = arith.constant 0 : i32
    return %c0_i32, %c0_i32_0 : i32, i32
  }
  func.func @transform_3(%arg0: i32) -> (i32, i32) {
    %c0_i32 = arith.constant 0 : i32
    %c0_i32_0 = arith.constant 0 : i32
    return %arg0, %c0_i32 : i32, i32
  }
}

module attributes {stable_mosaic.version = 11 : i64} {
  func.func @conv2_fc_fused_kernel(%arg0: i32, %arg1: memref<16x8x288xbf16, #tpu.memory_space<vmem>>, %arg2: memref<288x64xbf16, #tpu.memory_space<vmem>>, %arg3: memref<1x64xf32, #tpu.memory_space<vmem>>, %arg4: memref<4x64x1024xbf16, #tpu.memory_space<vmem>>, %arg5: memref<1x1024xf32, #tpu.memory_space<vmem>>, %arg6: memref<1024x128xbf16, #tpu.memory_space<vmem>>, %arg7: memref<1x128xf32, #tpu.memory_space<vmem>>, %arg8: memref<8x128xf32, #tpu.memory_space<vmem>>) attributes {dimension_semantics = [#tpu.dimension_semantics<parallel>], iteration_bounds = array<i64: 1>, scalar_prefetch = 0 : i64, scratch_operands = 0 : i64, tpu.core_type = #tpu.core_type<tc>, window_params = [{transform_indices = @transform_0, window_bounds = array<i64: 16, 8, 288>}, {pipeline_mode = #tpu.pipeline_mode<synchronous>, transform_indices = @transform_1, window_bounds = array<i64: 288, 64>}, {pipeline_mode = #tpu.pipeline_mode<synchronous>, transform_indices = @transform_2, window_bounds = array<i64: 1, 64>}, {pipeline_mode = #tpu.pipeline_mode<synchronous>, transform_indices = @transform_3, window_bounds = array<i64: 4, 64, 1024>}, {pipeline_mode = #tpu.pipeline_mode<synchronous>, transform_indices = @transform_4, window_bounds = array<i64: 1, 1024>}, {pipeline_mode = #tpu.pipeline_mode<synchronous>, transform_indices = @transform_5, window_bounds = array<i64: 1024, 128>}, {pipeline_mode = #tpu.pipeline_mode<synchronous>, transform_indices = @transform_6, window_bounds = array<i64: 1, 128>}, {transform_indices = @transform_7, window_bounds = array<i64: 8, 128>}]} {
    %c0 = arith.constant 0 : index
    %c0_0 = arith.constant 0 : index
    %c0_1 = arith.constant 0 : index
    %0 = vector.load %arg1[%c0, %c0_0, %c0_1] : memref<16x8x288xbf16, #tpu.memory_space<vmem>>, vector<16x8x288xbf16>
    %1 = vector.shape_cast %0 : vector<16x8x288xbf16> to vector<128x288xbf16>
    %c0_2 = arith.constant 0 : index
    %c0_3 = arith.constant 0 : index
    %2 = vector.load %arg2[%c0_2, %c0_3] : memref<288x64xbf16, #tpu.memory_space<vmem>>, vector<288x64xbf16>
    %cst = arith.constant dense<0.000000e+00> : vector<128x64xf32>
    %3 = tpu.matmul %1, %2, %cst {dimension_numbers = #tpu.dot_dimension_numbers<[1], [0], [0], [1], [0, 0, 1, 1], [], []>} : vector<128x288xbf16>, vector<288x64xbf16>, vector<128x64xf32> -> vector<128x64xf32>
    %4 = vector.shape_cast %3 : vector<128x64xf32> to vector<4x32x64xf32>
    %5 = vector.extract_strided_slice %4 {offsets = [0, 0, 0], sizes = [1, 32, 64], strides = [1, 1, 1]} : vector<4x32x64xf32> to vector<1x32x64xf32>
    %6 = vector.shape_cast %5 : vector<1x32x64xf32> to vector<32x64xf32>
    %7 = vector.extract_strided_slice %4 {offsets = [1, 0, 0], sizes = [1, 32, 64], strides = [1, 1, 1]} : vector<4x32x64xf32> to vector<1x32x64xf32>
    %8 = vector.shape_cast %7 : vector<1x32x64xf32> to vector<32x64xf32>
    %9 = arith.maximumf %6, %8 : vector<32x64xf32>
    %10 = vector.extract_strided_slice %4 {offsets = [2, 0, 0], sizes = [1, 32, 64], strides = [1, 1, 1]} : vector<4x32x64xf32> to vector<1x32x64xf32>
    %11 = vector.shape_cast %10 : vector<1x32x64xf32> to vector<32x64xf32>
    %12 = vector.extract_strided_slice %4 {offsets = [3, 0, 0], sizes = [1, 32, 64], strides = [1, 1, 1]} : vector<4x32x64xf32> to vector<1x32x64xf32>
    %13 = vector.shape_cast %12 : vector<1x32x64xf32> to vector<32x64xf32>
    %14 = arith.maximumf %11, %13 : vector<32x64xf32>
    %15 = arith.maximumf %9, %14 : vector<32x64xf32>
    %c0_4 = arith.constant 0 : index
    %c0_5 = arith.constant 0 : index
    %16 = vector.load %arg3[%c0_4, %c0_5] : memref<1x64xf32, #tpu.memory_space<vmem>>, vector<1x64xf32>
    %17 = vector.broadcast %16 : vector<1x64xf32> to vector<32x64xf32>
    %18 = arith.addf %15, %17 : vector<32x64xf32>
    %cst_6 = arith.constant 0.000000e+00 : f32
    %19 = vector.broadcast %cst_6 : f32 to vector<32x64xf32>
    %20 = arith.maximumf %18, %19 : vector<32x64xf32>
    %21 = arith.truncf %20 : vector<32x64xf32> to vector<32x64xbf16>
    %c0_7 = arith.constant 0 : index
    %c0_8 = arith.constant 0 : index
    %22 = vector.load %arg5[%c0_7, %c0_8] : memref<1x1024xf32, #tpu.memory_space<vmem>>, vector<1x1024xf32>
    %23 = vector.extract_strided_slice %21 {offsets = [0, 0], sizes = [8, 64], strides = [1, 1]} : vector<32x64xbf16> to vector<8x64xbf16>
    %c0_9 = arith.constant 0 : index
    %c0_10 = arith.constant 0 : index
    %c0_11 = arith.constant 0 : index
    %24 = vector.load %arg4[%c0_9, %c0_10, %c0_11] : memref<4x64x1024xbf16, #tpu.memory_space<vmem>>, vector<1x64x1024xbf16>
    %25 = vector.shape_cast %24 : vector<1x64x1024xbf16> to vector<64x1024xbf16>
    %cst_12 = arith.constant dense<0.000000e+00> : vector<8x1024xf32>
    %26 = tpu.matmul %23, %25, %cst_12 {dimension_numbers = #tpu.dot_dimension_numbers<[1], [0], [0], [1], [0, 0, 1, 1], [], []>} : vector<8x64xbf16>, vector<64x1024xbf16>, vector<8x1024xf32> -> vector<8x1024xf32>
    %27 = vector.broadcast %22 : vector<1x1024xf32> to vector<8x1024xf32>
    %28 = arith.addf %27, %26 : vector<8x1024xf32>
    %29 = vector.extract_strided_slice %21 {offsets = [8, 0], sizes = [8, 64], strides = [1, 1]} : vector<32x64xbf16> to vector<8x64xbf16>
    %c1 = arith.constant 1 : index
    %c0_13 = arith.constant 0 : index
    %c0_14 = arith.constant 0 : index
    %30 = vector.load %arg4[%c1, %c0_13, %c0_14] : memref<4x64x1024xbf16, #tpu.memory_space<vmem>>, vector<1x64x1024xbf16>
    %31 = vector.shape_cast %30 : vector<1x64x1024xbf16> to vector<64x1024xbf16>
    %cst_15 = arith.constant dense<0.000000e+00> : vector<8x1024xf32>
    %32 = tpu.matmul %29, %31, %cst_15 {dimension_numbers = #tpu.dot_dimension_numbers<[1], [0], [0], [1], [0, 0, 1, 1], [], []>} : vector<8x64xbf16>, vector<64x1024xbf16>, vector<8x1024xf32> -> vector<8x1024xf32>
    %33 = arith.addf %28, %32 : vector<8x1024xf32>
    %34 = vector.extract_strided_slice %21 {offsets = [16, 0], sizes = [8, 64], strides = [1, 1]} : vector<32x64xbf16> to vector<8x64xbf16>
    %c2 = arith.constant 2 : index
    %c0_16 = arith.constant 0 : index
    %c0_17 = arith.constant 0 : index
    %35 = vector.load %arg4[%c2, %c0_16, %c0_17] : memref<4x64x1024xbf16, #tpu.memory_space<vmem>>, vector<1x64x1024xbf16>
    %36 = vector.shape_cast %35 : vector<1x64x1024xbf16> to vector<64x1024xbf16>
    %cst_18 = arith.constant dense<0.000000e+00> : vector<8x1024xf32>
    %37 = tpu.matmul %34, %36, %cst_18 {dimension_numbers = #tpu.dot_dimension_numbers<[1], [0], [0], [1], [0, 0, 1, 1], [], []>} : vector<8x64xbf16>, vector<64x1024xbf16>, vector<8x1024xf32> -> vector<8x1024xf32>
    %38 = arith.addf %33, %37 : vector<8x1024xf32>
    %39 = vector.extract_strided_slice %21 {offsets = [24, 0], sizes = [8, 64], strides = [1, 1]} : vector<32x64xbf16> to vector<8x64xbf16>
    %c3 = arith.constant 3 : index
    %c0_19 = arith.constant 0 : index
    %c0_20 = arith.constant 0 : index
    %40 = vector.load %arg4[%c3, %c0_19, %c0_20] : memref<4x64x1024xbf16, #tpu.memory_space<vmem>>, vector<1x64x1024xbf16>
    %41 = vector.shape_cast %40 : vector<1x64x1024xbf16> to vector<64x1024xbf16>
    %cst_21 = arith.constant dense<0.000000e+00> : vector<8x1024xf32>
    %42 = tpu.matmul %39, %41, %cst_21 {dimension_numbers = #tpu.dot_dimension_numbers<[1], [0], [0], [1], [0, 0, 1, 1], [], []>} : vector<8x64xbf16>, vector<64x1024xbf16>, vector<8x1024xf32> -> vector<8x1024xf32>
    %43 = arith.addf %38, %42 : vector<8x1024xf32>
    %44 = arith.negf %43 : vector<8x1024xf32>
    %45 = math.exp %44 : vector<8x1024xf32>
    %cst_22 = arith.constant 1.000000e+00 : f32
    %46 = vector.broadcast %cst_22 : f32 to vector<8x1024xf32>
    %47 = arith.addf %46, %45 : vector<8x1024xf32>
    %48 = arith.divf %46, %47 : vector<8x1024xf32>
    %49 = arith.truncf %48 : vector<8x1024xf32> to vector<8x1024xbf16>
    %c0_23 = arith.constant 0 : index
    %c0_24 = arith.constant 0 : index
    %50 = vector.load %arg6[%c0_23, %c0_24] : memref<1024x128xbf16, #tpu.memory_space<vmem>>, vector<1024x128xbf16>
    %cst_25 = arith.constant dense<0.000000e+00> : vector<8x128xf32>
    %51 = tpu.matmul %49, %50, %cst_25 {dimension_numbers = #tpu.dot_dimension_numbers<[1], [0], [0], [1], [0, 0, 1, 1], [], []>} : vector<8x1024xbf16>, vector<1024x128xbf16>, vector<8x128xf32> -> vector<8x128xf32>
    %c0_26 = arith.constant 0 : index
    %c0_27 = arith.constant 0 : index
    %52 = vector.load %arg7[%c0_26, %c0_27] : memref<1x128xf32, #tpu.memory_space<vmem>>, vector<1x128xf32>
    %53 = vector.broadcast %52 : vector<1x128xf32> to vector<8x128xf32>
    %54 = arith.addf %51, %53 : vector<8x128xf32>
    %55 = arith.negf %54 : vector<8x128xf32>
    %56 = math.exp %55 : vector<8x128xf32>
    %cst_28 = arith.constant 1.000000e+00 : f32
    %57 = vector.broadcast %cst_28 : f32 to vector<8x128xf32>
    %58 = arith.addf %57, %56 : vector<8x128xf32>
    %59 = arith.divf %57, %58 : vector<8x128xf32>
    %c0_29 = arith.constant 0 : index
    %c0_30 = arith.constant 0 : index
    %60 = vector.load %arg8[%c0_29, %c0_30] : memref<8x128xf32, #tpu.memory_space<vmem>>, vector<8x128xf32>
    tpu.vector_store %arg8[%c0_29, %c0_30], %59 {strides = array<i32>} : memref<8x128xf32, #tpu.memory_space<vmem>>, vector<8x128xf32>,
    return
  }
  func.func @transform_0(%arg0: i32) -> (i32, i32, i32) {
    %c0_i32 = arith.constant 0 : i32
    %c0_i32_0 = arith.constant 0 : i32
    %c0_i32_1 = arith.constant 0 : i32
    return %c0_i32, %arg0, %c0_i32_0 : i32, i32, i32
  }
  func.func @transform_1(%arg0: i32) -> (i32, i32) {
    %c0_i32 = arith.constant 0 : i32
    %c0_i32_0 = arith.constant 0 : i32
    %c0_i32_1 = arith.constant 0 : i32
    return %c0_i32, %c0_i32_0 : i32, i32
  }
  func.func @transform_2(%arg0: i32) -> (i32, i32) {
    %c0_i32 = arith.constant 0 : i32
    %c0_i32_0 = arith.constant 0 : i32
    %c0_i32_1 = arith.constant 0 : i32
    return %c0_i32, %c0_i32_0 : i32, i32
  }
  func.func @transform_3(%arg0: i32) -> (i32, i32, i32) {
    %c0_i32 = arith.constant 0 : i32
    %c0_i32_0 = arith.constant 0 : i32
    %c0_i32_1 = arith.constant 0 : i32
    %c0_i32_2 = arith.constant 0 : i32
    return %c0_i32, %c0_i32_0, %c0_i32_1 : i32, i32, i32
  }
  func.func @transform_4(%arg0: i32) -> (i32, i32) {
    %c0_i32 = arith.constant 0 : i32
    %c0_i32_0 = arith.constant 0 : i32
    %c0_i32_1 = arith.constant 0 : i32
    return %c0_i32, %c0_i32_0 : i32, i32
  }
  func.func @transform_5(%arg0: i32) -> (i32, i32) {
    %c0_i32 = arith.constant 0 : i32
    %c0_i32_0 = arith.constant 0 : i32
    %c0_i32_1 = arith.constant 0 : i32
    return %c0_i32, %c0_i32_0 : i32, i32
  }
  func.func @transform_6(%arg0: i32) -> (i32, i32) {
    %c0_i32 = arith.constant 0 : i32
    %c0_i32_0 = arith.constant 0 : i32
    %c0_i32_1 = arith.constant 0 : i32
    return %c0_i32, %c0_i32_0 : i32, i32
  }
  func.func @transform_7(%arg0: i32) -> (i32, i32) {
    %c0_i32 = arith.constant 0 : i32
    %c0_i32_0 = arith.constant 0 : i32
    return %arg0, %c0_i32 : i32, i32
  }
}

</mosaic_0001>

<bundles_post_ra>
// kernel: mycnn_forward.2
= control target key start
LH: loop header
LB: loop body
LE: loop exit
PB: predicated region body
PF: predicated region fallthrough
CT: control target
= control target key end

     0   :  { %vm1171_vm0 = vcmask 1044480   ;;  %vm1172_vm1 = vcmask 1045504   ;;  %v2868_v2 = vmov 65535   ;;  %vm828_vm2 = vcmask 220160   ;;  %s3673_s1 = inlined_call_operand.vmem [shape: bf16[27,32], index: 1, kind: input, shape index: {}]   ;;  %s3674_s0 = inlined_call_operand.vmem [shape: bf16[4,456,27], index: 0, kind: input, shape index: {}]   ;;  %s3675_s2 = inlined_call_operand.vmem [shape: f32[1,32], index: 2, kind: input, shape index: {}]   ;;  %s3676_s3 = inlined_call_operand.vmem [shape: bf16[456,32], index: 3, kind: output, shape index: {}]  }
   0x1   :  { %v2627_v0 = vld [vmem:[%s3673_s1 + $0x8] sm:$0xf]  ;;  %v2858_v1 = vld [vmem:[%s3673_s1 + $0x8] sm:$0x30]  ;;  %v1173_v3 = vsel %vm1171_vm0, 4294967295, %v2868_v2  ;;  %v2857_v7 = vld [vmem:[%s3673_s1] sm:$0xff] }
   0x2   :  { %v2628_v4 = vor.u32 %v2858_v1, %v2627_v0  ;;  %v1174_v5 = vsel %vm1172_vm1, %v1173_v3, 0  ;;  %v2743_v8 = vld [vmem:[%s3674_s0] sm:$0xff]  ;;  %v2772_v9 = vld [vmem:[%s3674_s0 + $0xe8] sm:$0xff]  ;;  %v2801_v10 = vld [vmem:[%s3674_s0 + $0x1d0] sm:$0xff]  ;;  %vm2103_vm3 = vcmask 257024  }
   0x3   :  { %v2830_v11 = vld [vmem:[%s3674_s0 + $0x2b8] sm:$0xff]  ;;  %v2744_v12 = vld [vmem:[%s3674_s0 + $0x8] sm:$0xff]  ;;  %v2773_v13 = vld [vmem:[%s3674_s0 + $0xf0] sm:$0xff] }
   0x4   :  { %v1176_v6 = vand.u32 %v2628_v4, %v1174_v5  ;;  %v2802_v14 = vld [vmem:[%s3674_s0 + $0x1d8] sm:$0xff]  ;;  %v2831_v15 = vld [vmem:[%s3674_s0 + $0x2c0] sm:$0xff]  ;;  %v2745_v16 = vld [vmem:[%s3674_s0 + $0x10] sm:$0xff] }
   0x5   :  { %v2774_v17 = vld [vmem:[%s3674_s0 + $0xf8] sm:$0xff]  ;;  %v2803_v18 = vld [vmem:[%s3674_s0 + $0x1e0] sm:$0xff]  ;;  %v2832_v19 = vld [vmem:[%s3674_s0 + $0x2c8] sm:$0xff] }
   0x6   :  { %1184 = vmatpush.bf16.msra.mxu0 %v1176_v6  ;;  %2859 = vmatpush.bf16.msra.mxu1 %v1176_v6  ;;  %v2746_v20 = vld [vmem:[%s3674_s0 + $0x18] sm:$0xff]  ;;  %v2775_v21 = vld [vmem:[%s3674_s0 + $0x100] sm:$0xff]  ;;  %v2804_v22 = vld [vmem:[%s3674_s0 + $0x1e8] sm:$0xff] }
   0x7   :  { %2860 = vmatpush.bf16.msra.mxu2 %v1176_v6  ;;  %2861 = vmatpush.bf16.msra.mxu3 %v1176_v6  ;;  %v2833_v23 = vld [vmem:[%s3674_s0 + $0x2d0] sm:$0xff]  ;;  %v2747_v24 = vld [vmem:[%s3674_s0 + $0x20] sm:$0xff]  ;;  %v2776_v25 = vld [vmem:[%s3674_s0 + $0x108] sm:$0xff] }
   0x8   :  { %v2805_v26 = vld [vmem:[%s3674_s0 + $0x1f0] sm:$0xff]  ;;  %v2834_v27 = vld [vmem:[%s3674_s0 + $0x2d8] sm:$0xff]  ;;  %v2748_v28 = vld [vmem:[%s3674_s0 + $0x28] sm:$0xff] }
   0x9   :  { %v2777_v29 = vld [vmem:[%s3674_s0 + $0x110] sm:$0xff]  ;;  %v2806_v30 = vld [vmem:[%s3674_s0 + $0x1f8] sm:$0xff]  ;;  %v2835_v31 = vld [vmem:[%s3674_s0 + $0x2e0] sm:$0xff] }
   0xa   :  { %1185 = vmatpush.bf16.msra.mxu0 %v2857_v7  ;;  %2862 = vmatpush.bf16.msra.mxu1 %v2857_v7  ;;  %v2749_v32 = vld [vmem:[%s3674_s0 + $0x30] sm:$0xff]  ;;  %v2778_v33 = vld [vmem:[%s3674_s0 + $0x118] sm:$0xff]  ;;  %v2807_v34 = vld [vmem:[%s3674_s0 + $0x200] sm:$0xff] }
   0xb   :  { %2863 = vmatpush.bf16.msra.mxu2 %v2857_v7  ;;  %2864 = vmatpush.bf16.msra.mxu3 %v2857_v7  ;;  %v2836_v35 = vld [vmem:[%s3674_s0 + $0x2e8] sm:$0xff]  ;;  %v2750_v36 = vld [vmem:[%s3674_s0 + $0x38] sm:$0xff]  ;;  %v2779_v37 = vld [vmem:[%s3674_s0 + $0x120] sm:$0xff] }
   0xc   :  { %v2808_v38 = vld [vmem:[%s3674_s0 + $0x208] sm:$0xff]  ;;  %v2837_v39 = vld [vmem:[%s3674_s0 + $0x2f0] sm:$0xff]  ;;  %v2751_v40 = vld [vmem:[%s3674_s0 + $0x40] sm:$0xff] }
   0xd   :  { %2629 = vmatmul.msk.bf16.vlgmr.msra.gmra.mxu0 %vm828_vm2, %v2743_v8  ;;  %2658 = vmatmul.msk.bf16.vlgmr.msra.gmra.mxu1 %vm828_vm2, %v2772_v9  ;;  %v2780_v41 = vld [vmem:[%s3674_s0 + $0x128] sm:$0xff]  ;;  %v2809_v44 = vld [vmem:[%s3674_s0 + $0x210] sm:$0xff]  ;;  %v2838_v45 = vld [vmem:[%s3674_s0 + $0x2f8] sm:$0xff] }
   0xe   :  { %2687 = vmatmul.msk.bf16.vlgmr.msra.gmra.mxu2 %vm828_vm2, %v2801_v10  ;;  %2716 = vmatmul.msk.bf16.vlgmr.msra.gmra.mxu3 %vm828_vm2, %v2830_v11  ;;  %v2752_v52 = vld [vmem:[%s3674_s0 + $0x48] sm:$0xff]  ;;  %v2781_v53 = vld [vmem:[%s3674_s0 + $0x130] sm:$0xff]  ;;  %v2810_v57 = vld [vmem:[%s3674_s0 + $0x218] sm:$0xff] }
   0xf   :  { %v2839_v58 = vld [vmem:[%s3674_s0 + $0x300] sm:$0xff]  ;;  %v2753_v7 = vld [vmem:[%s3674_s0 + $0x50] sm:$0xff]  ;;  %v2782_v8 = vld [vmem:[%s3674_s0 + $0x138] sm:$0xff] }
  0x10   :  { %v3077_v2 = vld [vmem:[%s3675_s2] ss:$0 sm:$0xff] }
  0x1d   :  { %2630 = vmatmul.msk.bf16.gmra.mxu0 %vm828_vm2, %v2744_v12  ;;  %2659 = vmatmul.msk.bf16.gmra.mxu1 %vm828_vm2, %v2773_v13  ;;  %v2811_v12 = vld [vmem:[%s3674_s0 + $0x220] sm:$0xff]  ;;  %v2840_v13 = vld [vmem:[%s3674_s0 + $0x308] sm:$0xff] }
  0x1e   :  { %2688 = vmatmul.msk.bf16.gmra.mxu2 %vm828_vm2, %v2802_v14  ;;  %2717 = vmatmul.msk.bf16.gmra.mxu3 %vm828_vm2, %v2831_v15 }
  0x2d   :  { %2631 = vmatmul.msk.bf16.gmra.mxu0 %vm828_vm2, %v2745_v16  ;;  %2660 = vmatmul.msk.bf16.gmra.mxu1 %vm828_vm2, %v2774_v17 }
  0x2e   :  { %2689 = vmatmul.msk.bf16.gmra.mxu2 %vm828_vm2, %v2803_v18  ;;  %2718 = vmatmul.msk.bf16.gmra.mxu3 %vm828_vm2, %v2832_v19 }
  0x3d   :  { %2632 = vmatmul.msk.bf16.gmra.mxu0 %vm828_vm2, %v2746_v20  ;;  %2661 = vmatmul.msk.bf16.gmra.mxu1 %vm828_vm2, %v2775_v21 }
  0x3e   :  { %2690 = vmatmul.msk.bf16.gmra.mxu2 %vm828_vm2, %v2804_v22  ;;  %2719 = vmatmul.msk.bf16.gmra.mxu3 %vm828_vm2, %v2833_v23 }
  0x4d   :  { %2633 = vmatmul.msk.bf16.gmra.mxu0 %vm828_vm2, %v2747_v24  ;;  %2662 = vmatmul.msk.bf16.gmra.mxu1 %vm828_vm2, %v2776_v25 }
  0x4e   :  { %2691 = vmatmul.msk.bf16.gmra.mxu2 %vm828_vm2, %v2805_v26  ;;  %2720 = vmatmul.msk.bf16.gmra.mxu3 %vm828_vm2, %v2834_v27 }
  0x5d   :  { %2634 = vmatmul.msk.bf16.gmra.mxu0 %vm828_vm2, %v2748_v28  ;;  %2663 = vmatmul.msk.bf16.gmra.mxu1 %vm828_vm2, %v2777_v29 }
  0x5e   :  { %2692 = vmatmul.msk.bf16.gmra.mxu2 %vm828_vm2, %v2806_v30  ;;  %2721 = vmatmul.msk.bf16.gmra.mxu3 %vm828_vm2, %v2835_v31  ;;  %v2754_v31 = vld [vmem:[%s3674_s0 + $0x58] sm:$0xff] }
  0x6d   :  { %2635 = vmatmul.msk.bf16.gmra.mxu0 %vm828_vm2, %v2749_v32  ;;  %2664 = vmatmul.msk.bf16.gmra.mxu1 %vm828_vm2, %v2778_v33  ;;  %v2783_v32 = vld [vmem:[%s3674_s0 + $0x140] sm:$0xff] }
  0x6e   :  { %2693 = vmatmul.msk.bf16.gmra.mxu2 %vm828_vm2, %v2807_v34  ;;  %2722 = vmatmul.msk.bf16.gmra.mxu3 %vm828_vm2, %v2836_v35 }
  0x7d   :  { %2636 = vmatmul.msk.bf16.gmra.mxu0 %vm828_vm2, %v2750_v36  ;;  %2665 = vmatmul.msk.bf16.gmra.mxu1 %vm828_vm2, %v2779_v37  ;;  %v2812_v36 = vld [vmem:[%s3674_s0 + $0x228] sm:$0xff]  ;;  %v2841_v37 = vld [vmem:[%s3674_s0 + $0x310] sm:$0xff] }
  0x7e   :  { %2694 = vmatmul.msk.bf16.gmra.mxu2 %vm828_vm2, %v2808_v38  ;;  %2723 = vmatmul.msk.bf16.gmra.mxu3 %vm828_vm2, %v2837_v39 }
  0x8a   :  { %v3032_v42 = vpop.f32.mrf.mxu0  ;;  %v3034_v43 = vpop.f32.mrf.mxu1 }
  0x8d   :  { %2637 = vmatmul.msk.bf16.gmra.mxu0 %vm828_vm2, %v2751_v40  ;;  %2666 = vmatmul.msk.bf16.gmra.mxu1 %vm828_vm2, %v2780_v41 }
  0x8e   :  { %2695 = vmatmul.msk.bf16.gmra.mxu2 %vm828_vm2, %v2809_v44  ;;  %2724 = vmatmul.msk.bf16.gmra.mxu3 %vm828_vm2, %v2838_v45 }
  0x91   :  { %v3046_v46 = vpop.f32.mrf.mxu2  ;;  %v1622_v47 = vpop.f32.mrf.mxu3 }
  0x92   :  { %v3048_v48 = vpop.f32.mrf.mxu0  ;;  %v3050_v49 = vpop.f32.mrf.mxu1 }
  0x93   :  { %v1758_v50 = vmax.f32 %v3048_v48, %v3034_v43 }
  0x99   :  { %v1479_v51 = vpop.f32.mrf.mxu2  ;;  %v1624_v54 = vpop.f32.mrf.mxu3 }
  0x9a   :  { %v3060_v55 = vpop.f32.mrf.mxu0  ;;  %v1337_v56 = vpop.f32.mrf.mxu1  ;;  %v1817_v0 = vmax.f32 %v1479_v51, %v1622_v47 }
  0x9b   :  { %v1759_v59 = vmax.f32 %v3060_v55, %v3050_v49 }
  0x9d   :  { %2638 = vmatmul.msk.bf16.gmra.mxu0 %vm828_vm2, %v2752_v52  ;;  %2667 = vmatmul.msk.bf16.gmra.mxu1 %vm828_vm2, %v2781_v53 }
  0x9e   :  { %2696 = vmatmul.msk.bf16.gmra.mxu2 %vm828_vm2, %v2810_v57  ;;  %2725 = vmatmul.msk.bf16.gmra.mxu3 %vm828_vm2, %v2839_v58 }
  0xa1   :  { %v1482_v60 = vpop.f32.mrf.mxu2  ;;  %v1627_v61 = vpop.f32.mrf.mxu3 }
  0xa2   :  { %v1194_v62 = vpop.f32.mrf.mxu0  ;;  %v1339_v63 = vpop.f32.mrf.mxu1  ;;  %v1818_v14 = vmax.f32 %v1482_v60, %v1624_v54 }
  0xa3   :  { %v1760_v1 = vmax.f32 %v1194_v62, %v1337_v56 }
  0xa5   :  { %v1874_v3 = vmax.f32 %v1760_v1, %v1817_v0  ;;  %v2784_v0 = vld [vmem:[%s3674_s0 + $0x148] sm:$0xff] }
  0xa7   :  { %v1935_v4 = vadd.f32 %v3077_v2, %v1874_v3 }
  0xa9   :  { %v1992_v5 = vmax.f32 %v1935_v4, 0.0  ;;  %v1484_v6 = vpop.f32.mrf.mxu2  ;;  %v1629_v9 = vpop.f32.mrf.mxu3 }
  0xaa   :  { %v1197_v10 = vpop.f32.mrf.mxu0  ;;  %v1342_v11 = vpop.f32.mrf.mxu1  ;;  %v1819_v24 = vmax.f32 %v1484_v6, %v1627_v61  ;;  %v2842_v6 = vld [vmem:[%s3674_s0 + $0x318] sm:$0xff] }
  0xab   :  { %v2049_v15 = vpack.c.bf16 %v1992_v5, %v1992_v5  ;;  %v1761_v16 = vmax.f32 %v1197_v10, %v1339_v63  ;;  %v2755_v63 = vld [vmem:[%s3674_s0 + $0x60] sm:$0xff]  ;;  %v2813_v5 = vld [vmem:[%s3674_s0 + $0x230] sm:$0xff] }
  0xad   :  { %2107 = vst.msk [vmem:[%s3676_s3 + $0xc] sm:$0xf] %vm2103_vm3, %v2049_v15  ;;  %v1875_v17 = vmax.f32 %v1761_v16, %v1818_v14  ;;  %2639 = vmatmul.msk.bf16.gmra.mxu0 %vm828_vm2, %v2753_v7  ;;  %2668 = vmatmul.msk.bf16.gmra.mxu1 %vm828_vm2, %v2782_v8 }
  0xae   :  { %2697 = vmatmul.msk.bf16.gmra.mxu2 %vm828_vm2, %v2811_v12  ;;  %2726 = vmatmul.msk.bf16.gmra.mxu3 %vm828_vm2, %v2840_v13 }
  0xaf   :  { %v1936_v18 = vadd.f32 %v3077_v2, %v1875_v17 }
  0xb1   :  { %v1993_v19 = vmax.f32 %v1936_v18, 0.0  ;;  %v1487_v20 = vpop.f32.mrf.mxu2  ;;  %v1632_v21 = vpop.f32.mrf.mxu3 }
  0xb2   :  { %v1199_v22 = vpop.f32.mrf.mxu0  ;;  %v1344_v23 = vpop.f32.mrf.mxu1  ;;  %v1820_v38 = vmax.f32 %v1487_v20, %v1629_v9 }
  0xb3   :  { %v2050_v25 = vpack.c.bf16 %v1993_v19, %v1993_v19  ;;  %v1762_v26 = vmax.f32 %v1199_v22, %v1342_v11 }
  0xb5   :  { %2108 = vst.msk [vmem:[%s3676_s3 + $0x10] sm:$0xf] %vm2103_vm3, %v2050_v25  ;;  %v1876_v27 = vmax.f32 %v1762_v26, %v1819_v24  ;;  %v2756_v24 = vld [vmem:[%s3674_s0 + $0x68] sm:$0xff]  ;;  %v2785_v25 = vld [vmem:[%s3674_s0 + $0x150] sm:$0xff] }
  0xb7   :  { %v1937_v28 = vadd.f32 %v3077_v2, %v1876_v27 }
  0xb9   :  { %v1994_v29 = vmax.f32 %v1937_v28, 0.0  ;;  %v1489_v30 = vpop.f32.mrf.mxu2  ;;  %v1634_v33 = vpop.f32.mrf.mxu3 }
  0xba   :  { %v1202_v34 = vpop.f32.mrf.mxu0  ;;  %v1347_v35 = vpop.f32.mrf.mxu1  ;;  %v1821_v54 = vmax.f32 %v1489_v30, %v1632_v21  ;;  %v2843_v30 = vld [vmem:[%s3674_s0 + $0x320] sm:$0xff] }
  0xbb   :  { %v2051_v39 = vpack.c.bf16 %v1994_v29, %v1994_v29  ;;  %v1763_v40 = vmax.f32 %v1202_v34, %v1344_v23  ;;  %v2814_v29 = vld [vmem:[%s3674_s0 + $0x238] sm:$0xff] }
  0xbd   :  { %2109 = vst.msk [vmem:[%s3676_s3 + $0x14] sm:$0xf] %vm2103_vm3, %v2051_v39  ;;  %v1877_v41 = vmax.f32 %v1763_v40, %v1820_v38  ;;  %2640 = vmatmul.msk.bf16.gmra.mxu0 %vm828_vm2, %v2754_v31  ;;  %2669 = vmatmul.msk.bf16.gmra.mxu1 %vm828_vm2, %v2783_v32 }
  0xbe   :  { %2698 = vmatmul.msk.bf16.gmra.mxu2 %vm828_vm2, %v2812_v36  ;;  %2727 = vmatmul.msk.bf16.gmra.mxu3 %vm828_vm2, %v2841_v37 }
  0xbf   :  { %v1938_v44 = vadd.f32 %v3077_v2, %v1877_v41 }
  0xc1   :  { %v1995_v45 = vmax.f32 %v1938_v44, 0.0  ;;  %v1492_v47 = vpop.f32.mrf.mxu2  ;;  %v1637_v51 = vpop.f32.mrf.mxu3 }
  0xc2   :  { %v1204_v52 = vpop.f32.mrf.mxu0  ;;  %v1349_v53 = vpop.f32.mrf.mxu1  ;;  %v1822_v7 = vmax.f32 %v1492_v47, %v1634_v33 }
  0xc3   :  { %v2052_v56 = vpack.c.bf16 %v1995_v45, %v1995_v45  ;;  %v1764_v57 = vmax.f32 %v1204_v52, %v1347_v35 }
  0xc5   :  { %2110 = vst.msk [vmem:[%s3676_s3 + $0x18] sm:$0xf] %vm2103_vm3, %v2052_v56  ;;  %v1878_v58 = vmax.f32 %v1764_v57, %v1821_v54  ;;  %v2757_v54 = vld [vmem:[%s3674_s0 + $0x70] sm:$0xff]  ;;  %v2786_v56 = vld [vmem:[%s3674_s0 + $0x158] sm:$0xff] }
  0xc7   :  { %v1939_v60 = vadd.f32 %v3077_v2, %v1878_v58 }
  0xc9   :  { %v1996_v61 = vmax.f32 %v1939_v60, 0.0  ;;  %v1494_v62 = vpop.f32.mrf.mxu2  ;;  %v1639_v1 = vpop.f32.mrf.mxu3 }
  0xca   :  { %v1207_v3 = vpop.f32.mrf.mxu0  ;;  %v1352_v4 = vpop.f32.mrf.mxu1  ;;  %v1823_v17 = vmax.f32 %v1494_v62, %v1637_v51  ;;  %v2844_v62 = vld [vmem:[%s3674_s0 + $0x328] sm:$0xff] }
  0xcb   :  { %v2053_v8 = vpack.c.bf16 %v1996_v61, %v1996_v61  ;;  %v1765_v9 = vmax.f32 %v1207_v3, %v1349_v53  ;;  %v2815_v61 = vld [vmem:[%s3674_s0 + $0x240] sm:$0xff] }
  0xcd   :  { %2111 = vst.msk [vmem:[%s3676_s3 + $0x1c] sm:$0xf] %vm2103_vm3, %v2053_v8  ;;  %v1879_v10 = vmax.f32 %v1765_v9, %v1822_v7  ;;  %2641 = vmatmul.msk.bf16.gmra.mxu0 %vm828_vm2, %v2755_v63  ;;  %2670 = vmatmul.msk.bf16.gmra.mxu1 %vm828_vm2, %v2784_v0 }
  0xce   :  { %2699 = vmatmul.msk.bf16.gmra.mxu2 %vm828_vm2, %v2813_v5  ;;  %2728 = vmatmul.msk.bf16.gmra.mxu3 %vm828_vm2, %v2842_v6 }
  0xcf   :  { %v1940_v11 = vadd.f32 %v3077_v2, %v1879_v10 }
  0xd1   :  { %v1997_v12 = vmax.f32 %v1940_v11, 0.0  ;;  %v1497_v13 = vpop.f32.mrf.mxu2  ;;  %v1642_v14 = vpop.f32.mrf.mxu3 }
  0xd2   :  { %v1209_v15 = vpop.f32.mrf.mxu0  ;;  %v1354_v16 = vpop.f32.mrf.mxu1  ;;  %v1824_v31 = vmax.f32 %v1497_v13, %v1639_v1 }
  0xd3   :  { %v2054_v18 = vpack.c.bf16 %v1997_v12, %v1997_v12  ;;  %v1766_v19 = vmax.f32 %v1209_v15, %v1352_v4 }
  0xd5   :  { %2112 = vst.msk [vmem:[%s3676_s3 + $0x20] sm:$0xf] %vm2103_vm3, %v2054_v18  ;;  %v1880_v20 = vmax.f32 %v1766_v19, %v1823_v17  ;;  %v2758_v17 = vld [vmem:[%s3674_s0 + $0x78] sm:$0xff]  ;;  %v2787_v18 = vld [vmem:[%s3674_s0 + $0x160] sm:$0xff] }
  0xd7   :  { %v1941_v21 = vadd.f32 %v3077_v2, %v1880_v20 }
  0xd9   :  { %v1998_v22 = vmax.f32 %v1941_v21, 0.0  ;;  %v1499_v23 = vpop.f32.mrf.mxu2  ;;  %v1644_v26 = vpop.f32.mrf.mxu3 }
  0xda   :  { %v1212_v27 = vpop.f32.mrf.mxu0  ;;  %v1357_v28 = vpop.f32.mrf.mxu1  ;;  %v1825_v41 = vmax.f32 %v1499_v23, %v1642_v14  ;;  %v2845_v23 = vld [vmem:[%s3674_s0 + $0x330] sm:$0xff] }
  0xdb   :  { %v2055_v32 = vpack.c.bf16 %v1998_v22, %v1998_v22  ;;  %v1767_v33 = vmax.f32 %v1212_v27, %v1354_v16  ;;  %v2816_v22 = vld [vmem:[%s3674_s0 + $0x248] sm:$0xff] }
  0xdd   :  { %2113 = vst.msk [vmem:[%s3676_s3 + $0x24] sm:$0xf] %vm2103_vm3, %v2055_v32  ;;  %v1881_v34 = vmax.f32 %v1767_v33, %v1824_v31  ;;  %2642 = vmatmul.msk.bf16.gmra.mxu0 %vm828_vm2, %v2756_v24  ;;  %2671 = vmatmul.msk.bf16.gmra.mxu1 %vm828_vm2, %v2785_v25 }
  0xde   :  { %2700 = vmatmul.msk.bf16.gmra.mxu2 %vm828_vm2, %v2814_v29  ;;  %2729 = vmatmul.msk.bf16.gmra.mxu3 %vm828_vm2, %v2843_v30 }
  0xdf   :  { %v1942_v35 = vadd.f32 %v3077_v2, %v1881_v34 }
  0xe1   :  { %v1999_v36 = vmax.f32 %v1942_v35, 0.0  ;;  %v1502_v37 = vpop.f32.mrf.mxu2  ;;  %v1647_v38 = vpop.f32.mrf.mxu3 }
  0xe2   :  { %v1214_v39 = vpop.f32.mrf.mxu0  ;;  %v1359_v40 = vpop.f32.mrf.mxu1  ;;  %v1826_v63 = vmax.f32 %v1502_v37, %v1644_v26 }
  0xe3   :  { %v2056_v44 = vpack.c.bf16 %v1999_v36, %v1999_v36  ;;  %v1768_v45 = vmax.f32 %v1214_v39, %v1357_v28 }
  0xe5   :  { %2114 = vst.msk [vmem:[%s3676_s3 + $0x28] sm:$0xf] %vm2103_vm3, %v2056_v44  ;;  %v1882_v47 = vmax.f32 %v1768_v45, %v1825_v41  ;;  %v2759_v41 = vld [vmem:[%s3674_s0 + $0x80] sm:$0xff]  ;;  %v2788_v44 = vld [vmem:[%s3674_s0 + $0x168] sm:$0xff] }
  0xe7   :  { %v1943_v51 = vadd.f32 %v3077_v2, %v1882_v47 }
  0xe9   :  { %v2000_v52 = vmax.f32 %v1943_v51, 0.0  ;;  %v1504_v53 = vpop.f32.mrf.mxu2  ;;  %v1649_v57 = vpop.f32.mrf.mxu3 }
  0xea   :  { %v1217_v58 = vpop.f32.mrf.mxu0  ;;  %v1362_v60 = vpop.f32.mrf.mxu1  ;;  %v1827_v10 = vmax.f32 %v1504_v53, %v1647_v38  ;;  %v2846_v53 = vld [vmem:[%s3674_s0 + $0x338] sm:$0xff] }
  0xeb   :  { %v2057_v0 = vpack.c.bf16 %v2000_v52, %v2000_v52  ;;  %v1769_v1 = vmax.f32 %v1217_v58, %v1359_v40  ;;  %v2817_v52 = vld [vmem:[%s3674_s0 + $0x250] sm:$0xff] }
  0xed   :  { %2115 = vst.msk [vmem:[%s3676_s3 + $0x2c] sm:$0xf] %vm2103_vm3, %v2057_v0  ;;  %v1883_v3 = vmax.f32 %v1769_v1, %v1826_v63  ;;  %2643 = vmatmul.msk.bf16.gmra.mxu0 %vm828_vm2, %v2757_v54  ;;  %2672 = vmatmul.msk.bf16.gmra.mxu1 %vm828_vm2, %v2786_v56 }
  0xee   :  { %2701 = vmatmul.msk.bf16.gmra.mxu2 %vm828_vm2, %v2815_v61  ;;  %2730 = vmatmul.msk.bf16.gmra.mxu3 %vm828_vm2, %v2844_v62 }
  0xef   :  { %v1944_v4 = vadd.f32 %v3077_v2, %v1883_v3 }
  0xf1   :  { %v2001_v5 = vmax.f32 %v1944_v4, 0.0  ;;  %v1507_v6 = vpop.f32.mrf.mxu2  ;;  %v1652_v7 = vpop.f32.mrf.mxu3 }
  0xf2   :  { %v1219_v8 = vpop.f32.mrf.mxu0  ;;  %v1364_v9 = vpop.f32.mrf.mxu1  ;;  %v1828_v24 = vmax.f32 %v1507_v6, %v1649_v57 }
  0xf3   :  { %v2058_v11 = vpack.c.bf16 %v2001_v5, %v2001_v5  ;;  %v1770_v12 = vmax.f32 %v1219_v8, %v1362_v60 }
  0xf5   :  { %2116 = vst.msk [vmem:[%s3676_s3 + $0x30] sm:$0xf] %vm2103_vm3, %v2058_v11  ;;  %v1884_v13 = vmax.f32 %v1770_v12, %v1827_v10  ;;  %v2760_v10 = vld [vmem:[%s3674_s0 + $0x88] sm:$0xff]  ;;  %v2789_v11 = vld [vmem:[%s3674_s0 + $0x170] sm:$0xff] }
  0xf7   :  { %v1945_v14 = vadd.f32 %v3077_v2, %v1884_v13 }
  0xf9   :  { %v2002_v15 = vmax.f32 %v1945_v14, 0.0  ;;  %v1509_v16 = vpop.f32.mrf.mxu2  ;;  %v1654_v19 = vpop.f32.mrf.mxu3 }
  0xfa   :  { %v1222_v20 = vpop.f32.mrf.mxu0  ;;  %v1367_v21 = vpop.f32.mrf.mxu1  ;;  %v1829_v34 = vmax.f32 %v1509_v16, %v1652_v7  ;;  %v2847_v16 = vld [vmem:[%s3674_s0 + $0x340] sm:$0xff] }
  0xfb   :  { %v2059_v25 = vpack.c.bf16 %v2002_v15, %v2002_v15  ;;  %v1771_v26 = vmax.f32 %v1222_v20, %v1364_v9  ;;  %v2818_v15 = vld [vmem:[%s3674_s0 + $0x258] sm:$0xff] }
  0xfd   :  { %2117 = vst.msk [vmem:[%s3676_s3 + $0x34] sm:$0xf] %vm2103_vm3, %v2059_v25  ;;  %v1885_v27 = vmax.f32 %v1771_v26, %v1828_v24  ;;  %2644 = vmatmul.msk.bf16.gmra.mxu0 %vm828_vm2, %v2758_v17  ;;  %2673 = vmatmul.msk.bf16.gmra.mxu1 %vm828_vm2, %v2787_v18 }
  0xfe   :  { %2702 = vmatmul.msk.bf16.gmra.mxu2 %vm828_vm2, %v2816_v22  ;;  %2731 = vmatmul.msk.bf16.gmra.mxu3 %vm828_vm2, %v2845_v23 }
  0xff   :  { %v1946_v28 = vadd.f32 %v3077_v2, %v1885_v27 }
 0x101   :  { %v2003_v29 = vmax.f32 %v1946_v28, 0.0  ;;  %v1512_v30 = vpop.f32.mrf.mxu2  ;;  %v1657_v31 = vpop.f32.mrf.mxu3 }
 0x102   :  { %v1224_v32 = vpop.f32.mrf.mxu0  ;;  %v1369_v33 = vpop.f32.mrf.mxu1  ;;  %v1830_v54 = vmax.f32 %v1512_v30, %v1654_v19 }
 0x103   :  { %v2060_v35 = vpack.c.bf16 %v2003_v29, %v2003_v29  ;;  %v1772_v36 = vmax.f32 %v1224_v32, %v1367_v21 }
 0x105   :  { %2118 = vst.msk [vmem:[%s3676_s3 + $0x38] sm:$0xf] %vm2103_vm3, %v2060_v35  ;;  %v1886_v37 = vmax.f32 %v1772_v36, %v1829_v34  ;;  %v2761_v34 = vld [vmem:[%s3674_s0 + $0x90] sm:$0xff]  ;;  %v2790_v35 = vld [vmem:[%s3674_s0 + $0x178] sm:$0xff] }
 0x107   :  { %v1947_v38 = vadd.f32 %v3077_v2, %v1886_v37 }
 0x109   :  { %v2004_v39 = vmax.f32 %v1947_v38, 0.0  ;;  %v1514_v40 = vpop.f32.mrf.mxu2  ;;  %v1659_v45 = vpop.f32.mrf.mxu3 }
 0x10a   :  { %v1227_v47 = vpop.f32.mrf.mxu0  ;;  %v1372_v51 = vpop.f32.mrf.mxu1  ;;  %v1831_v3 = vmax.f32 %v1514_v40, %v1657_v31  ;;  %v2848_v40 = vld [vmem:[%s3674_s0 + $0x348] sm:$0xff] }
 0x10b   :  { %v2061_v56 = vpack.c.bf16 %v2004_v39, %v2004_v39  ;;  %v1773_v57 = vmax.f32 %v1227_v47, %v1369_v33  ;;  %v2819_v39 = vld [vmem:[%s3674_s0 + $0x260] sm:$0xff] }
 0x10d   :  { %2119 = vst.msk [vmem:[%s3676_s3 + $0x3c] sm:$0xf] %vm2103_vm3, %v2061_v56  ;;  %v1887_v58 = vmax.f32 %v1773_v57, %v1830_v54  ;;  %2645 = vmatmul.msk.bf16.gmra.mxu0 %vm828_vm2, %v2759_v41  ;;  %2674 = vmatmul.msk.bf16.gmra.mxu1 %vm828_vm2, %v2788_v44 }
 0x10e   :  { %2703 = vmatmul.msk.bf16.gmra.mxu2 %vm828_vm2, %v2817_v52  ;;  %2732 = vmatmul.msk.bf16.gmra.mxu3 %vm828_vm2, %v2846_v53 }
 0x10f   :  { %v1948_v60 = vadd.f32 %v3077_v2, %v1887_v58 }
 0x111   :  { %v2005_v61 = vmax.f32 %v1948_v60, 0.0  ;;  %v1517_v62 = vpop.f32.mrf.mxu2  ;;  %v1662_v63 = vpop.f32.mrf.mxu3 }
 0x112   :  { %v1229_v0 = vpop.f32.mrf.mxu0  ;;  %v1374_v1 = vpop.f32.mrf.mxu1  ;;  %v1832_v17 = vmax.f32 %v1517_v62, %v1659_v45 }
 0x113   :  { %v2062_v4 = vpack.c.bf16 %v2005_v61, %v2005_v61  ;;  %v1774_v5 = vmax.f32 %v1229_v0, %v1372_v51 }
 0x115   :  { %2120 = vst.msk [vmem:[%s3676_s3 + $0x40] sm:$0xf] %vm2103_vm3, %v2062_v4  ;;  %v1888_v6 = vmax.f32 %v1774_v5, %v1831_v3  ;;  %v2762_v3 = vld [vmem:[%s3674_s0 + $0x98] sm:$0xff]  ;;  %v2791_v4 = vld [vmem:[%s3674_s0 + $0x180] sm:$0xff] }
 0x117   :  { %v1949_v7 = vadd.f32 %v3077_v2, %v1888_v6 }
 0x119   :  { %v2006_v8 = vmax.f32 %v1949_v7, 0.0  ;;  %v1519_v9 = vpop.f32.mrf.mxu2  ;;  %v1664_v12 = vpop.f32.mrf.mxu3 }
 0x11a   :  { %v1232_v13 = vpop.f32.mrf.mxu0  ;;  %v1377_v14 = vpop.f32.mrf.mxu1  ;;  %v1833_v27 = vmax.f32 %v1519_v9, %v1662_v63  ;;  %v2849_v9 = vld [vmem:[%s3674_s0 + $0x350] sm:$0xff] }
 0x11b   :  { %v2063_v18 = vpack.c.bf16 %v2006_v8, %v2006_v8  ;;  %v1775_v19 = vmax.f32 %v1232_v13, %v1374_v1  ;;  %v2820_v8 = vld [vmem:[%s3674_s0 + $0x268] sm:$0xff] }
 0x11d   :  { %2121 = vst.msk [vmem:[%s3676_s3 + $0x44] sm:$0xf] %vm2103_vm3, %v2063_v18  ;;  %v1889_v20 = vmax.f32 %v1775_v19, %v1832_v17  ;;  %2646 = vmatmul.msk.bf16.gmra.mxu0 %vm828_vm2, %v2760_v10  ;;  %2675 = vmatmul.msk.bf16.gmra.mxu1 %vm828_vm2, %v2789_v11 }
 0x11e   :  { %2704 = vmatmul.msk.bf16.gmra.mxu2 %vm828_vm2, %v2818_v15  ;;  %2733 = vmatmul.msk.bf16.gmra.mxu3 %vm828_vm2, %v2847_v16 }
 0x11f   :  { %v1950_v21 = vadd.f32 %v3077_v2, %v1889_v20 }
 0x121   :  { %v2007_v22 = vmax.f32 %v1950_v21, 0.0  ;;  %v1522_v23 = vpop.f32.mrf.mxu2  ;;  %v1667_v24 = vpop.f32.mrf.mxu3 }
 0x122   :  { %v1234_v25 = vpop.f32.mrf.mxu0  ;;  %v1379_v26 = vpop.f32.mrf.mxu1  ;;  %v1834_v41 = vmax.f32 %v1522_v23, %v1664_v12 }
 0x123   :  { %v2064_v28 = vpack.c.bf16 %v2007_v22, %v2007_v22  ;;  %v1776_v29 = vmax.f32 %v1234_v25, %v1377_v14 }
 0x125   :  { %2122 = vst.msk [vmem:[%s3676_s3 + $0x48] sm:$0xf] %vm2103_vm3, %v2064_v28  ;;  %v1890_v30 = vmax.f32 %v1776_v29, %v1833_v27  ;;  %v2763_v27 = vld [vmem:[%s3674_s0 + $0xa0] sm:$0xff]  ;;  %v2792_v28 = vld [vmem:[%s3674_s0 + $0x188] sm:$0xff] }
 0x127   :  { %v1951_v31 = vadd.f32 %v3077_v2, %v1890_v30 }
 0x129   :  { %v2008_v32 = vmax.f32 %v1951_v31, 0.0  ;;  %v1524_v33 = vpop.f32.mrf.mxu2  ;;  %v1669_v36 = vpop.f32.mrf.mxu3 }
 0x12a   :  { %v1237_v37 = vpop.f32.mrf.mxu0  ;;  %v1382_v38 = vpop.f32.mrf.mxu1  ;;  %v1835_v58 = vmax.f32 %v1524_v33, %v1667_v24  ;;  %v2850_v33 = vld [vmem:[%s3674_s0 + $0x358] sm:$0xff] }
 0x12b   :  { %v2065_v44 = vpack.c.bf16 %v2008_v32, %v2008_v32  ;;  %v1777_v45 = vmax.f32 %v1237_v37, %v1379_v26  ;;  %v2821_v32 = vld [vmem:[%s3674_s0 + $0x270] sm:$0xff] }
 0x12d   :  { %2123 = vst.msk [vmem:[%s3676_s3 + $0x4c] sm:$0xf] %vm2103_vm3, %v2065_v44  ;;  %v1891_v47 = vmax.f32 %v1777_v45, %v1834_v41  ;;  %2647 = vmatmul.msk.bf16.gmra.mxu0 %vm828_vm2, %v2761_v34  ;;  %2676 = vmatmul.msk.bf16.gmra.mxu1 %vm828_vm2, %v2790_v35 }
 0x12e   :  { %2705 = vmatmul.msk.bf16.gmra.mxu2 %vm828_vm2, %v2819_v39  ;;  %2734 = vmatmul.msk.bf16.gmra.mxu3 %vm828_vm2, %v2848_v40 }
 0x12f   :  { %v1952_v51 = vadd.f32 %v3077_v2, %v1891_v47 }
 0x131   :  { %v2009_v52 = vmax.f32 %v1952_v51, 0.0  ;;  %v1527_v53 = vpop.f32.mrf.mxu2  ;;  %v1672_v54 = vpop.f32.mrf.mxu3 }
 0x132   :  { %v1239_v56 = vpop.f32.mrf.mxu0  ;;  %v1384_v57 = vpop.f32.mrf.mxu1  ;;  %v1836_v10 = vmax.f32 %v1527_v53, %v1669_v36 }
 0x133   :  { %v2066_v60 = vpack.c.bf16 %v2009_v52, %v2009_v52  ;;  %v1778_v61 = vmax.f32 %v1239_v56, %v1382_v38 }
 0x135   :  { %2124 = vst.msk [vmem:[%s3676_s3 + $0x50] sm:$0xf] %vm2103_vm3, %v2066_v60  ;;  %v1892_v62 = vmax.f32 %v1778_v61, %v1835_v58  ;;  %v2764_v58 = vld [vmem:[%s3674_s0 + $0xa8] sm:$0xff]  ;;  %v2793_v60 = vld [vmem:[%s3674_s0 + $0x190] sm:$0xff] }
 0x137   :  { %v1953_v63 = vadd.f32 %v3077_v2, %v1892_v62 }
 0x139   :  { %v2010_v0 = vmax.f32 %v1953_v63, 0.0  ;;  %v1529_v1 = vpop.f32.mrf.mxu2  ;;  %v1674_v5 = vpop.f32.mrf.mxu3 }
 0x13a   :  { %v1242_v6 = vpop.f32.mrf.mxu0  ;;  %v1387_v7 = vpop.f32.mrf.mxu1  ;;  %v1837_v20 = vmax.f32 %v1529_v1, %v1672_v54  ;;  %v2851_v1 = vld [vmem:[%s3674_s0 + $0x360] sm:$0xff] }
 0x13b   :  { %v2067_v11 = vpack.c.bf16 %v2010_v0, %v2010_v0  ;;  %v1779_v12 = vmax.f32 %v1242_v6, %v1384_v57  ;;  %v2822_v0 = vld [vmem:[%s3674_s0 + $0x278] sm:$0xff] }
 0x13d   :  { %2125 = vst.msk [vmem:[%s3676_s3 + $0x54] sm:$0xf] %vm2103_vm3, %v2067_v11  ;;  %v1893_v13 = vmax.f32 %v1779_v12, %v1836_v10  ;;  %2648 = vmatmul.msk.bf16.gmra.mxu0 %vm828_vm2, %v2762_v3  ;;  %2677 = vmatmul.msk.bf16.gmra.mxu1 %vm828_vm2, %v2791_v4 }
 0x13e   :  { %2706 = vmatmul.msk.bf16.gmra.mxu2 %vm828_vm2, %v2820_v8  ;;  %2735 = vmatmul.msk.bf16.gmra.mxu3 %vm828_vm2, %v2849_v9 }
 0x13f   :  { %v1954_v14 = vadd.f32 %v3077_v2, %v1893_v13 }
 0x141   :  { %v2011_v15 = vmax.f32 %v1954_v14, 0.0  ;;  %v1532_v16 = vpop.f32.mrf.mxu2  ;;  %v1677_v17 = vpop.f32.mrf.mxu3 }
 0x142   :  { %v1244_v18 = vpop.f32.mrf.mxu0  ;;  %v1389_v19 = vpop.f32.mrf.mxu1  ;;  %v1838_v34 = vmax.f32 %v1532_v16, %v1674_v5 }
 0x143   :  { %v2068_v21 = vpack.c.bf16 %v2011_v15, %v2011_v15  ;;  %v1780_v22 = vmax.f32 %v1244_v18, %v1387_v7 }
 0x145   :  { %2126 = vst.msk [vmem:[%s3676_s3 + $0x58] sm:$0xf] %vm2103_vm3, %v2068_v21  ;;  %v1894_v23 = vmax.f32 %v1780_v22, %v1837_v20  ;;  %v2765_v20 = vld [vmem:[%s3674_s0 + $0xb0] sm:$0xff]  ;;  %v2794_v21 = vld [vmem:[%s3674_s0 + $0x198] sm:$0xff] }
 0x147   :  { %v1955_v24 = vadd.f32 %v3077_v2, %v1894_v23 }
 0x149   :  { %v2012_v25 = vmax.f32 %v1955_v24, 0.0  ;;  %v1534_v26 = vpop.f32.mrf.mxu2  ;;  %v1679_v29 = vpop.f32.mrf.mxu3 }
 0x14a   :  { %v1247_v30 = vpop.f32.mrf.mxu0  ;;  %v1392_v31 = vpop.f32.mrf.mxu1  ;;  %v1839_v47 = vmax.f32 %v1534_v26, %v1677_v17  ;;  %v2852_v26 = vld [vmem:[%s3674_s0 + $0x368] sm:$0xff] }
 0x14b   :  { %v2069_v35 = vpack.c.bf16 %v2012_v25, %v2012_v25  ;;  %v1781_v36 = vmax.f32 %v1247_v30, %v1389_v19  ;;  %v2823_v25 = vld [vmem:[%s3674_s0 + $0x280] sm:$0xff] }
 0x14d   :  { %2127 = vst.msk [vmem:[%s3676_s3 + $0x5c] sm:$0xf] %vm2103_vm3, %v2069_v35  ;;  %v1895_v37 = vmax.f32 %v1781_v36, %v1838_v34  ;;  %2649 = vmatmul.msk.bf16.gmra.mxu0 %vm828_vm2, %v2763_v27  ;;  %2678 = vmatmul.msk.bf16.gmra.mxu1 %vm828_vm2, %v2792_v28 }
 0x14e   :  { %2707 = vmatmul.msk.bf16.gmra.mxu2 %vm828_vm2, %v2821_v32  ;;  %2736 = vmatmul.msk.bf16.gmra.mxu3 %vm828_vm2, %v2850_v33 }
 0x14f   :  { %v1956_v38 = vadd.f32 %v3077_v2, %v1895_v37 }
 0x151   :  { %v2013_v39 = vmax.f32 %v1956_v38, 0.0  ;;  %v1537_v40 = vpop.f32.mrf.mxu2  ;;  %v1682_v41 = vpop.f32.mrf.mxu3 }
 0x152   :  { %v1249_v44 = vpop.f32.mrf.mxu0  ;;  %v1394_v45 = vpop.f32.mrf.mxu1  ;;  %v1840_v3 = vmax.f32 %v1537_v40, %v1679_v29 }
 0x153   :  { %v2070_v51 = vpack.c.bf16 %v2013_v39, %v2013_v39  ;;  %v1782_v52 = vmax.f32 %v1249_v44, %v1392_v31 }
 0x155   :  { %2128 = vst.msk [vmem:[%s3676_s3 + $0x60] sm:$0xf] %vm2103_vm3, %v2070_v51  ;;  %v1896_v53 = vmax.f32 %v1782_v52, %v1839_v47  ;;  %v2766_v47 = vld [vmem:[%s3674_s0 + $0xb8] sm:$0xff]  ;;  %v2795_v51 = vld [vmem:[%s3674_s0 + $0x1a0] sm:$0xff] }
 0x157   :  { %v1957_v54 = vadd.f32 %v3077_v2, %v1896_v53 }
 0x159   :  { %v2014_v56 = vmax.f32 %v1957_v54, 0.0  ;;  %v1539_v57 = vpop.f32.mrf.mxu2  ;;  %v1684_v61 = vpop.f32.mrf.mxu3 }
 0x15a   :  { %v1252_v62 = vpop.f32.mrf.mxu0  ;;  %v1397_v63 = vpop.f32.mrf.mxu1  ;;  %v1841_v13 = vmax.f32 %v1539_v57, %v1682_v41  ;;  %v2853_v57 = vld [vmem:[%s3674_s0 + $0x370] sm:$0xff] }
 0x15b   :  { %v2071_v4 = vpack.c.bf16 %v2014_v56, %v2014_v56  ;;  %v1783_v5 = vmax.f32 %v1252_v62, %v1394_v45  ;;  %v2824_v56 = vld [vmem:[%s3674_s0 + $0x288] sm:$0xff] }
 0x15d   :  { %2129 = vst.msk [vmem:[%s3676_s3 + $0x64] sm:$0xf] %vm2103_vm3, %v2071_v4  ;;  %v1897_v6 = vmax.f32 %v1783_v5, %v1840_v3  ;;  %2650 = vmatmul.msk.bf16.gmra.mxu0 %vm828_vm2, %v2764_v58  ;;  %2679 = vmatmul.msk.bf16.gmra.mxu1 %vm828_vm2, %v2793_v60 }
 0x15e   :  { %2708 = vmatmul.msk.bf16.gmra.mxu2 %vm828_vm2, %v2822_v0  ;;  %2737 = vmatmul.msk.bf16.gmra.mxu3 %vm828_vm2, %v2851_v1 }
 0x15f   :  { %v1958_v7 = vadd.f32 %v3077_v2, %v1897_v6 }
 0x161   :  { %v2015_v8 = vmax.f32 %v1958_v7, 0.0  ;;  %v1542_v9 = vpop.f32.mrf.mxu2  ;;  %v1687_v10 = vpop.f32.mrf.mxu3 }
 0x162   :  { %v1254_v11 = vpop.f32.mrf.mxu0  ;;  %v1399_v12 = vpop.f32.mrf.mxu1  ;;  %v1842_v27 = vmax.f32 %v1542_v9, %v1684_v61 }
 0x163   :  { %v2072_v14 = vpack.c.bf16 %v2015_v8, %v2015_v8  ;;  %v1784_v15 = vmax.f32 %v1254_v11, %v1397_v63 }
 0x165   :  { %2130 = vst.msk [vmem:[%s3676_s3 + $0x68] sm:$0xf] %vm2103_vm3, %v2072_v14  ;;  %v1898_v16 = vmax.f32 %v1784_v15, %v1841_v13  ;;  %v2767_v13 = vld [vmem:[%s3674_s0 + $0xc0] sm:$0xff]  ;;  %v2796_v14 = vld [vmem:[%s3674_s0 + $0x1a8] sm:$0xff] }
 0x167   :  { %v1959_v17 = vadd.f32 %v3077_v2, %v1898_v16 }
 0x169   :  { %v2016_v18 = vmax.f32 %v1959_v17, 0.0  ;;  %v1544_v19 = vpop.f32.mrf.mxu2  ;;  %v1689_v22 = vpop.f32.mrf.mxu3 }
 0x16a   :  { %v1257_v23 = vpop.f32.mrf.mxu0  ;;  %v1402_v24 = vpop.f32.mrf.mxu1  ;;  %v1843_v37 = vmax.f32 %v1544_v19, %v1687_v10  ;;  %v2854_v19 = vld [vmem:[%s3674_s0 + $0x378] sm:$0xff] }
 0x16b   :  { %v2073_v28 = vpack.c.bf16 %v2016_v18, %v2016_v18  ;;  %v1785_v29 = vmax.f32 %v1257_v23, %v1399_v12  ;;  %v2825_v18 = vld [vmem:[%s3674_s0 + $0x290] sm:$0xff] }
 0x16d   :  { %2131 = vst.msk [vmem:[%s3676_s3 + $0x6c] sm:$0xf] %vm2103_vm3, %v2073_v28  ;;  %v1899_v30 = vmax.f32 %v1785_v29, %v1842_v27  ;;  %2651 = vmatmul.msk.bf16.gmra.mxu0 %vm828_vm2, %v2765_v20  ;;  %2680 = vmatmul.msk.bf16.gmra.mxu1 %vm828_vm2, %v2794_v21 }
 0x16e   :  { %2709 = vmatmul.msk.bf16.gmra.mxu2 %vm828_vm2, %v2823_v25  ;;  %2738 = vmatmul.msk.bf16.gmra.mxu3 %vm828_vm2, %v2852_v26 }
 0x16f   :  { %v1960_v31 = vadd.f32 %v3077_v2, %v1899_v30 }
 0x171   :  { %v2017_v32 = vmax.f32 %v1960_v31, 0.0  ;;  %v1547_v33 = vpop.f32.mrf.mxu2  ;;  %v1692_v34 = vpop.f32.mrf.mxu3 }
 0x172   :  { %v1259_v35 = vpop.f32.mrf.mxu0  ;;  %v1404_v36 = vpop.f32.mrf.mxu1  ;;  %v1844_v58 = vmax.f32 %v1547_v33, %v1689_v22 }
 0x173   :  { %v2074_v38 = vpack.c.bf16 %v2017_v32, %v2017_v32  ;;  %v1786_v39 = vmax.f32 %v1259_v35, %v1402_v24 }
 0x175   :  { %2132 = vst.msk [vmem:[%s3676_s3 + $0x70] sm:$0xf] %vm2103_vm3, %v2074_v38  ;;  %v1900_v40 = vmax.f32 %v1786_v39, %v1843_v37  ;;  %v2768_v37 = vld [vmem:[%s3674_s0 + $0xc8] sm:$0xff]  ;;  %v2797_v38 = vld [vmem:[%s3674_s0 + $0x1b0] sm:$0xff] }
 0x177   :  { %v1961_v41 = vadd.f32 %v3077_v2, %v1900_v40 }
 0x179   :  { %v2018_v44 = vmax.f32 %v1961_v41, 0.0  ;;  %v1549_v45 = vpop.f32.mrf.mxu2  ;;  %v1694_v52 = vpop.f32.mrf.mxu3 }
 0x17a   :  { %v1262_v53 = vpop.f32.mrf.mxu0  ;;  %v1407_v54 = vpop.f32.mrf.mxu1  ;;  %v1845_v6 = vmax.f32 %v1549_v45, %v1692_v34  ;;  %v2855_v45 = vld [vmem:[%s3674_s0 + $0x380] sm:$0xff] }
 0x17b   :  { %v2075_v60 = vpack.c.bf16 %v2018_v44, %v2018_v44  ;;  %v1787_v61 = vmax.f32 %v1262_v53, %v1404_v36  ;;  %v2826_v44 = vld [vmem:[%s3674_s0 + $0x298] sm:$0xff] }
 0x17d   :  { %2133 = vst.msk [vmem:[%s3676_s3 + $0x74] sm:$0xf] %vm2103_vm3, %v2075_v60  ;;  %v1901_v62 = vmax.f32 %v1787_v61, %v1844_v58  ;;  %2652 = vmatmul.msk.bf16.gmra.mxu0 %vm828_vm2, %v2766_v47  ;;  %2681 = vmatmul.msk.bf16.gmra.mxu1 %vm828_vm2, %v2795_v51 }
 0x17e   :  { %2710 = vmatmul.msk.bf16.gmra.mxu2 %vm828_vm2, %v2824_v56  ;;  %2739 = vmatmul.msk.bf16.gmra.mxu3 %vm828_vm2, %v2853_v57 }
 0x17f   :  { %v1962_v63 = vadd.f32 %v3077_v2, %v1901_v62 }
 0x181   :  { %v2019_v0 = vmax.f32 %v1962_v63, 0.0  ;;  %v1552_v1 = vpop.f32.mrf.mxu2  ;;  %v1697_v3 = vpop.f32.mrf.mxu3 }
 0x182   :  { %v1264_v4 = vpop.f32.mrf.mxu0  ;;  %v1409_v5 = vpop.f32.mrf.mxu1  ;;  %v1846_v20 = vmax.f32 %v1552_v1, %v1694_v52 }
 0x183   :  { %v2076_v7 = vpack.c.bf16 %v2019_v0, %v2019_v0  ;;  %v1788_v8 = vmax.f32 %v1264_v4, %v1407_v54 }
 0x185   :  { %2134 = vst.msk [vmem:[%s3676_s3 + $0x78] sm:$0xf] %vm2103_vm3, %v2076_v7  ;;  %v1902_v9 = vmax.f32 %v1788_v8, %v1845_v6  ;;  %v2769_v6 = vld [vmem:[%s3674_s0 + $0xd0] sm:$0xff]  ;;  %v2798_v7 = vld [vmem:[%s3674_s0 + $0x1b8] sm:$0xff] }
 0x187   :  { %v1963_v10 = vadd.f32 %v3077_v2, %v1902_v9 }
 0x189   :  { %v2020_v11 = vmax.f32 %v1963_v10, 0.0  ;;  %v1554_v12 = vpop.f32.mrf.mxu2  ;;  %v1699_v15 = vpop.f32.mrf.mxu3 }
 0x18a   :  { %v1267_v16 = vpop.f32.mrf.mxu0  ;;  %v1412_v17 = vpop.f32.mrf.mxu1  ;;  %v1847_v30 = vmax.f32 %v1554_v12, %v1697_v3  ;;  %v2856_v12 = vld [vmem:[%s3674_s0 + $0x388] sm:$0xff] }
 0x18b   :  { %v2077_v21 = vpack.c.bf16 %v2020_v11, %v2020_v11  ;;  %v1789_v22 = vmax.f32 %v1267_v16, %v1409_v5  ;;  %v2827_v11 = vld [vmem:[%s3674_s0 + $0x2a0] sm:$0xff] }
 0x18d   :  { %2135 = vst.msk [vmem:[%s3676_s3 + $0x7c] sm:$0xf] %vm2103_vm3, %v2077_v21  ;;  %v1903_v23 = vmax.f32 %v1789_v22, %v1846_v20  ;;  %2653 = vmatmul.msk.bf16.gmra.mxu0 %vm828_vm2, %v2767_v13  ;;  %2682 = vmatmul.msk.bf16.gmra.mxu1 %vm828_vm2, %v2796_v14 }
 0x18e   :  { %2711 = vmatmul.msk.bf16.gmra.mxu2 %vm828_vm2, %v2825_v18  ;;  %2740 = vmatmul.msk.bf16.gmra.mxu3 %vm828_vm2, %v2854_v19 }
 0x18f   :  { %v1964_v24 = vadd.f32 %v3077_v2, %v1903_v23 }
 0x191   :  { %v2021_v25 = vmax.f32 %v1964_v24, 0.0  ;;  %v1557_v26 = vpop.f32.mrf.mxu2  ;;  %v1702_v27 = vpop.f32.mrf.mxu3 }
 0x192   :  { %v1269_v28 = vpop.f32.mrf.mxu0  ;;  %v1414_v29 = vpop.f32.mrf.mxu1  ;;  %v1848_v47 = vmax.f32 %v1557_v26, %v1699_v15 }
 0x193   :  { %v2078_v31 = vpack.c.bf16 %v2021_v25, %v2021_v25  ;;  %v1790_v32 = vmax.f32 %v1269_v28, %v1412_v17 }
 0x195   :  { %2136 = vst.msk [vmem:[%s3676_s3 + $0x80] sm:$0xf] %vm2103_vm3, %v2078_v31  ;;  %v1904_v33 = vmax.f32 %v1790_v32, %v1847_v30  ;;  %v2770_v30 = vld [vmem:[%s3674_s0 + $0xd8] sm:$0xff]  ;;  %v2799_v31 = vld [vmem:[%s3674_s0 + $0x1c0] sm:$0xff] }
 0x197   :  { %v1965_v34 = vadd.f32 %v3077_v2, %v1904_v33 }
 0x199   :  { %v2022_v35 = vmax.f32 %v1965_v34, 0.0  ;;  %v1559_v36 = vpop.f32.mrf.mxu2  ;;  %v1704_v39 = vpop.f32.mrf.mxu3 }
 0x19a   :  { %v1272_v40 = vpop.f32.mrf.mxu0  ;;  %v1417_v41 = vpop.f32.mrf.mxu1  ;;  %v1849_v62 = vmax.f32 %v1559_v36, %v1702_v27  ;;  %v3524_v27 = vld [vmem:[%s3675_s2] ss:$0 sm:$0xff] }
 0x19b   :  { %v2079_v51 = vpack.c.bf16 %v2022_v35, %v2022_v35  ;;  %v1791_v52 = vmax.f32 %v1272_v40, %v1414_v29  ;;  %v2828_v35 = vld [vmem:[%s3674_s0 + $0x2a8] sm:$0xff] }
 0x19d   :  { %2137 = vst.msk [vmem:[%s3676_s3 + $0x84] sm:$0xf] %vm2103_vm3, %v2079_v51  ;;  %v1905_v53 = vmax.f32 %v1791_v52, %v1848_v47  ;;  %2654 = vmatmul.msk.bf16.gmra.mxu0 %vm828_vm2, %v2768_v37  ;;  %2683 = vmatmul.msk.bf16.gmra.mxu1 %vm828_vm2, %v2797_v38 }
 0x19e   :  { %2712 = vmatmul.msk.bf16.gmra.mxu2 %vm828_vm2, %v2826_v44  ;;  %2741 = vmatmul.msk.bf16.gmra.mxu3 %vm828_vm2, %v2855_v45 }
 0x19f   :  { %v1966_v54 = vadd.f32 %v3077_v2, %v1905_v53 }
 0x1a1   :  { %v2023_v56 = vmax.f32 %v1966_v54, 0.0  ;;  %v1562_v57 = vpop.f32.mrf.mxu2  ;;  %v1707_v58 = vpop.f32.mrf.mxu3 }
 0x1a2   :  { %v1274_v60 = vpop.f32.mrf.mxu0  ;;  %v1419_v61 = vpop.f32.mrf.mxu1  ;;  %v1850_v13 = vmax.f32 %v1562_v57, %v1704_v39 }
 0x1a3   :  { %v2080_v63 = vpack.c.bf16 %v2023_v56, %v2023_v56  ;;  %v1792_v0 = vmax.f32 %v1274_v60, %v1417_v41 }
 0x1a5   :  { %2138 = vst.msk [vmem:[%s3676_s3 + $0x88] sm:$0xf] %vm2103_vm3, %v2080_v63  ;;  %v1906_v1 = vmax.f32 %v1792_v0, %v1849_v62  ;;  %v2800_v62 = vld [vmem:[%s3674_s0 + $0x1c8] sm:$0xff] }
 0x1a7   :  { %v1967_v3 = vadd.f32 %v3077_v2, %v1906_v1 }
 0x1a9   :  { %v2024_v4 = vmax.f32 %v1967_v3, 0.0  ;;  %v1564_v5 = vpop.f32.mrf.mxu2  ;;  %v1709_v8 = vpop.f32.mrf.mxu3  ;;  %v2829_v3 = vld [vmem:[%s3674_s0 + $0x2b0] sm:$0xff] }
 0x1aa   :  { %v1277_v9 = vpop.f32.mrf.mxu0  ;;  %v1422_v10 = vpop.f32.mrf.mxu1  ;;  %v1851_v23 = vmax.f32 %v1564_v5, %v1707_v58 }
 0x1ab   :  { %v2081_v14 = vpack.c.bf16 %v2024_v4, %v2024_v4  ;;  %v1793_v15 = vmax.f32 %v1277_v9, %v1419_v61  ;;  %v2771_v61 = vld [vmem:[%s3674_s0 + $0xe0] sm:$0xff] }
 0x1ad   :  { %2139 = vst.msk [vmem:[%s3676_s3 + $0x8c] sm:$0xf] %vm2103_vm3, %v2081_v14  ;;  %v1907_v16 = vmax.f32 %v1793_v15, %v1850_v13  ;;  %2655 = vmatmul.msk.bf16.gmra.mxu0 %vm828_vm2, %v2769_v6  ;;  %2684 = vmatmul.msk.bf16.gmra.mxu1 %vm828_vm2, %v2798_v7 }
 0x1ae   :  { %2713 = vmatmul.msk.bf16.gmra.mxu2 %vm828_vm2, %v2827_v11  ;;  %2742 = vmatmul.msk.bf16.gmra.mxu3 %vm828_vm2, %v2856_v12 }
 0x1af   :  { %v1968_v17 = vadd.f32 %v3077_v2, %v1907_v16 }
 0x1b1   :  { %v2025_v18 = vmax.f32 %v1968_v17, 0.0  ;;  %v1567_v19 = vpop.f32.mrf.mxu2  ;;  %v1712_v20 = vpop.f32.mrf.mxu3 }
 0x1b2   :  { %v1279_v21 = vpop.f32.mrf.mxu0  ;;  %v1424_v22 = vpop.f32.mrf.mxu1  ;;  %v1852_v36 = vmax.f32 %v1567_v19, %v1709_v8 }
 0x1b3   :  { %v2082_v24 = vpack.c.bf16 %v2025_v18, %v2025_v18  ;;  %v1794_v25 = vmax.f32 %v1279_v21, %v1422_v10 }
 0x1b5   :  { %2140 = vst.msk [vmem:[%s3676_s3 + $0x90] sm:$0xf] %vm2103_vm3, %v2082_v24  ;;  %v1908_v26 = vmax.f32 %v1794_v25, %v1851_v23 }
 0x1b7   :  { %v1969_v2 = vadd.f32 %v3524_v27, %v1908_v26 }
 0x1b9   :  { %v2026_v28 = vmax.f32 %v1969_v2, 0.0  ;;  %v1569_v29 = vpop.f32.mrf.mxu2  ;;  %v1714_v32 = vpop.f32.mrf.mxu3 }
 0x1ba   :  { %v1282_v33 = vpop.f32.mrf.mxu0  ;;  %v1427_v34 = vpop.f32.mrf.mxu1  ;;  %v1853_v52 = vmax.f32 %v1569_v29, %v1712_v20 }
 0x1bb   :  { %v2083_v37 = vpack.c.bf16 %v2026_v28, %v2026_v28  ;;  %v1795_v38 = vmax.f32 %v1282_v33, %v1424_v22 }
 0x1bd   :  { %2141 = vst.msk [vmem:[%s3676_s3 + $0x94] sm:$0xf] %vm2103_vm3, %v2083_v37  ;;  %v1909_v39 = vmax.f32 %v1795_v38, %v1852_v36  ;;  %2656 = vmatmul.msk.bf16.gmra.mxu0 %vm828_vm2, %v2770_v30  ;;  %2685 = vmatmul.msk.bf16.gmra.mxu1 %vm828_vm2, %v2799_v31 }
 0x1be   :  { %2714 = vmatmul.msk.bf16.gmra.mxu2 %vm828_vm2, %v2828_v35 }
 0x1bf   :  { %v1970_v40 = vadd.f32 %v3524_v27, %v1909_v39 }
 0x1c1   :  { %v2027_v41 = vmax.f32 %v1970_v40, 0.0  ;;  %v1572_v44 = vpop.f32.mrf.mxu2  ;;  %v1717_v45 = vpop.f32.mrf.mxu3 }
 0x1c2   :  { %v1284_v47 = vpop.f32.mrf.mxu0  ;;  %v1429_v51 = vpop.f32.mrf.mxu1  ;;  %v1854_v4 = vmax.f32 %v1572_v44, %v1714_v32 }
 0x1c3   :  { %v2084_v53 = vpack.c.bf16 %v2027_v41, %v2027_v41  ;;  %v1796_v54 = vmax.f32 %v1284_v47, %v1427_v34 }
 0x1c5   :  { %2142 = vst.msk [vmem:[%s3676_s3 + $0x98] sm:$0xf] %vm2103_vm3, %v2084_v53  ;;  %v1910_v56 = vmax.f32 %v1796_v54, %v1853_v52 }
 0x1c7   :  { %v1971_v57 = vadd.f32 %v3524_v27, %v1910_v56 }
 0x1c9   :  { %v2028_v58 = vmax.f32 %v1971_v57, 0.0  ;;  %v1574_v60 = vpop.f32.mrf.mxu2  ;;  %v1719_v63 = vpop.f32.mrf.mxu3 }
 0x1ca   :  { %v1287_v0 = vpop.f32.mrf.mxu0  ;;  %v1432_v1 = vpop.f32.mrf.mxu1  ;;  %v1855_v14 = vmax.f32 %v1574_v60, %v1717_v45 }
 0x1cb   :  { %v2085_v5 = vpack.c.bf16 %v2028_v58, %v2028_v58  ;;  %v1797_v6 = vmax.f32 %v1287_v0, %v1429_v51 }
 0x1cd   :  { %2143 = vst.msk [vmem:[%s3676_s3 + $0x9c] sm:$0xf] %vm2103_vm3, %v2085_v5  ;;  %v1911_v7 = vmax.f32 %v1797_v6, %v1854_v4  ;;  %2657 = vmatmul.msk.bf16.gmra.mxu0 %vm828_vm2, %v2771_v61  ;;  %2686 = vmatmul.msk.bf16.gmra.mxu1 %vm828_vm2, %v2800_v62 }
 0x1ce   :  { %2715 = vmatmul.msk.bf16.gmra.mxu2 %vm828_vm2, %v2829_v3 }
 0x1cf   :  { %v1972_v8 = vadd.f32 %v3524_v27, %v1911_v7 }
 0x1d1   :  { %v2029_v9 = vmax.f32 %v1972_v8, 0.0  ;;  %v1577_v10 = vpop.f32.mrf.mxu2  ;;  %v1722_v11 = vpop.f32.mrf.mxu3 }
 0x1d2   :  { %v1289_v12 = vpop.f32.mrf.mxu0  ;;  %v1434_v13 = vpop.f32.mrf.mxu1  ;;  %v1856_v24 = vmax.f32 %v1577_v10, %v1719_v63 }
 0x1d3   :  { %v2086_v15 = vpack.c.bf16 %v2029_v9, %v2029_v9  ;;  %v1798_v16 = vmax.f32 %v1289_v12, %v1432_v1 }
 0x1d5   :  { %2144 = vst.msk [vmem:[%s3676_s3 + $0xa0] sm:$0xf] %vm2103_vm3, %v2086_v15  ;;  %v1912_v17 = vmax.f32 %v1798_v16, %v1855_v14 }
 0x1d7   :  { %v1973_v18 = vadd.f32 %v3524_v27, %v1912_v17 }
 0x1d9   :  { %v2030_v19 = vmax.f32 %v1973_v18, 0.0  ;;  %v1579_v20 = vpop.f32.mrf.mxu2  ;;  %v1724_v21 = vpop.f32.mrf.mxu3 }
 0x1da   :  { %v1292_v22 = vpop.f32.mrf.mxu0  ;;  %v1437_v23 = vpop.f32.mrf.mxu1  ;;  %v1857_v34 = vmax.f32 %v1579_v20, %v1722_v11 }
 0x1db   :  { %v2087_v25 = vpack.c.bf16 %v2030_v19, %v2030_v19  ;;  %v1799_v26 = vmax.f32 %v1292_v22, %v1434_v13 }
 0x1dd   :  { %2145 = vst.msk [vmem:[%s3676_s3 + $0xa4] sm:$0xf] %vm2103_vm3, %v2087_v25  ;;  %v1913_v2 = vmax.f32 %v1799_v26, %v1856_v24 }
 0x1df   :  { %v1974_v28 = vadd.f32 %v3524_v27, %v1913_v2 }
 0x1e1   :  { %v2031_v29 = vmax.f32 %v1974_v28, 0.0  ;;  %v1582_v30 = vpop.f32.mrf.mxu2  ;;  %v1727_v31 = vpop.f32.mrf.mxu3 }
 0x1e2   :  { %v1294_v32 = vpop.f32.mrf.mxu0  ;;  %v1439_v33 = vpop.f32.mrf.mxu1  ;;  %v1858_v47 = vmax.f32 %v1582_v30, %v1724_v21 }
 0x1e3   :  { %v2088_v35 = vpack.c.bf16 %v2031_v29, %v2031_v29  ;;  %v1800_v36 = vmax.f32 %v1294_v32, %v1437_v23 }
 0x1e5   :  { %2146 = vst.msk [vmem:[%s3676_s3 + $0xa8] sm:$0xf] %vm2103_vm3, %v2088_v35  ;;  %v1914_v37 = vmax.f32 %v1800_v36, %v1857_v34 }
 0x1e7   :  { %v1975_v38 = vadd.f32 %v3524_v27, %v1914_v37 }
 0x1e9   :  { %v2032_v39 = vmax.f32 %v1975_v38, 0.0  ;;  %v1584_v40 = vpop.f32.mrf.mxu2  ;;  %v1729_v41 = vpop.f32.mrf.mxu3 }
 0x1ea   :  { %v1297_v44 = vpop.f32.mrf.mxu0  ;;  %v1442_v45 = vpop.f32.mrf.mxu1  ;;  %v1859_v62 = vmax.f32 %v1584_v40, %v1727_v31 }
 0x1eb   :  { %v2089_v51 = vpack.c.bf16 %v2032_v39, %v2032_v39  ;;  %v1801_v52 = vmax.f32 %v1297_v44, %v1439_v33 }
 0x1ed   :  { %2147 = vst.msk [vmem:[%s3676_s3 + $0xac] sm:$0xf] %vm2103_vm3, %v2089_v51  ;;  %v1915_v53 = vmax.f32 %v1801_v52, %v1858_v47 }
 0x1ef   :  { %v1976_v54 = vadd.f32 %v3524_v27, %v1915_v53 }
 0x1f1   :  { %v2033_v56 = vmax.f32 %v1976_v54, 0.0  ;;  %v1587_v57 = vpop.f32.mrf.mxu2  ;;  %v1732_v58 = vpop.f32.mrf.mxu3 }
 0x1f2   :  { %v1299_v60 = vpop.f32.mrf.mxu0  ;;  %v1444_v61 = vpop.f32.mrf.mxu1  ;;  %v1860_v9 = vmax.f32 %v1587_v57, %v1729_v41 }
 0x1f3   :  { %v2090_v63 = vpack.c.bf16 %v2033_v56, %v2033_v56  ;;  %v1802_v0 = vmax.f32 %v1299_v60, %v1442_v45 }
 0x1f5   :  { %2148 = vst.msk [vmem:[%s3676_s3 + $0xb0] sm:$0xf] %vm2103_vm3, %v2090_v63  ;;  %v1916_v1 = vmax.f32 %v1802_v0, %v1859_v62 }
 0x1f7   :  { %v1977_v3 = vadd.f32 %v3524_v27, %v1916_v1 }
 0x1f9   :  { %v2034_v4 = vmax.f32 %v1977_v3, 0.0  ;;  %v1589_v5 = vpop.f32.mrf.mxu2  ;;  %v1734_v6 = vpop.f32.mrf.mxu3 }
 0x1fa   :  { %v1302_v7 = vpop.f32.mrf.mxu0  ;;  %v1447_v8 = vpop.f32.mrf.mxu1  ;;  %v1861_v19 = vmax.f32 %v1589_v5, %v1732_v58 }
 0x1fb   :  { %v2091_v10 = vpack.c.bf16 %v2034_v4, %v2034_v4  ;;  %v1803_v11 = vmax.f32 %v1302_v7, %v1444_v61 }
 0x1fd   :  { %2149 = vst.msk [vmem:[%s3676_s3 + $0xb4] sm:$0xf] %vm2103_vm3, %v2091_v10  ;;  %v1917_v12 = vmax.f32 %v1803_v11, %v1860_v9 }
 0x1ff   :  { %v1978_v13 = vadd.f32 %v3524_v27, %v1917_v12 }
 0x201   :  { %v2035_v14 = vmax.f32 %v1978_v13, 0.0  ;;  %v1592_v15 = vpop.f32.mrf.mxu2  ;;  %v1737_v16 = vpop.f32.mrf.mxu3 }
 0x202   :  { %v1304_v17 = vpop.f32.mrf.mxu0  ;;  %v1449_v18 = vpop.f32.mrf.mxu1  ;;  %v1862_v28 = vmax.f32 %v1592_v15, %v1734_v6 }
 0x203   :  { %v2092_v20 = vpack.c.bf16 %v2035_v14, %v2035_v14  ;;  %v1804_v21 = vmax.f32 %v1304_v17, %v1447_v8 }
 0x205   :  { %2150 = vst.msk [vmem:[%s3676_s3 + $0xb8] sm:$0xf] %vm2103_vm3, %v2092_v20  ;;  %v1918_v22 = vmax.f32 %v1804_v21, %v1861_v19 }
 0x207   :  { %v1979_v23 = vadd.f32 %v3524_v27, %v1918_v22 }
 0x209   :  { %v2036_v24 = vmax.f32 %v1979_v23, 0.0  ;;  %v1594_v25 = vpop.f32.mrf.mxu2  ;;  %v1739_v31 = vpop.f32.mrf.mxu3 }
 0x20a   :  { %v1307_v26 = vpop.f32.mrf.mxu0  ;;  %v1452_v2 = vpop.f32.mrf.mxu1  ;;  %v1863_v38 = vmax.f32 %v1594_v25, %v1737_v16 }
 0x20b   :  { %v2093_v29 = vpack.c.bf16 %v2036_v24, %v2036_v24  ;;  %v1805_v30 = vmax.f32 %v1307_v26, %v1449_v18 }
 0x20d   :  { %2151 = vst.msk [vmem:[%s3676_s3 + $0xbc] sm:$0xf] %vm2103_vm3, %v2093_v29  ;;  %v1919_v32 = vmax.f32 %v1805_v30, %v1862_v28 }
 0x20f   :  { %v1980_v33 = vadd.f32 %v3524_v27, %v1919_v32 }
 0x211   :  { %v2037_v34 = vmax.f32 %v1980_v33, 0.0  ;;  %v1597_v35 = vpop.f32.mrf.mxu2  ;;  %v1742_v44 = vpop.f32.mrf.mxu3 }
 0x212   :  { %v1309_v36 = vpop.f32.mrf.mxu0  ;;  %v1454_v37 = vpop.f32.mrf.mxu1  ;;  %v1864_v54 = vmax.f32 %v1597_v35, %v1739_v31 }
 0x213   :  { %v2094_v39 = vpack.c.bf16 %v2037_v34, %v2037_v34  ;;  %v1806_v40 = vmax.f32 %v1309_v36, %v1452_v2 }
 0x215   :  { %2152 = vst.msk [vmem:[%s3676_s3 + $0xc0] sm:$0xf] %vm2103_vm3, %v2094_v39  ;;  %v1920_v41 = vmax.f32 %v1806_v40, %v1863_v38 }
 0x217   :  { %v1981_v45 = vadd.f32 %v3524_v27, %v1920_v41 }
 0x219   :  { %v2038_v47 = vmax.f32 %v1981_v45, 0.0  ;;  %v1599_v51 = vpop.f32.mrf.mxu2  ;;  %v1744_v61 = vpop.f32.mrf.mxu3 }
 0x21a   :  { %v1312_v52 = vpop.f32.mrf.mxu0  ;;  %v1457_v53 = vpop.f32.mrf.mxu1  ;;  %v1865_v3 = vmax.f32 %v1599_v51, %v1742_v44 }
 0x21b   :  { %v2095_v56 = vpack.c.bf16 %v2038_v47, %v2038_v47  ;;  %v1807_v57 = vmax.f32 %v1312_v52, %v1454_v37 }
 0x21d   :  { %2153 = vst.msk [vmem:[%s3676_s3 + $0xc4] sm:$0xf] %vm2103_vm3, %v2095_v56  ;;  %v1921_v58 = vmax.f32 %v1807_v57, %v1864_v54 }
 0x21f   :  { %v1982_v60 = vadd.f32 %v3524_v27, %v1921_v58 }
 0x221   :  { %v2039_v62 = vmax.f32 %v1982_v60, 0.0  ;;  %v1602_v63 = vpop.f32.mrf.mxu2  ;;  %v1747_v10 = vpop.f32.mrf.mxu3 }
 0x222   :  { %v1314_v0 = vpop.f32.mrf.mxu0  ;;  %v1459_v1 = vpop.f32.mrf.mxu1  ;;  %v1866_v13 = vmax.f32 %v1602_v63, %v1744_v61 }
 0x223   :  { %v2096_v4 = vpack.c.bf16 %v2039_v62, %v2039_v62  ;;  %v1808_v5 = vmax.f32 %v1314_v0, %v1457_v53 }
 0x225   :  { %2154 = vst.msk [vmem:[%s3676_s3 + $0xc8] sm:$0xf] %vm2103_vm3, %v2096_v4  ;;  %v1922_v6 = vmax.f32 %v1808_v5, %v1865_v3 }
 0x227   :  { %v1983_v7 = vadd.f32 %v3524_v27, %v1922_v6 }
 0x229   :  { %v2040_v8 = vmax.f32 %v1983_v7, 0.0  ;;  %v1604_v9 = vpop.f32.mrf.mxu2  ;;  %v1749_v25 = vpop.f32.mrf.mxu3 }
 0x22a   :  { %v1317_v11 = vpop.f32.mrf.mxu0  ;;  %v1462_v12 = vpop.f32.mrf.mxu1  ;;  %v1867_v22 = vmax.f32 %v1604_v9, %v1747_v10 }
 0x22b   :  { %v2097_v14 = vpack.c.bf16 %v2040_v8, %v2040_v8  ;;  %v1809_v15 = vmax.f32 %v1317_v11, %v1459_v1 }
 0x22d   :  { %2155 = vst.msk [vmem:[%s3676_s3 + $0xcc] sm:$0xf] %vm2103_vm3, %v2097_v14  ;;  %v1923_v16 = vmax.f32 %v1809_v15, %v1866_v13 }
 0x22f   :  { %v1984_v17 = vadd.f32 %v3524_v27, %v1923_v16 }
 0x231   :  { %v2041_v18 = vmax.f32 %v1984_v17, 0.0  ;;  %v1607_v19 = vpop.f32.mrf.mxu2  ;;  %v1752_v36 = vpop.f32.mrf.mxu3 }
 0x232   :  { %v1319_v20 = vpop.f32.mrf.mxu0  ;;  %v1464_v21 = vpop.f32.mrf.mxu1  ;;  %v1868_v32 = vmax.f32 %v1607_v19, %v1749_v25 }
 0x233   :  { %v2098_v23 = vpack.c.bf16 %v2041_v18, %v2041_v18  ;;  %v1810_v24 = vmax.f32 %v1319_v20, %v1462_v12 }
 0x235   :  { %2156 = vst.msk [vmem:[%s3676_s3 + $0xd0] sm:$0xf] %vm2103_vm3, %v2098_v23  ;;  %v1924_v26 = vmax.f32 %v1810_v24, %v1867_v22 }
 0x237   :  { %v1985_v2 = vadd.f32 %v3524_v27, %v1924_v26 }
 0x239   :  { %v2042_v28 = vmax.f32 %v1985_v2, 0.0  ;;  %v1609_v29 = vpop.f32.mrf.mxu2  ;;  %v1754_v53 = vpop.f32.mrf.mxu3 }
 0x23a   :  { %v1322_v30 = vpop.f32.mrf.mxu0  ;;  %v1467_v31 = vpop.f32.mrf.mxu1  ;;  %v1869_v44 = vmax.f32 %v1609_v29, %v1752_v36 }
 0x23b   :  { %v2099_v33 = vpack.c.bf16 %v2042_v28, %v2042_v28  ;;  %v1811_v34 = vmax.f32 %v1322_v30, %v1464_v21 }
 0x23d   :  { %2157 = vst.msk [vmem:[%s3676_s3 + $0xd4] sm:$0xf] %vm2103_vm3, %v2099_v33  ;;  %v1925_v35 = vmax.f32 %v1811_v34, %v1868_v32 }
 0x23f   :  { %v1986_v37 = vadd.f32 %v3524_v27, %v1925_v35 }
 0x241   :  { %v2043_v38 = vmax.f32 %v1986_v37, 0.0  ;;  %v1612_v39 = vpop.f32.mrf.mxu2 }
 0x242   :  { %v1324_v40 = vpop.f32.mrf.mxu0  ;;  %v1469_v41 = vpop.f32.mrf.mxu1  ;;  %v1870_v60 = vmax.f32 %v1612_v39, %v1754_v53 }
 0x243   :  { %v2100_v45 = vpack.c.bf16 %v2043_v38, %v2043_v38  ;;  %v1812_v47 = vmax.f32 %v1324_v40, %v1467_v31 }
 0x245   :  { %2158 = vst.msk [vmem:[%s3676_s3 + $0xd8] sm:$0xf] %vm2103_vm3, %v2100_v45  ;;  %v1926_v51 = vmax.f32 %v1812_v47, %v1869_v44 }
 0x247   :  { %v1987_v52 = vadd.f32 %v3524_v27, %v1926_v51 }
 0x249   :  { %v2044_v54 = vmax.f32 %v1987_v52, 0.0  ;;  %v1614_v56 = vpop.f32.mrf.mxu2 }
 0x24a   :  { %v1327_v57 = vpop.f32.mrf.mxu0  ;;  %v1472_v58 = vpop.f32.mrf.mxu1 }
 0x24b   :  { %v2101_v61 = vpack.c.bf16 %v2044_v54, %v2044_v54  ;;  %v1813_v62 = vmax.f32 %v1327_v57, %v1469_v41  ;;  %v1814_v7 = vmax.f32 %v1472_v58, %v1614_v56 }
 0x24d   :  { %2159 = vst.msk [vmem:[%s3676_s3 + $0xdc] sm:$0xf] %vm2103_vm3, %v2101_v61  ;;  %v1927_v63 = vmax.f32 %v1813_v62, %v1870_v60 }
 0x24f   :  { %v1988_v0 = vadd.f32 %v3524_v27, %v1927_v63 }
 0x251   :  { %v2045_v1 = vmax.f32 %v1988_v0, 0.0  ;;  %v1617_v3 = vpop.f32.mrf.mxu2 }
 0x252   :  { %v1329_v4 = vpop.f32.mrf.mxu0  ;;  %v1474_v5 = vpop.f32.mrf.mxu1 }
 0x253   :  { %v2102_v6 = vpack.c.bf16 %v2045_v1, %v2045_v1  ;;  %v1757_v8 = vmax.f32 %v3032_v42, %v1329_v4  ;;  %v1815_v9 = vmax.f32 %v1474_v5, %v1617_v3 }
 0x255   :  { %2160 = vst.msk [vmem:[%s3676_s3 + $0xe0] sm:$0xf] %vm2103_vm3, %v2102_v6  ;;  %v1871_v10 = vmax.f32 %v1757_v8, %v1814_v7  ;;  %v1872_v11 = vmax.f32 %v1758_v50, %v1815_v9 }
 0x257   :  { %v1932_v12 = vadd.f32 %v3524_v27, %v1871_v10  ;;  %v1933_v13 = vadd.f32 %v3524_v27, %v1872_v11 }
 0x259   :  { %v1989_v14 = vmax.f32 %v1932_v12, 0.0  ;;  %v1990_v15 = vmax.f32 %v1933_v13, 0.0  ;;  %v1619_v16 = vpop.f32.mrf.mxu2 }
 0x25a   :  { %v1816_v42 = vmax.f32 %v3046_v46, %v1619_v16 }
 0x25b   :  { %v2046_v17 = vpack.c.bf16 %v1989_v14, %v1989_v14  ;;  %v2047_v18 = vpack.c.bf16 %v1990_v15, %v1990_v15 }
 0x25c   :  { %v1873_v19 = vmax.f32 %v1759_v59, %v1816_v42 }
 0x25d   :  { %2104 = vst.msk [vmem:[%s3676_s3] sm:$0xf] %vm2103_vm3, %v2046_v17 }
 0x25e   :  { %2105 = vst.msk [vmem:[%s3676_s3 + $0x4] sm:$0xf] %vm2103_vm3, %v2047_v18  ;;  %v1934_v43 = vadd.f32 %v3524_v27, %v1873_v19 }
 0x260   :  { %v1991_v48 = vmax.f32 %v1934_v43, 0.0 }
 0x262   :  { %v2048_v46 = vpack.c.bf16 %v1991_v48, %v1991_v48 }
 0x264   :  { %2106 = vst.msk [vmem:[%s3676_s3 + $0x8] sm:$0xf] %vm2103_vm3, %v2048_v46 }

// kernel: mycnn_forward.3
= control target key start
LH: loop header
LB: loop body
LE: loop exit
PB: predicated region body
PF: predicated region fallthrough
CT: control target
= control target key end

     0   :  { %vm323_vm0 = vcmask 261120   ;;  %vm716_vm1 = vcmask 523264   ;;  %s5384_s1 = inlined_call_operand.vmem [shape: bf16[288,64], index: 1, kind: input, shape index: {}]   ;;  %s5385_s0 = inlined_call_operand.vmem [shape: bf16[16,8,288], index: 0, kind: input, shape index: {}]   ;;  %s5386_s2 = inlined_call_operand.vmem [shape: f32[1,64], index: 2, kind: input, shape index: {}]   ;;  %s5387_s3 = inlined_call_operand.vmem [shape: bf16[4,64,1024], index: 3, kind: input, shape index: {}]   ;;  %s5388_s5 = inlined_call_operand.vmem [shape: bf16[1024,128], index: 5, kind: input, shape index: {}]   ;;  %s5389_s4 = inlined_call_operand.vmem [shape: f32[1,1024], index: 4, kind: input, shape index: {}]   ;;  %s5390_s6 = inlined_call_operand.vmem [shape: f32[1,128], index: 6, kind: input, shape index: {}]   ;;  %s5391_s7 = inlined_call_operand.vmem [shape: f32[8,128], index: 7, kind: output, shape index: {}]  }
   0x1   :  { %v3689_v0 = vld [vmem:[%s5384_s1 + $0x38] sm:$0xff]  ;;  %v3688_v2 = vld [vmem:[%s5384_s1 + $0x30] sm:$0xff]  ;;  %v3699_v4 = vld [vmem:[%s5384_s1 + $0x88] sm:$0xff] }
   0x2   :  { %v3697_v1 = vld [vmem:[%s5384_s1 + $0x78] sm:$0xff]  ;;  %348 = vmatpush.bf16.msra.mxu0 %v3689_v0  ;;  %v3696_v3 = vld [vmem:[%s5384_s1 + $0x70] sm:$0xff]  ;;  %452 = vmatpush.bf16.msra.mxu2 %v3699_v4  ;;  %v3698_v5 = vld [vmem:[%s5384_s1 + $0x80] sm:$0xff] }
   0x3   :  { %397 = vmatpush.bf16.msra.mxu1 %v3697_v1  ;;  %v2587_v6 = vld [vmem:[%s5385_s0 + $0x8] sm:$0xf]  ;;  %v3660_v7 = vld [vmem:[%s5385_s0 + $0x10] sm:$0xf0]  ;;  %v3686_v11 = vld [vmem:[%s5384_s1 + $0x20] sm:$0xff] }
   0x4   :  { %v3687_v8 = vld [vmem:[%s5384_s1 + $0x28] sm:$0xff]  ;;  %v2588_v10 = vor.u32 %v3660_v7, %v2587_v6  ;;  %v3694_v12 = vld [vmem:[%s5384_s1 + $0x60] sm:$0xff]  ;;  %v3685_v13 = vld [vmem:[%s5384_s1 + $0x18] sm:$0xff] }
   0x5   :  { %v3695_v9 = vld [vmem:[%s5384_s1 + $0x68] sm:$0xff]  ;;  %v3693_v14 = vld [vmem:[%s5384_s1 + $0x58] sm:$0xff]  ;;  %v3684_v15 = vld [vmem:[%s5384_s1 + $0x10] sm:$0xff] }
   0x6   :  { %349 = vmatpush.bf16.msra.mxu0 %v3688_v2  ;;  %453 = vmatpush.bf16.msra.mxu2 %v3698_v5  ;;  %v3692_v16 = vld [vmem:[%s5384_s1 + $0x50] sm:$0xff]  ;;  %v2599_v17 = vld [vmem:[%s5385_s0 + $0x20] sm:$0xf]  ;;  %v3663_v18 = vld [vmem:[%s5385_s0 + $0x28] sm:$0xf0] }
   0x7   :  { %398 = vmatpush.bf16.msra.mxu1 %v3696_v3  ;;  %v3683_v19 = vld [vmem:[%s5384_s1 + $0x8] sm:$0xff]  ;;  %v2600_v21 = vor.u32 %v3663_v18, %v2599_v17  ;;  %v3682_v22 = vld [vmem:[%s5384_s1] sm:$0xff]  ;;  %v2581_v27 = vld [vmem:[%s5385_s0 + $0xc] sm:$0xf0] }
   0x8   :  { %v3691_v20 = vld [vmem:[%s5384_s1 + $0x48] sm:$0xff]  ;;  %v3690_v23 = vld [vmem:[%s5384_s1 + $0x40] sm:$0xff]  ;;  %v2611_v30 = vld [vmem:[%s5385_s0 + $0x38] sm:$0xf] }
   0x9   :  { %2745 = vmatmul.msk.bf16.vlgmr.msra.gmra.mxu2 %vm323_vm0, %v2588_v10  ;;  %v2579_v24 = vld [vmem:[%s5385_s0] sm:$0xf]  ;;  %v3659_v25 = vld [vmem:[%s5385_s0 + $0x8] sm:$0xf0]  ;;  %v3658_v26 = vld [vmem:[%s5385_s0 + $0x4] sm:$0xf] }
   0xa   :  { %350 = vmatpush.bf16.msra.mxu0 %v3687_v8  ;;  %v2580_v28 = vor.u32 %v3659_v25, %v2579_v24  ;;  %v2584_v29 = vor.u32 %v3658_v26, %v2581_v27  ;;  %v3666_v31 = vld [vmem:[%s5385_s0 + $0x40] sm:$0xf0]  ;;  %v2591_v33 = vld [vmem:[%s5385_s0 + $0x18] sm:$0xf]  ;;  %v3661_v35 = vld [vmem:[%s5385_s0 + $0x1c] sm:$0xf] }
   0xb   :  { %399 = vmatpush.bf16.msra.mxu1 %v3695_v9  ;;  %v2612_v32 = vor.u32 %v3666_v31, %v2611_v30  ;;  %v3662_v34 = vld [vmem:[%s5385_s0 + $0x20] sm:$0xf0]  ;;  %v2593_v36 = vld [vmem:[%s5385_s0 + $0x24] sm:$0xf0]  ;;  %v2623_v39 = vld [vmem:[%s5385_s0 + $0x50] sm:$0xf] }
   0xc   :  { %v2592_v37 = vor.u32 %v3662_v34, %v2591_v33  ;;  %v2596_v38 = vor.u32 %v3661_v35, %v2593_v36  ;;  %v3669_v40 = vld [vmem:[%s5385_s0 + $0x58] sm:$0xf0]  ;;  %v2603_v42 = vld [vmem:[%s5385_s0 + $0x30] sm:$0xf]  ;;  %v3664_v44 = vld [vmem:[%s5385_s0 + $0x34] sm:$0xf] }
   0xd   :  { %v2624_v41 = vor.u32 %v3669_v40, %v2623_v39  ;;  %v3665_v43 = vld [vmem:[%s5385_s0 + $0x38] sm:$0xf0]  ;;  %v2605_v45 = vld [vmem:[%s5385_s0 + $0x3c] sm:$0xf0]  ;;  %v2635_v48 = vld [vmem:[%s5385_s0 + $0x68] sm:$0xf] }
   0xe   :  { %351 = vmatpush.bf16.msra.mxu0 %v3686_v11  ;;  %v2604_v46 = vor.u32 %v3665_v43, %v2603_v42  ;;  %v2608_v47 = vor.u32 %v3664_v44, %v2605_v45  ;;  %v3672_v49 = vld [vmem:[%s5385_s0 + $0x70] sm:$0xf0]  ;;  %v2615_v51 = vld [vmem:[%s5385_s0 + $0x48] sm:$0xf]  ;;  %v3667_v53 = vld [vmem:[%s5385_s0 + $0x4c] sm:$0xf] }
   0xf   :  { %400 = vmatpush.bf16.msra.mxu1 %v3694_v12  ;;  %v2636_v50 = vor.u32 %v3672_v49, %v2635_v48  ;;  %v3668_v52 = vld [vmem:[%s5385_s0 + $0x50] sm:$0xf0]  ;;  %v2617_v54 = vld [vmem:[%s5385_s0 + $0x54] sm:$0xf0]  ;;  %v2647_v57 = vld [vmem:[%s5385_s0 + $0x80] sm:$0xf] }
  0x10   :  { %v2616_v55 = vor.u32 %v3668_v52, %v2615_v51  ;;  %v2620_v56 = vor.u32 %v3667_v53, %v2617_v54  ;;  %v3675_v58 = vld [vmem:[%s5385_s0 + $0x88] sm:$0xf0]  ;;  %v2627_v60 = vld [vmem:[%s5385_s0 + $0x60] sm:$0xf]  ;;  %v3670_v62 = vld [vmem:[%s5385_s0 + $0x64] sm:$0xf] }
  0x11   :  { %v2648_v59 = vor.u32 %v3675_v58, %v2647_v57  ;;  %v3671_v61 = vld [vmem:[%s5385_s0 + $0x68] sm:$0xf0]  ;;  %v2629_v63 = vld [vmem:[%s5385_s0 + $0x6c] sm:$0xf0]  ;;  %v2659_v2 = vld [vmem:[%s5385_s0 + $0x98] sm:$0xf] }
  0x12   :  { %352 = vmatpush.bf16.msra.mxu0 %v3685_v13  ;;  %v2628_v0 = vor.u32 %v3671_v61, %v2627_v60  ;;  %v2632_v1 = vor.u32 %v3670_v62, %v2629_v63  ;;  %v3678_v3 = vld [vmem:[%s5385_s0 + $0xa0] sm:$0xf0]  ;;  %v2639_v5 = vld [vmem:[%s5385_s0 + $0x78] sm:$0xf]  ;;  %v3673_v7 = vld [vmem:[%s5385_s0 + $0x7c] sm:$0xf] }
  0x13   :  { %401 = vmatpush.bf16.msra.mxu1 %v3693_v14  ;;  %v2660_v4 = vor.u32 %v3678_v3, %v2659_v2  ;;  %v3674_v6 = vld [vmem:[%s5385_s0 + $0x80] sm:$0xf0]  ;;  %v2641_v8 = vld [vmem:[%s5385_s0 + $0x84] sm:$0xf0]  ;;  %v2671_v11 = vld [vmem:[%s5385_s0 + $0xb0] sm:$0xf] }
  0x14   :  { %v2640_v9 = vor.u32 %v3674_v6, %v2639_v5  ;;  %v2644_v10 = vor.u32 %v3673_v7, %v2641_v8  ;;  %v3681_v12 = vld [vmem:[%s5385_s0 + $0xb8] sm:$0xf0]  ;;  %v2651_v14 = vld [vmem:[%s5385_s0 + $0x90] sm:$0xf]  ;;  %v2653_v17 = vld [vmem:[%s5385_s0 + $0x9c] sm:$0xf0] }
  0x15   :  { %v2672_v13 = vor.u32 %v3681_v12, %v2671_v11  ;;  %v2851_v62 = vld [vmem:[%s5387_s3 + $0xc0] sm:$0xf]  ;;  %v3757_v11 = vld [vmem:[%s5387_s3 + $0x1cc] sm:$0xf] }
  0x16   :  { %353 = vmatpush.bf16.msra.mxu0 %v3684_v15  ;;  %v3677_v15 = vld [vmem:[%s5385_s0 + $0x98] sm:$0xf0]  ;;  %v3728_v63 = vld [vmem:[%s5387_s3 + $0xdc] sm:$0xf0]  ;;  %v3029_v12 = vld [vmem:[%s5387_s3 + $0x1e8] sm:$0xf0] }
  0x17   :  { %402 = vmatpush.bf16.msra.mxu1 %v3692_v16  ;;  %v3676_v16 = vld [vmem:[%s5385_s0 + $0x94] sm:$0xf]  ;;  %v2652_v18 = vor.u32 %v3677_v15, %v2651_v14  ;;  %v2819_v3 = vld [vmem:[%s5387_s3 + $0x80] sm:$0xf]  ;;  %v3032_v15 = vor.u32 %v3757_v11, %v3029_v12  ;;  %v3733_v11 = vld [vmem:[%s5387_s3 + $0x10c] sm:$0xf] }
  0x18   :  { %v3019_v6 = vld [vmem:[%s5387_s3 + $0x1c0] sm:$0xf]  ;;  %v2933_v12 = vld [vmem:[%s5387_s3 + $0x128] sm:$0xf0] }
  0x19   :  { %2746 = vmatmul.msk.bf16.gmra.mxu2 %vm323_vm0, %v2600_v21  ;;  %v3680_v21 = vld [vmem:[%s5385_s0 + $0xb0] sm:$0xf0]  ;;  %v3760_v7 = vld [vmem:[%s5387_s3 + $0x1dc] sm:$0xf0] }
  0x1a   :  { %354 = vmatpush.bf16.msra.mxu0 %v3683_v19  ;;  %v2656_v19 = vor.u32 %v3676_v16, %v2653_v17  ;;  %v2787_v8 = vld [vmem:[%s5387_s3 + $0x40] sm:$0xf]  ;;  %v3035_v16 = vld [vmem:[%s5387_s3 + $0x1d0] sm:$0xf] }
  0x1b   :  { %403 = vmatpush.bf16.msra.mxu1 %v3691_v20  ;;  %v2663_v20 = vld [vmem:[%s5385_s0 + $0xa8] sm:$0xf]  ;;  %v3762_v17 = vld [vmem:[%s5387_s3 + $0x1ec] sm:$0xf0] }
  0x1c   :  { %v2664_v24 = vor.u32 %v3680_v21, %v2663_v20  ;;  %v3036_v20 = vor.u32 %v3762_v17, %v3035_v16  ;;  %v2755_v21 = vld [vmem:[%s5387_s3] sm:$0xf]  ;;  %v2939_v16 = vld [vmem:[%s5387_s3 + $0x110] sm:$0xf] }
  0x1d   :  { %v3738_v17 = vld [vmem:[%s5387_s3 + $0x12c] sm:$0xf0] }
  0x1e   :  { %355 = vmatpush.bf16.msra.mxu0 %v3682_v22  ;;  %v3679_v22 = vld [vmem:[%s5385_s0 + $0xac] sm:$0xf] }
  0x1f   :  { %404 = vmatpush.bf16.msra.mxu1 %v3690_v23  ;;  %v2665_v23 = vld [vmem:[%s5385_s0 + $0xb4] sm:$0xf0] }
  0x20   :  { %v2668_v25 = vor.u32 %v3679_v22, %v2665_v23  ;;  %v3704_v22 = vld [vmem:[%s5387_s3 + $0x1c] sm:$0xf0] }
  0x21   :  { %356 = vmatmul.bf16.vlgmr.msra.gmra.mxu0 %v2580_v28  ;;  %v2987_v23 = vld [vmem:[%s5387_s3 + $0x180] sm:$0xf] }
  0x22   :  { %405 = vmatmul.bf16.vlgmr.msra.gmra.mxu1 %v2584_v29  ;;  %1088 = vmatpush.bf16.msrb.mxu0 %v3032_v15  ;;  %v2936_v15 = vor.u32 %v3733_v11, %v2933_v12  ;;  %v3745_v12 = vld [vmem:[%s5387_s3 + $0x164] sm:$0xf0] }
  0x23   :  { %1101 = vmatpush.bf16.msrb.mxu1 %v3036_v20  ;;  %v2940_v20 = vor.u32 %v3738_v17, %v2939_v16 }
  0x29   :  { %2747 = vmatmul.msk.bf16.gmra.mxu2 %vm323_vm0, %v2612_v32 }
  0x31   :  { %361 = vmatmul.bf16.gmra.mxu0 %v2592_v37 }
  0x32   :  { %410 = vmatmul.bf16.gmra.mxu1 %v2596_v38 }
  0x39   :  { %2748 = vmatmul.msk.bf16.gmra.mxu2 %vm323_vm0, %v2624_v41 }
  0x41   :  { %366 = vmatmul.bf16.gmra.mxu0 %v2604_v46 }
  0x42   :  { %415 = vmatmul.bf16.gmra.mxu1 %v2608_v47 }
  0x49   :  { %2749 = vmatmul.msk.bf16.gmra.mxu2 %vm323_vm0, %v2636_v50 }
  0x51   :  { %371 = vmatmul.bf16.gmra.mxu0 %v2616_v55 }
  0x52   :  { %420 = vmatmul.bf16.gmra.mxu1 %v2620_v56 }
  0x59   :  { %2750 = vmatmul.msk.bf16.gmra.mxu2 %vm323_vm0, %v2648_v59 }
  0x61   :  { %376 = vmatmul.bf16.gmra.mxu0 %v2628_v0  ;;  %v2852_v0 = vor.u32 %v3728_v63, %v2851_v62  ;;  %v3746_v62 = vld [vmem:[%s5387_s3 + $0x16c] sm:$0xf0] }
  0x62   :  { %425 = vmatmul.bf16.gmra.mxu1 %v2632_v1 }
  0x63   :  { %724 = vmatpush.bf16.msra.mxu3 %v2852_v0 }
  0x69   :  { %2751 = vmatmul.msk.bf16.gmra.mxu2 %vm323_vm0, %v2660_v4  ;;  %v3720_v4 = vld [vmem:[%s5387_s3 + $0x9c] sm:$0xf0] }
  0x6a   :  { %v2820_v5 = vor.u32 %v3720_v4, %v2819_v3 }
  0x6c   :  { %725 = vmatpush.bf16.msra.mxu3 %v2820_v5 }
  0x71   :  { %381 = vmatmul.bf16.gmra.mxu0 %v2640_v9  ;;  %v3020_v9 = vor.u32 %v3760_v7, %v3019_v6  ;;  %v3716_v6 = vld [vmem:[%s5387_s3 + $0x84] sm:$0xf] }
  0x72   :  { %430 = vmatmul.bf16.gmra.mxu1 %v2644_v10  ;;  %v3712_v10 = vld [vmem:[%s5387_s3 + $0x5c] sm:$0xf0]  ;;  %v2821_v7 = vld [vmem:[%s5387_s3 + $0xa0] sm:$0xf0] }
  0x73   :  { %v2788_v14 = vor.u32 %v3712_v10, %v2787_v8  ;;  %1049 = vmatpush.bf16.msrb.mxu2 %v3020_v9  ;;  %v2923_v8 = vld [vmem:[%s5387_s3 + $0x100] sm:$0xf]  ;;  %v2824_v9 = vor.u32 %v3716_v6, %v2821_v7 }
  0x74   :  { %v3736_v10 = vld [vmem:[%s5387_s3 + $0x11c] sm:$0xf0] }
  0x75   :  { %726 = vmatpush.bf16.msra.mxu3 %v2788_v14  ;;  %v2924_v14 = vor.u32 %v3736_v10, %v2923_v8  ;;  %v3784_v8 = vld [vmem:[%s5387_s3 + $0x29c] sm:$0xf0]  ;;  %v2963_v10 = vld [vmem:[%s5387_s3 + $0x148] sm:$0xf] }
  0x79   :  { %2752 = vmatmul.msk.bf16.gmra.mxu2 %vm323_vm0, %v2672_v13 }
  0x81   :  { %386 = vmatmul.bf16.gmra.mxu0 %v2652_v18 }
  0x82   :  { %435 = vmatmul.bf16.gmra.mxu1 %v2656_v19 }
  0x8c   :  { %v455_v26 = vpop.f32.mrf.mxu2 }
  0x91   :  { %391 = vmatmul.bf16.gmra.mxu0 %v2664_v24  ;;  %v2756_v24 = vor.u32 %v3704_v22, %v2755_v21  ;;  %v3708_v21 = vld [vmem:[%s5387_s3 + $0x44] sm:$0xf] }
  0x92   :  { %440 = vmatmul.bf16.gmra.mxu1 %v2668_v25  ;;  %v3752_v25 = vld [vmem:[%s5387_s3 + $0x19c] sm:$0xf0]  ;;  %v2789_v22 = vld [vmem:[%s5387_s3 + $0x60] sm:$0xf0] }
  0x93   :  { %727 = vmatpush.bf16.msra.mxu3 %v2756_v24  ;;  %v3027_v24 = vld [vmem:[%s5387_s3 + $0x1c8] sm:$0xf] }
  0x94   :  { %v4176_v27 = vpop.f32.mrf.mxu2 }
  0x9c   :  { %v460_v31 = vpop.f32.mrf.mxu2 }
  0x9e   :  { %v357_v28 = vpop.f32.mrf.mxu0 }
  0x9f   :  { %v406_v29 = vpop.f32.mrf.mxu1 }
  0xa0   :  { %v407_v30 = vadd.f32 %v406_v29, %v357_v28  ;;  %v2997_v28 = vld [vmem:[%s5387_s3 + $0x1a8] sm:$0xf0]  ;;  %v2988_v29 = vor.u32 %v3752_v25, %v2987_v23  ;;  %v2792_v23 = vor.u32 %v3708_v21, %v2789_v22  ;;  %v3761_v25 = vld [vmem:[%s5387_s3 + $0x1e4] sm:$0xf0] }
  0xa2   :  { %v4178_v32 = vadd.f32 %v455_v26, %v407_v30  ;;  %v3749_v26 = vld [vmem:[%s5387_s3 + $0x18c] sm:$0xf]  ;;  %1050 = vmatpush.bf16.msrb.mxu2 %v2988_v29  ;;  %v3045_v29 = vld [vmem:[%s5387_s3 + $0x1f8] sm:$0xf0] }
  0xa3   :  { %v3000_v30 = vor.u32 %v3749_v26, %v2997_v28  ;;  %v3759_v26 = vld [vmem:[%s5387_s3 + $0x1dc] sm:$0xf]  ;;  %v3028_v28 = vor.u32 %v3761_v25, %v3027_v24  ;;  %v2931_v24 = vld [vmem:[%s5387_s3 + $0x108] sm:$0xf] }
  0xa4   :  { %v4184_v35 = vpop.f32.mrf.mxu2 }
  0xa5   :  { %1089 = vmatpush.bf16.msrb.mxu0 %v3000_v30  ;;  %v3187_v30 = vld [vmem:[%s5387_s3 + $0x2c0] sm:$0xf] }
  0xa6   :  { %v4180_v33 = vpop.f32.mrf.mxu0 }
  0xa7   :  { %v4182_v34 = vpop.f32.mrf.mxu1 }
  0xac   :  { %v465_v39 = vpop.f32.mrf.mxu2 }
  0xae   :  { %v362_v36 = vpop.f32.mrf.mxu0 }
  0xaf   :  { %v411_v37 = vpop.f32.mrf.mxu1 }
  0xb0   :  { %v412_v38 = vadd.f32 %v411_v37, %v362_v36  ;;  %v3754_v36 = vld [vmem:[%s5387_s3 + $0x1ac] sm:$0xf0] }
  0xb2   :  { %v4186_v40 = vadd.f32 %v460_v31, %v412_v38  ;;  %v3003_v31 = vld [vmem:[%s5387_s3 + $0x190] sm:$0xf]  ;;  %v3724_v38 = vld [vmem:[%s5387_s3 + $0xc4] sm:$0xf] }
  0xb3   :  { %v3004_v37 = vor.u32 %v3754_v36, %v3003_v31  ;;  %v3792_v31 = vld [vmem:[%s5387_s3 + $0x2dc] sm:$0xf0] }
  0xb4   :  { %v4192_v43 = vpop.f32.mrf.mxu2 }
  0xb5   :  { %1102 = vmatpush.bf16.msrb.mxu1 %v3004_v37 }
  0xb6   :  { %v4188_v41 = vpop.f32.mrf.mxu0 }
  0xb7   :  { %v4190_v42 = vpop.f32.mrf.mxu1 }
  0xbc   :  { %v470_v47 = vpop.f32.mrf.mxu2 }
  0xbe   :  { %v367_v44 = vpop.f32.mrf.mxu0 }
  0xbf   :  { %v416_v45 = vpop.f32.mrf.mxu1 }
  0xc0   :  { %v417_v46 = vadd.f32 %v416_v45, %v367_v44  ;;  %v2955_v44 = vld [vmem:[%s5387_s3 + $0x140] sm:$0xf] }
  0xc2   :  { %v4194_v48 = vadd.f32 %v465_v39, %v417_v46  ;;  %v2853_v39 = vld [vmem:[%s5387_s3 + $0xe0] sm:$0xf0]  ;;  %v3744_v46 = vld [vmem:[%s5387_s3 + $0x15c] sm:$0xf0] }
  0xc3   :  { %v2856_v45 = vor.u32 %v3724_v38, %v2853_v39  ;;  %v3048_v38 = vor.u32 %v3759_v26, %v3045_v29  ;;  %v3188_v39 = vor.u32 %v3792_v31, %v3187_v30  ;;  %v3735_v29 = vld [vmem:[%s5387_s3 + $0x11c] sm:$0xf] }
  0xc4   :  { %v495_v49 = vmax.f32 %v4178_v32, %v4194_v48  ;;  %v4202_v52 = vpop.f32.mrf.mxu2  ;;  %v2949_v30 = vld [vmem:[%s5387_s3 + $0x138] sm:$0xf0] }
  0xc5   :  { %737 = vmatpush.bf16.msrb.mxu3 %v2856_v45  ;;  %v3700_v45 = vld [vmem:[%s5387_s3 + $0x4] sm:$0xf] }
  0xc6   :  { %v4198_v50 = vpop.f32.mrf.mxu0 }
  0xc7   :  { %v4200_v51 = vpop.f32.mrf.mxu1 }
  0xc9   :  { %738 = vmatpush.bf16.msrb.mxu3 %v2824_v9 }
  0xcc   :  { %v4206_v57 = vpop.f32.mrf.mxu2 }
  0xcd   :  { %739 = vmatpush.bf16.msrb.mxu3 %v2792_v23 }
  0xce   :  { %v372_v53 = vpop.f32.mrf.mxu0 }
  0xcf   :  { %v421_v54 = vpop.f32.mrf.mxu1 }
  0xd0   :  { %v422_v55 = vadd.f32 %v421_v54, %v372_v53  ;;  %v2956_v53 = vor.u32 %v3744_v46, %v2955_v44  ;;  %v2965_v54 = vld [vmem:[%s5387_s3 + $0x168] sm:$0xf0]  ;;  %v2757_v46 = vld [vmem:[%s5387_s3 + $0x20] sm:$0xf0] }
  0xd2   :  { %v4204_v56 = vadd.f32 %v470_v47, %v422_v55  ;;  %v3741_v47 = vld [vmem:[%s5387_s3 + $0x14c] sm:$0xf]  ;;  %v2971_v55 = vld [vmem:[%s5387_s3 + $0x150] sm:$0xf]  ;;  %1051 = vmatpush.bf16.msrb.mxu2 %v2956_v53 }
  0xd3   :  { %v2968_v3 = vor.u32 %v3741_v47, %v2965_v54  ;;  %v2972_v4 = vor.u32 %v3746_v62, %v2971_v55  ;;  %v2995_v47 = vld [vmem:[%s5387_s3 + $0x188] sm:$0xf]  ;;  %v2760_v55 = vor.u32 %v3700_v45, %v2757_v46 }
  0xd4   :  { %v497_v58 = vmax.f32 %v4186_v40, %v4204_v56  ;;  %v4214_v61 = vpop.f32.mrf.mxu2  ;;  %v3753_v62 = vld [vmem:[%s5387_s3 + $0x1a4] sm:$0xf0]  ;;  %v3778_v40 = vld [vmem:[%s5387_s3 + $0x26c] sm:$0xf0] }
  0xd5   :  { %1090 = vmatpush.bf16.msrb.mxu0 %v2968_v3  ;;  %1103 = vmatpush.bf16.msrb.mxu1 %v2972_v4  ;;  %v3751_v3 = vld [vmem:[%s5387_s3 + $0x19c] sm:$0xf]  ;;  %v2996_v6 = vor.u32 %v3753_v62, %v2995_v47  ;;  %v409_v47 = vadd.f32 %v4182_v34, %v4180_v33  ;;  %v3729_v33 = vld [vmem:[%s5387_s3 + $0xe4] sm:$0xf0] }
  0xd6   :  { %v4210_v59 = vpop.f32.mrf.mxu0  ;;  %1052 = vmatpush.bf16.msrb.mxu2 %v2924_v14  ;;  %v3013_v4 = vld [vmem:[%s5387_s3 + $0x1b8] sm:$0xf0]  ;;  %740 = vmatpush.bf16.msrb.mxu3 %v2760_v55 }
  0xd7   :  { %v4212_v60 = vpop.f32.mrf.mxu1  ;;  %v3016_v7 = vor.u32 %v3751_v3, %v3013_v4  ;;  %v3743_v14 = vld [vmem:[%s5387_s3 + $0x15c] sm:$0xf]  ;;  %v458_v34 = vadd.f32 %v4176_v27, %v409_v47 }
  0xd9   :  { %1091 = vmatpush.bf16.msrb.mxu0 %v2936_v15  ;;  %1104 = vmatpush.bf16.msrb.mxu1 %v2940_v20  ;;  %v2981_v15 = vld [vmem:[%s5387_s3 + $0x178] sm:$0xf0]  ;;  %v2964_v20 = vor.u32 %v3745_v12, %v2963_v10 }
  0xda   :  { %1075 = vmatpush.bf16.msra.mxu2 %v3028_v28  ;;  %v2984_v21 = vor.u32 %v3743_v14, %v2981_v15  ;;  %v3737_v28 = vld [vmem:[%s5387_s3 + $0x124] sm:$0xf0] }
  0xdb   :  { %v2932_v31 = vor.u32 %v3737_v28, %v2931_v24  ;;  %v424_v24 = vadd.f32 %v4212_v60, %v4210_v59  ;;  %v3011_v59 = vld [vmem:[%s5387_s3 + $0x198] sm:$0xf]  ;;  %v414_v60 = vadd.f32 %v4190_v42, %v4188_v41  ;;  %v3171_v42 = vld [vmem:[%s5387_s3 + $0x290] sm:$0xf] }
  0xdc   :  { %v4250_v13 = vpop.f32.mrf.mxu2 }
  0xdd   :  { %1140 = vmatpush.bf16.msra.mxu0 %v3048_v38  ;;  %1357 = vmatpush.bf16.msra.mxu1 %v3188_v39  ;;  %v419_v38 = vadd.f32 %v4200_v51, %v4198_v50 }
  0xde   :  { %v4222_v1 = vpop.f32.mrf.mxu0  ;;  %1076 = vmatpush.bf16.msra.mxu2 %v2996_v6  ;;  %v2859_v6 = vld [vmem:[%s5387_s3 + $0xc8] sm:$0xf] }
  0xdf   :  { %v4224_v2 = vpop.f32.mrf.mxu1  ;;  %v468_v62 = vadd.f32 %v4192_v43, %v419_v38  ;;  %v3781_v38 = vld [vmem:[%s5387_s3 + $0x28c] sm:$0xf] }
  0xe0   :  { %v427_v11 = vadd.f32 %v4224_v2, %v4222_v1  ;;  %v3123_v1 = vld [vmem:[%s5387_s3 + $0x240] sm:$0xf] }
  0xe1   :  { %1141 = vmatpush.bf16.msra.mxu0 %v3016_v7  ;;  %v3776_v2 = vld [vmem:[%s5387_s3 + $0x25c] sm:$0xf0]  ;;  %v496_v43 = vmax.f32 %v458_v34, %v468_v62 }
  0xe2   :  { %v3124_v23 = vor.u32 %v3776_v2, %v3123_v1  ;;  %1077 = vmatpush.bf16.msra.mxu2 %v2964_v20  ;;  %v476_v25 = vadd.f32 %v4206_v57, %v427_v11  ;;  %v3091_v57 = vld [vmem:[%s5387_s3 + $0x200] sm:$0xf]  ;;  %v3043_v20 = vld [vmem:[%s5387_s3 + $0x1d8] sm:$0xf] }
  0xe4   :  { %v482_v5 = vpop.f32.mrf.mxu2 }
  0xe5   :  { %1142 = vmatpush.bf16.msra.mxu0 %v2984_v21  ;;  %v3197_v21 = vld [vmem:[%s5387_s3 + $0x2e8] sm:$0xf0] }
  0xe6   :  { %v4258_v18 = vpop.f32.mrf.mxu0  ;;  %1078 = vmatpush.bf16.msra.mxu2 %v2932_v31  ;;  %v2763_v31 = vld [vmem:[%s5387_s3 + $0x8] sm:$0xf] }
  0xe7   :  { %v4260_v19 = vpop.f32.mrf.mxu1 }
  0xec   :  { %v485_v54 = vpop.f32.mrf.mxu2 }
  0xee   :  { %v4310_v63 = vpop.f32.mrf.mxu0 }
  0xef   :  { %v4312_v0 = vpop.f32.mrf.mxu1 }
  0xf4   :  { %v487_v45 = vpop.f32.mrf.mxu2 }
  0xf6   :  { %v384_v36 = vpop.f32.mrf.mxu0 }
  0xf7   :  { %v433_v37 = vpop.f32.mrf.mxu1 }
  0xf8   :  { %v434_v44 = vadd.f32 %v433_v37, %v384_v36  ;;  %v2952_v36 = vor.u32 %v3735_v29, %v2949_v30  ;;  %v3768_v37 = vld [vmem:[%s5387_s3 + $0x21c] sm:$0xf0] }
  0xf9   :  { %v3092_v46 = vor.u32 %v3768_v37, %v3091_v57  ;;  %v3755_v37 = vld [vmem:[%s5387_s3 + $0x1b4] sm:$0xf0] }
  0xfa   :  { %v4371_v53 = vadd.f32 %v482_v5, %v434_v44  ;;  %v3155_v5 = vld [vmem:[%s5387_s3 + $0x280] sm:$0xf]  ;;  %1143 = vmatpush.bf16.msra.mxu0 %v2952_v36  ;;  %v3705_v36 = vld [vmem:[%s5387_s3 + $0x24] sm:$0xf0] }
  0xfb   :  { %v3156_v9 = vor.u32 %v3784_v8, %v3155_v5  ;;  %v4432_v44 = vld [vmem:[%s5386_s2] ss:$0 sm:$0xff]  ;;  %v2827_v8 = vld [vmem:[%s5387_s3 + $0x88] sm:$0xf] }
  0xfc   :  { %v490_v5 = vpop.f32.mrf.mxu2 }
  0xfd   :  { %1358 = vmatpush.bf16.msra.mxu1 %v3156_v9  ;;  %v3721_v9 = vld [vmem:[%s5387_s3 + $0xa4] sm:$0xf0] }
  0xfe   :  { %v387_v16 = vpop.f32.mrf.mxu0  ;;  %v2828_v12 = vor.u32 %v3721_v9, %v2827_v8  ;;  %v3717_v8 = vld [vmem:[%s5387_s3 + $0x8c] sm:$0xf] }
  0xff   :  { %v436_v17 = vpop.f32.mrf.mxu1  ;;  %v2829_v9 = vld [vmem:[%s5387_s3 + $0xa8] sm:$0xf0] }
 0x100   :  { %v437_v22 = vadd.f32 %v436_v17, %v387_v16  ;;  %v2795_v16 = vld [vmem:[%s5387_s3 + $0x48] sm:$0xf] }
 0x101   :  { %1359 = vmatpush.bf16.msra.mxu1 %v3124_v23  ;;  %v3713_v17 = vld [vmem:[%s5387_s3 + $0x64] sm:$0xf0]  ;;  %v3794_v23 = vld [vmem:[%s5387_s3 + $0x2ec] sm:$0xf0] }
 0x102   :  { %v486_v26 = vadd.f32 %v485_v54, %v437_v22  ;;  %v429_v54 = vadd.f32 %v4260_v19, %v4258_v18  ;;  %v2860_v18 = vor.u32 %v3729_v33, %v2859_v6  ;;  %v3203_v22 = vld [vmem:[%s5387_s3 + $0x2d0] sm:$0xf]  ;;  %v463_v6 = vadd.f32 %v4184_v35, %v414_v60  ;;  %v2765_v60 = vld [vmem:[%s5387_s3 + $0x28] sm:$0xf0] }
 0x103   :  { %v3204_v57 = vor.u32 %v3794_v23, %v3203_v22  ;;  %v3139_v35 = vld [vmem:[%s5387_s3 + $0x250] sm:$0xf] }
 0x104   :  { %v499_v39 = vmax.f32 %v476_v25, %v486_v26  ;;  %v478_v32 = vadd.f32 %v4214_v61, %v429_v54  ;;  %v432_v61 = vadd.f32 %v4312_v0, %v4310_v63  ;;  %v3763_v63 = vld [vmem:[%s5387_s3 + $0x1f4] sm:$0xf0]  ;;  %v3789_v0 = vld [vmem:[%s5387_s3 + $0x2cc] sm:$0xf]  ;;  %v2796_v26 = vor.u32 %v3713_v17, %v2795_v16  ;;  %v492_v41 = vpop.f32.mrf.mxu2  ;;  %v3770_v16 = vld [vmem:[%s5387_s3 + $0x22c] sm:$0xf0] }
 0x105   :  { %1360 = vmatpush.bf16.msra.mxu1 %v3092_v46  ;;  %v3044_v29 = vor.u32 %v3763_v63, %v3043_v20  ;;  %v3200_v30 = vor.u32 %v3789_v0, %v3197_v21  ;;  %v473_v46 = vadd.f32 %v4202_v52, %v424_v24  ;;  %v2861_v52 = vld [vmem:[%s5387_s3 + $0xe8] sm:$0xf0]  ;;  %v2832_v17 = vor.u32 %v3717_v8, %v2829_v9  ;;  %v3791_v24 = vld [vmem:[%s5387_s3 + $0x2dc] sm:$0xf] }
 0x106   :  { %v503_v50 = vmax.f32 %v495_v49, %v499_v39  ;;  %v389_v51 = vpop.f32.mrf.mxu0  ;;  %v481_v25 = vadd.f32 %v4250_v13, %v432_v61  ;;  %v3165_v39 = vld [vmem:[%s5387_s3 + $0x2a8] sm:$0xf0] }
 0x107   :  { %v438_v55 = vpop.f32.mrf.mxu1  ;;  %v3168_v62 = vor.u32 %v3781_v38, %v3165_v39  ;;  %v498_v56 = vmax.f32 %v463_v6, %v473_v46  ;;  %v3709_v20 = vld [vmem:[%s5387_s3 + $0x4c] sm:$0xf]  ;;  %v3785_v38 = vld [vmem:[%s5387_s3 + $0x2a4] sm:$0xf0]  ;;  %v3783_v39 = vld [vmem:[%s5387_s3 + $0x29c] sm:$0xf] }
 0x108   :  { %v511_v3 = vadd.f32 %v4432_v44, %v503_v50  ;;  %v439_v4 = vadd.f32 %v438_v55, %v389_v51  ;;  %v2764_v50 = vor.u32 %v3705_v36, %v2763_v31  ;;  %v3012_v55 = vor.u32 %v3755_v37, %v3011_v59  ;;  %v2797_v21 = vld [vmem:[%s5387_s3 + $0x68] sm:$0xf0]  ;;  %v3291_v6 = vld [vmem:[%s5387_s3 + $0x340] sm:$0xf] }
 0x109   :  { %v3701_v59 = vld [vmem:[%s5387_s3 + $0xc] sm:$0xf] }
 0x10a   :  { %v515_v48 = vmax.f32 %v511_v3, 0.0  ;;  %v488_v49 = vadd.f32 %v487_v45, %v439_v4  ;;  %v3786_v45 = vld [vmem:[%s5387_s3 + $0x2ac] sm:$0xf0]  ;;  %v3725_v3 = vld [vmem:[%s5387_s3 + $0xcc] sm:$0xf]  ;;  %v2768_v46 = vor.u32 %v3701_v59, %v2765_v60 }
 0x10b   :  { %v2979_v4 = vld [vmem:[%s5387_s3 + $0x158] sm:$0xf]  ;;  %v3172_v34 = vor.u32 %v3786_v45, %v3171_v42  ;;  %v3323_v42 = vld [vmem:[%s5387_s3 + $0x380] sm:$0xf]  ;;  %v3726_v60 = vld [vmem:[%s5387_s3 + $0xd4] sm:$0xf] }
 0x10c   :  { %v4451_v19 = vpack.c.bf16 %v515_v48, %v515_v48  ;;  %v500_v7 = vmax.f32 %v478_v32, %v488_v49  ;;  %v3747_v32 = vld [vmem:[%s5387_s3 + $0x174] sm:$0xf0]  ;;  %v3773_v48 = vld [vmem:[%s5387_s3 + $0x24c] sm:$0xf]  ;;  %v3816_v45 = vld [vmem:[%s5387_s3 + $0x39c] sm:$0xf0] }
 0x10d   :  { %v3133_v49 = vld [vmem:[%s5387_s3 + $0x268] sm:$0xf0] }
 0x10e   :  { %v504_v27 = vmax.f32 %v496_v43, %v500_v7  ;;  %2881 = vmatmul.msk.bf16.vlgmr.msra.gmra.mxu3 %vm716_vm1, %v4451_v19  ;;  %v392_v10 = vpop.f32.mrf.mxu0  ;;  %v2980_v7 = vor.u32 %v3747_v32, %v2979_v4  ;;  %v3149_v4 = vld [vmem:[%s5387_s3 + $0x278] sm:$0xf0] }
 0x10f   :  { %v441_v11 = vpop.f32.mrf.mxu1  ;;  %750 = vmatpush.bf16.msra.mxu3 %v2860_v18 }
 0x110   :  { %v512_v14 = vadd.f32 %v4432_v44, %v504_v27  ;;  %v442_v15 = vadd.f32 %v441_v11, %v392_v10  ;;  %v2947_v27 = vld [vmem:[%s5387_s3 + $0x118] sm:$0xf]  ;;  %v3765_v11 = vld [vmem:[%s5387_s3 + $0x20c] sm:$0xf] }
 0x111   :  { %v3739_v10 = vld [vmem:[%s5387_s3 + $0x134] sm:$0xf0] }
 0x112   :  { %v516_v1 = vmax.f32 %v512_v14, 0.0  ;;  %v491_v2 = vadd.f32 %v490_v5, %v442_v15  ;;  %v3136_v5 = vor.u32 %v3773_v48, %v3133_v49  ;;  %v3107_v15 = vld [vmem:[%s5387_s3 + $0x210] sm:$0xf]  ;;  %v2948_v63 = vor.u32 %v3739_v10, %v2947_v27  ;;  %v3211_v10 = vld [vmem:[%s5387_s3 + $0x2d8] sm:$0xf] }
 0x113   :  { %751 = vmatpush.bf16.msra.mxu3 %v2828_v12  ;;  %v3101_v12 = vld [vmem:[%s5387_s3 + $0x228] sm:$0xf0]  ;;  %v3108_v23 = vor.u32 %v3770_v16, %v3107_v15  ;;  %v2835_v49 = vld [vmem:[%s5387_s3 + $0x90] sm:$0xf] }
 0x114   :  { %v4491_v28 = vpack.c.bf16 %v516_v1, %v516_v1  ;;  %v501_v13 = vmax.f32 %v481_v25, %v491_v2  ;;  %v3104_v0 = vor.u32 %v3765_v11, %v3101_v12  ;;  %v3195_v1 = vld [vmem:[%s5387_s3 + $0x2c8] sm:$0xf]  ;;  %v3213_v25 = vld [vmem:[%s5387_s3 + $0x2f8] sm:$0xf0]  ;;  %v3795_v12 = vld [vmem:[%s5387_s3 + $0x2f4] sm:$0xf0] }
 0x115   :  { %v3793_v2 = vld [vmem:[%s5387_s3 + $0x2e4] sm:$0xf0]  ;;  %v3216_v36 = vor.u32 %v3791_v24, %v3213_v25  ;;  %v3821_v15 = vld [vmem:[%s5387_s3 + $0x3cc] sm:$0xf]  ;;  %v3787_v24 = vld [vmem:[%s5387_s3 + $0x2b4] sm:$0xf0] }
 0x116   :  { %3049 = vmatmul.msk.bf16.vlgmr.msrb.gmra.mxu2 %vm716_vm1, %v4491_v28  ;;  %3052 = vmatmul.msk.bf16.vlgmr.msrb.gmra.mxu0 %vm716_vm1, %v4491_v28  ;;  %v394_v47 = vpop.f32.mrf.mxu0  ;;  %v505_v33 = vmax.f32 %v497_v58, %v501_v13  ;;  %v2864_v58 = vor.u32 %v3725_v3, %v2861_v52  ;;  %v3196_v31 = vor.u32 %v3793_v2, %v3195_v1  ;;  %v3163_v13 = vld [vmem:[%s5387_s3 + $0x288] sm:$0xf]  ;;  %v3775_v52 = vld [vmem:[%s5387_s3 + $0x25c] sm:$0xf]  ;;  %v3365_v16 = vld [vmem:[%s5387_s3 + $0x3e8] sm:$0xf0] }
 0x117   :  { %3053 = vmatmul.msk.bf16.vlgmr.msrb.gmra.mxu1 %vm716_vm1, %v4491_v28  ;;  %v443_v54 = vpop.f32.mrf.mxu1  ;;  %752 = vmatpush.bf16.msra.mxu3 %v2796_v26  ;;  %v3355_v26 = vld [vmem:[%s5387_s3 + $0x3c0] sm:$0xf]  ;;  %v3777_v3 = vld [vmem:[%s5387_s3 + $0x264] sm:$0xf0]  ;;  %v3152_v48 = vor.u32 %v3775_v52, %v3149_v4  ;;  %v2771_v1 = vld [vmem:[%s5387_s3 + $0x10] sm:$0xf] }
 0x118   :  { %v444_v51 = vadd.f32 %v443_v54, %v394_v47  ;;  %1127 = vmatpush.bf16.msrb.mxu2 %v3044_v29  ;;  %1396 = vmatpush.bf16.msrb.mxu0 %v3200_v30  ;;  %v513_v61 = vadd.f32 %v4432_v44, %v505_v33  ;;  %v3824_v29 = vld [vmem:[%s5387_s3 + $0x3dc] sm:$0xf0]  ;;  %v2800_v30 = vor.u32 %v3709_v20, %v2797_v21  ;;  %v3826_v20 = vld [vmem:[%s5387_s3 + $0x3ec] sm:$0xf0]  ;;  %v3813_v25 = vld [vmem:[%s5387_s3 + $0x38c] sm:$0xf] }
 0x119   :  { %1409 = vmatpush.bf16.msrb.mxu1 %v3204_v57  ;;  %v3356_v37 = vor.u32 %v3824_v29, %v3355_v26  ;;  %v3164_v47 = vor.u32 %v3785_v38, %v3163_v13  ;;  %v3808_v33 = vld [vmem:[%s5387_s3 + $0x35c] sm:$0xf0]  ;;  %v3368_v21 = vor.u32 %v3821_v15, %v3365_v16  ;;  %v3706_v2 = vld [vmem:[%s5387_s3 + $0x2c] sm:$0xf0]  ;;  %v3333_v26 = vld [vmem:[%s5387_s3 + $0x3a8] sm:$0xf0] }
 0x11a   :  { %v493_v18 = vadd.f32 %v492_v41, %v444_v51  ;;  %v517_v22 = vmax.f32 %v513_v61, 0.0  ;;  %v3181_v41 = vld [vmem:[%s5387_s3 + $0x2b8] sm:$0xf0]  ;;  %v3730_v51 = vld [vmem:[%s5387_s3 + $0xec] sm:$0xf0]  ;;  %v3336_v59 = vor.u32 %v3813_v25, %v3333_v26 }
 0x11b   :  { %753 = vmatpush.bf16.msra.mxu3 %v2764_v50  ;;  %v3184_v54 = vor.u32 %v3783_v39, %v3181_v41  ;;  %v2867_v50 = vld [vmem:[%s5387_s3 + $0xd0] sm:$0xf]  ;;  %v2869_v13 = vld [vmem:[%s5387_s3 + $0xf0] sm:$0xf0]  ;;  %v3779_v39 = vld [vmem:[%s5387_s3 + $0x274] sm:$0xf0] }
 0x11c   :  { %v502_v43 = vmax.f32 %v4371_v53, %v493_v18  ;;  %1128 = vmatpush.bf16.msrb.mxu2 %v3012_v55  ;;  %1397 = vmatpush.bf16.msrb.mxu0 %v3168_v62  ;;  %v3140_v53 = vor.u32 %v3778_v40, %v3139_v35  ;;  %v4617_v57 = vpack.c.bf16 %v517_v22, %v517_v22  ;;  %v3131_v55 = vld [vmem:[%s5387_s3 + $0x248] sm:$0xf]  ;;  %v3722_v18 = vld [vmem:[%s5387_s3 + $0xac] sm:$0xf0]  ;;  %v3179_v22 = vld [vmem:[%s5387_s3 + $0x298] sm:$0xf] }
 0x11d   :  { %1410 = vmatpush.bf16.msrb.mxu1 %v3172_v34  ;;  %v3324_v62 = vor.u32 %v3816_v45, %v3323_v42  ;;  %v2868_v34 = vor.u32 %v3730_v51, %v2867_v50  ;;  %v3132_v32 = vor.u32 %v3777_v3, %v3131_v55  ;;  %v3099_v35 = vld [vmem:[%s5387_s3 + $0x208] sm:$0xf]  ;;  %v3292_v40 = vor.u32 %v3808_v33, %v3291_v6  ;;  %v2803_v61 = vld [vmem:[%s5387_s3 + $0x50] sm:$0xf]  ;;  %v3805_v41 = vld [vmem:[%s5387_s3 + $0x34c] sm:$0xf] }
 0x11e   :  { %v4574_v14 = vmax.f32 %v498_v56, %v502_v43  ;;  %2882 = vmatmul.msk.bf16.vlgmr.msrb.gmra.mxu3 %vm716_vm1, %v4451_v19  ;;  %v3769_v56 = vld [vmem:[%s5387_s3 + $0x224] sm:$0xf0]  ;;  %v3117_v43 = vld [vmem:[%s5387_s3 + $0x238] sm:$0xf0]  ;;  %v2836_v8 = vor.u32 %v3722_v18, %v2835_v49  ;;  %v3339_v29 = vld [vmem:[%s5387_s3 + $0x390] sm:$0xf] }
 0x11f   :  { %763 = vmatpush.bf16.msrb.mxu3 %v2864_v58  ;;  %v3767_v58 = vld [vmem:[%s5387_s3 + $0x21c] sm:$0xf]  ;;  %v3100_v9 = vor.u32 %v3769_v56, %v3099_v35  ;;  %v3301_v42 = vld [vmem:[%s5387_s3 + $0x368] sm:$0xf0]  ;;  %v3307_v45 = vld [vmem:[%s5387_s3 + $0x350] sm:$0xf] }
 0x120   :  { %1129 = vmatpush.bf16.msrb.mxu2 %v2980_v7  ;;  %1398 = vmatpush.bf16.msrb.mxu0 %v3136_v5  ;;  %v3259_v7 = vld [vmem:[%s5387_s3 + $0x300] sm:$0xf]  ;;  %v3120_v27 = vor.u32 %v3767_v58, %v3117_v43  ;;  %v3304_v51 = vor.u32 %v3805_v41, %v3301_v42  ;;  %v3718_v55 = vld [vmem:[%s5387_s3 + $0x94] sm:$0xf]  ;;  %v3115_v3 = vld [vmem:[%s5387_s3 + $0x218] sm:$0xf] }
 0x121   :  { %1411 = vmatpush.bf16.msrb.mxu1 %v3140_v53  ;;  %v3800_v5 = vld [vmem:[%s5387_s3 + $0x31c] sm:$0xf0]  ;;  %v3714_v53 = vld [vmem:[%s5387_s3 + $0x6c] sm:$0xf0]  ;;  %v3797_v52 = vld [vmem:[%s5387_s3 + $0x30c] sm:$0xf] }
 0x122   :  { %v3260_v11 = vor.u32 %v3800_v5, %v3259_v7  ;;  %v3269_v4 = vld [vmem:[%s5387_s3 + $0x328] sm:$0xf0]  ;;  %v3275_v6 = vld [vmem:[%s5387_s3 + $0x310] sm:$0xf]  ;;  %v3710_v18 = vld [vmem:[%s5387_s3 + $0x54] sm:$0xf] }
 0x123   :  { %764 = vmatpush.bf16.msrb.mxu3 %v2832_v17  ;;  %v3371_v17 = vld [vmem:[%s5387_s3 + $0x3d0] sm:$0xf]  ;;  %v3272_v49 = vor.u32 %v3797_v52, %v3269_v4  ;;  %v2805_v35 = vld [vmem:[%s5387_s3 + $0x70] sm:$0xf0]  ;;  %v3825_v58 = vld [vmem:[%s5387_s3 + $0x3e4] sm:$0xf0] }
 0x124   :  { %1130 = vmatpush.bf16.msrb.mxu2 %v2948_v63  ;;  %1399 = vmatpush.bf16.msrb.mxu0 %v3104_v0  ;;  %v2804_v63 = vor.u32 %v3714_v53, %v2803_v61  ;;  %v3212_v0 = vor.u32 %v3795_v12, %v3211_v10  ;;  %v3802_v33 = vld [vmem:[%s5387_s3 + $0x32c] sm:$0xf0]  ;;  %v3823_v43 = vld [vmem:[%s5387_s3 + $0x3dc] sm:$0xf]  ;;  %v2808_v5 = vor.u32 %v3710_v18, %v2805_v35  ;;  %v2773_v61 = vld [vmem:[%s5387_s3 + $0x30] sm:$0xf0] }
 0x125   :  { %1412 = vmatpush.bf16.msrb.mxu1 %v3108_v23  ;;  %v3372_v23 = vor.u32 %v3826_v20, %v3371_v17  ;;  %v3276_v56 = vor.u32 %v3802_v33, %v3275_v6  ;;  %v3381_v7 = vld [vmem:[%s5387_s3 + $0x3f8] sm:$0xf0]  ;;  %v3331_v53 = vld [vmem:[%s5387_s3 + $0x388] sm:$0xf]  ;;  %v2843_v26 = vld [vmem:[%s5387_s3 + $0x98] sm:$0xf] }
 0x126   :  { %3051 = vmatmul.msk.bf16.vlgmr.msra.gmra.mxu2 %vm716_vm1, %v4491_v28  ;;  %3056 = vmatmul.msk.bf16.vlgmr.msra.gmra.mxu0 %vm716_vm1, %v4491_v28  ;;  %v3815_v12 = vld [vmem:[%s5387_s3 + $0x39c] sm:$0xf]  ;;  %v3379_v41 = vld [vmem:[%s5387_s3 + $0x3d8] sm:$0xf] }
 0x127   :  { %3217 = vmatmul.msk.bf16.vlgmr.msra.gmra.mxu1 %vm716_vm1, %v4617_v57  ;;  %765 = vmatpush.bf16.msrb.mxu3 %v2800_v30  ;;  %v3818_v30 = vld [vmem:[%s5387_s3 + $0x3ac] sm:$0xf0]  ;;  %v3349_v15 = vld [vmem:[%s5387_s3 + $0x3b8] sm:$0xf0]  ;;  %v3827_v42 = vld [vmem:[%s5387_s3 + $0x3f4] sm:$0xf0] }
 0x128   :  { %1383 = vmatpush.bf16.msra.mxu2 %v3196_v31  ;;  %1448 = vmatpush.bf16.msra.mxu0 %v3216_v36  ;;  %v2772_v31 = vor.u32 %v3706_v2, %v2771_v1  ;;  %v3180_v36 = vor.u32 %v3787_v24, %v3179_v22  ;;  %v3340_v38 = vor.u32 %v3818_v30, %v3339_v29  ;;  %v3809_v1 = vld [vmem:[%s5387_s3 + $0x364] sm:$0xf0]  ;;  %v3807_v2 = vld [vmem:[%s5387_s3 + $0x35c] sm:$0xf]  ;;  %v3723_v29 = vld [vmem:[%s5387_s3 + $0xb4] sm:$0xf0] }
 0x129   :  { %1665 = vmatpush.bf16.msra.mxu1 %v3356_v37  ;;  %v3147_v37 = vld [vmem:[%s5387_s3 + $0x258] sm:$0xf]  ;;  %v3352_v20 = vor.u32 %v3815_v12, %v3349_v15  ;;  %v3317_v22 = vld [vmem:[%s5387_s3 + $0x378] sm:$0xf0]  ;;  %v3267_v30 = vld [vmem:[%s5387_s3 + $0x308] sm:$0xf] }
 0x12a   :  { %v3148_v50 = vor.u32 %v3779_v39, %v3147_v37  ;;  %v3320_v25 = vor.u32 %v3807_v2, %v3317_v22  ;;  %v3715_v39 = vld [vmem:[%s5387_s3 + $0x74] sm:$0xf0]  ;;  %v3719_v33 = vld [vmem:[%s5387_s3 + $0x9c] sm:$0xf]  ;;  %v2957_v12 = vld [vmem:[%s5387_s3 + $0x160] sm:$0xf0] }
 0x12b   :  { %766 = vmatpush.bf16.msrb.mxu3 %v2768_v46  ;;  %v3810_v46 = vld [vmem:[%s5387_s3 + $0x36c] sm:$0xf0]  ;;  %v3811_v52 = vld [vmem:[%s5387_s3 + $0x374] sm:$0xf0]  ;;  %v3711_v35 = vld [vmem:[%s5387_s3 + $0x5c] sm:$0xf] }
 0x12c   :  { %1384 = vmatpush.bf16.msra.mxu2 %v3164_v47  ;;  %1449 = vmatpush.bf16.msra.mxu0 %v3184_v54  ;;  %v514_v47 = vadd.f32 %v4432_v44, %v4574_v14  ;;  %v2872_v54 = vor.u32 %v3726_v60, %v2869_v13  ;;  %v3308_v44 = vor.u32 %v3810_v46, %v3307_v45  ;;  %v3771_v14 = vld [vmem:[%s5387_s3 + $0x234] sm:$0xf0]  ;;  %v3005_v2 = vld [vmem:[%s5387_s3 + $0x1b0] sm:$0xf0] }
 0x12d   :  { %1666 = vmatpush.bf16.msra.mxu1 %v3324_v62  ;;  %v2837_v62 = vld [vmem:[%s5387_s3 + $0xb0] sm:$0xf0]  ;;  %v2844_v60 = vor.u32 %v3723_v29, %v2843_v26  ;;  %v3380_v46 = vor.u32 %v3827_v42, %v3379_v41 }
 0x12e   :  { %2883 = vmatmul.msk.bf16.vlgmr.msra.gmra.mxu3 %vm716_vm1, %v4451_v19  ;;  %v3734_v26 = vld [vmem:[%s5387_s3 + $0x114] sm:$0xf] }
 0x12f   :  { %776 = vmatpush.bf16.msra.mxu3 %v2868_v34  ;;  %v518_v34 = vmax.f32 %v514_v47, 0.0  ;;  %v2779_v47 = vld [vmem:[%s5387_s3 + $0x18] sm:$0xf] }
 0x130   :  { %1385 = vmatpush.bf16.msra.mxu2 %v3132_v32  ;;  %1450 = vmatpush.bf16.msra.mxu0 %v3152_v48  ;;  %v2840_v32 = vor.u32 %v3718_v55, %v2837_v62  ;;  %v3116_v48 = vor.u32 %v3771_v14, %v3115_v3  ;;  %v3727_v3 = vld [vmem:[%s5387_s3 + $0xdc] sm:$0xf]  ;;  %v3315_v14 = vld [vmem:[%s5387_s3 + $0x358] sm:$0xf] }
 0x131   :  { %1667 = vmatpush.bf16.msra.mxu1 %v3292_v40  ;;  %v3363_v40 = vld [vmem:[%s5387_s3 + $0x3c8] sm:$0xf]  ;;  %v4823_v10 = vpack.c.bf16 %v518_v34, %v518_v34  ;;  %v3316_v6 = vor.u32 %v3811_v52, %v3315_v14  ;;  %v2845_v34 = vld [vmem:[%s5387_s3 + $0xb8] sm:$0xf0] }
 0x132   :  { %v3835_v14 = vld [vmem:[%s5388_s5 + $0x38] sm:$0xff] }
 0x133   :  { %777 = vmatpush.bf16.msra.mxu3 %v2836_v8  ;;  %v3364_v8 = vor.u32 %v3825_v58, %v3363_v40  ;;  %v2813_v40 = vld [vmem:[%s5387_s3 + $0x78] sm:$0xf0] }
 0x134   :  { %1386 = vmatpush.bf16.msra.mxu2 %v3100_v9  ;;  %1451 = vmatpush.bf16.msra.mxu0 %v3120_v27  ;;  %v3384_v9 = vor.u32 %v3823_v43, %v3381_v7  ;;  %v3702_v27 = vld [vmem:[%s5387_s3 + $0x14] sm:$0xf]  ;;  %v3703_v58 = vld [vmem:[%s5387_s3 + $0x1c] sm:$0xf] }
 0x135   :  { %1668 = vmatpush.bf16.msra.mxu1 %v3260_v11  ;;  %v3817_v11 = vld [vmem:[%s5387_s3 + $0x3a4] sm:$0xf0]  ;;  %v2776_v16 = vor.u32 %v3702_v27, %v2773_v61  ;;  %v2781_v43 = vld [vmem:[%s5387_s3 + $0x38] sm:$0xf0]  ;;  %v3748_v27 = vld [vmem:[%s5387_s3 + $0x184] sm:$0xf] }
 0x136   :  { %3055 = vmatmul.msk.bf16.vlgmr.msrb.gmra.mxu2 %vm716_vm1, %v4491_v28  ;;  %3220 = vmatmul.msk.bf16.vlgmr.msrb.gmra.mxu0 %vm716_vm1, %v4617_v57  ;;  %v3332_v17 = vor.u32 %v3817_v11, %v3331_v53  ;;  %v2784_v7 = vor.u32 %v3703_v58, %v2781_v43  ;;  %v2989_v61 = vld [vmem:[%s5387_s3 + $0x1a0] sm:$0xf0]  ;;  %v3766_v58 = vld [vmem:[%s5387_s3 + $0x214] sm:$0xf] }
 0x137   :  { %3221 = vmatmul.msk.bf16.vlgmr.msrb.gmra.mxu1 %vm716_vm1, %v4617_v57  ;;  %778 = vmatpush.bf16.msra.mxu3 %v2804_v63  ;;  %v2875_v63 = vld [vmem:[%s5387_s3 + $0xd8] sm:$0xf]  ;;  %v2992_v53 = vor.u32 %v3748_v27, %v2989_v61  ;;  %v3740_v11 = vld [vmem:[%s5387_s3 + $0x144] sm:$0xf]  ;;  %v3109_v43 = vld [vmem:[%s5387_s3 + $0x230] sm:$0xf0] }
 0x138   :  { %1435 = vmatpush.bf16.msrb.mxu2 %v3212_v0  ;;  %1704 = vmatpush.bf16.msrb.mxu0 %v3368_v21  ;;  %v3731_v0 = vld [vmem:[%s5387_s3 + $0xf4] sm:$0xf0]  ;;  %v3299_v21 = vld [vmem:[%s5387_s3 + $0x348] sm:$0xf]  ;;  %v2960_v15 = vor.u32 %v3740_v11, %v2957_v12 }
 0x139   :  { %1717 = vmatpush.bf16.msrb.mxu1 %v3372_v23  ;;  %v2876_v23 = vor.u32 %v3731_v0, %v2875_v63  ;;  %v3300_v24 = vor.u32 %v3809_v1, %v3299_v21  ;;  %v3758_v63 = vld [vmem:[%s5387_s3 + $0x1d4] sm:$0xf]  ;;  %v3831_v12 = vld [vmem:[%s5388_s5 + $0x18] sm:$0xff] }
 0x13a   :  { %v3037_v0 = vld [vmem:[%s5387_s3 + $0x1f0] sm:$0xf0] }
 0x13b   :  { %779 = vmatpush.bf16.msra.mxu3 %v2772_v31  ;;  %v3801_v31 = vld [vmem:[%s5387_s3 + $0x324] sm:$0xf0]  ;;  %v3040_v21 = vor.u32 %v3758_v63, %v3037_v0  ;;  %v3750_v1 = vld [vmem:[%s5387_s3 + $0x194] sm:$0xf]  ;;  %v3804_v0 = vld [vmem:[%s5387_s3 + $0x344] sm:$0xf] }
 0x13c   :  { %1436 = vmatpush.bf16.msrb.mxu2 %v3180_v36  ;;  %1705 = vmatpush.bf16.msrb.mxu0 %v3336_v59  ;;  %v3799_v36 = vld [vmem:[%s5387_s3 + $0x31c] sm:$0xf]  ;;  %v3268_v13 = vor.u32 %v3801_v31, %v3267_v30  ;;  %v3008_v22 = vor.u32 %v3750_v1, %v3005_v2  ;;  %v3788_v30 = vld [vmem:[%s5387_s3 + $0x2c4] sm:$0xf]  ;;  %v3830_v63 = vld [vmem:[%s5388_s5 + $0x10] sm:$0xff] }
 0x13d   :  { %1718 = vmatpush.bf16.msrb.mxu1 %v3340_v38  ;;  %v3285_v59 = vld [vmem:[%s5387_s3 + $0x338] sm:$0xf0]  ;;  %v2811_v38 = vld [vmem:[%s5387_s3 + $0x58] sm:$0xf]  ;;  %v3189_v31 = vld [vmem:[%s5387_s3 + $0x2e0] sm:$0xf0] }
 0x13e   :  { %2884 = vmatmul.msk.bf16.vlgmr.msrb.gmra.mxu3 %vm716_vm1, %v4451_v19  ;;  %v3288_v37 = vor.u32 %v3799_v36, %v3285_v59  ;;  %v2812_v45 = vor.u32 %v3715_v39, %v2811_v38  ;;  %v3192_v36 = vor.u32 %v3788_v30, %v3189_v31  ;;  %v3780_v59 = vld [vmem:[%s5387_s3 + $0x284] sm:$0xf] }
 0x13f   :  { %789 = vmatpush.bf16.msrb.mxu3 %v2872_v54  ;;  %v3707_v54 = vld [vmem:[%s5387_s3 + $0x34] sm:$0xf0]  ;;  %v3125_v38 = vld [vmem:[%s5387_s3 + $0x260] sm:$0xf0] }
 0x140   :  { %1437 = vmatpush.bf16.msrb.mxu2 %v3148_v50  ;;  %1706 = vmatpush.bf16.msrb.mxu0 %v3304_v51  ;;  %v3347_v50 = vld [vmem:[%s5387_s3 + $0x398] sm:$0xf]  ;;  %v2780_v55 = vor.u32 %v3707_v54, %v2779_v47  ;;  %v3093_v47 = vld [vmem:[%s5387_s3 + $0x220] sm:$0xf0] }
 0x141   :  { %1719 = vmatpush.bf16.msrb.mxu1 %v3308_v44  ;;  %v3819_v51 = vld [vmem:[%s5387_s3 + $0x3b4] sm:$0xf0]  ;;  %v2877_v44 = vld [vmem:[%s5387_s3 + $0xf8] sm:$0xf0]  ;;  %v5131_v30 = vld [vmem:[%s5389_s4] sm:$0xff] }
 0x142   :  { %v3348_v62 = vor.u32 %v3819_v51, %v3347_v50  ;;  %v2880_v4 = vor.u32 %v3727_v3, %v2877_v44  ;;  %v3790_v50 = vld [vmem:[%s5387_s3 + $0x2d4] sm:$0xf] }
 0x143   :  { %790 = vmatpush.bf16.msrb.mxu3 %v2840_v32  ;;  %v3283_v32 = vld [vmem:[%s5387_s3 + $0x318] sm:$0xf]  ;;  %v3205_v51 = vld [vmem:[%s5387_s3 + $0x2f0] sm:$0xf0] }
 0x144   :  { %1438 = vmatpush.bf16.msrb.mxu2 %v3116_v48  ;;  %1707 = vmatpush.bf16.msrb.mxu0 %v3272_v49  ;;  %v3803_v48 = vld [vmem:[%s5387_s3 + $0x334] sm:$0xf0]  ;;  %v2848_v49 = vor.u32 %v3719_v33, %v2845_v34  ;;  %v3208_v44 = vor.u32 %v3790_v50, %v3205_v51  ;;  %v3834_v33 = vld [vmem:[%s5388_s5 + $0x30] sm:$0xff] }
 0x145   :  { %1720 = vmatpush.bf16.msrb.mxu1 %v3276_v56  ;;  %v3284_v18 = vor.u32 %v3803_v48, %v3283_v32  ;;  %v2816_v56 = vor.u32 %v3711_v35, %v2813_v40  ;;  %v3774_v32 = vld [vmem:[%s5387_s3 + $0x254] sm:$0xf]  ;;  %v3833_v40 = vld [vmem:[%s5388_s5 + $0x28] sm:$0xff] }
 0x146   :  { %3219 = vmatmul.msk.bf16.vlgmr.msra.gmra.mxu2 %vm716_vm1, %v4617_v57  ;;  %3224 = vmatmul.msk.bf16.vlgmr.msra.gmra.mxu0 %vm716_vm1, %v4617_v57  ;;  %v3141_v48 = vld [vmem:[%s5387_s3 + $0x270] sm:$0xf0] }
 0x147   :  { %3385 = vmatmul.msk.bf16.vlgmr.msra.gmra.mxu1 %vm716_vm1, %v4823_v10  ;;  %791 = vmatpush.bf16.msrb.mxu3 %v2808_v5  ;;  %v3756_v5 = vld [vmem:[%s5387_s3 + $0x1c4] sm:$0xf]  ;;  %v3814_v50 = vld [vmem:[%s5387_s3 + $0x394] sm:$0xf] }
 0x148   :  { %1691 = vmatpush.bf16.msra.mxu2 %v3364_v8  ;;  %1756 = vmatpush.bf16.msra.mxu0 %v3384_v9  ;;  %v3021_v8 = vld [vmem:[%s5387_s3 + $0x1e0] sm:$0xf0] }
 0x149   :  { %v3024_v9 = vor.u32 %v3756_v5, %v3021_v8  ;;  %2449 = vmatpush.bf16.msra.mxu1 %v3835_v14  ;;  %v3832_v5 = vld [vmem:[%s5388_s5 + $0x20] sm:$0xff]  ;;  %v3851_v14 = vld [vmem:[%s5388_s5 + $0xb8] sm:$0xff] }
 0x14a   :  { %v3820_v8 = vld [vmem:[%s5387_s3 + $0x3c4] sm:$0xf] }
 0x14b   :  { %792 = vmatpush.bf16.msrb.mxu3 %v2776_v16  ;;  %v3732_v16 = vld [vmem:[%s5387_s3 + $0x104] sm:$0xf] }
 0x14c   :  { %1692 = vmatpush.bf16.msra.mxu2 %v3332_v17  ;;  %1757 = vmatpush.bf16.msra.mxu0 %v3352_v20  ;;  %v2925_v17 = vld [vmem:[%s5387_s3 + $0x120] sm:$0xf0] }
 0x14d   :  { %v2928_v20 = vor.u32 %v3732_v16, %v2925_v17  ;;  %2450 = vmatpush.bf16.msra.mxu1 %v3834_v33  ;;  %v3812_v16 = vld [vmem:[%s5387_s3 + $0x384] sm:$0xf]  ;;  %v3309_v33 = vld [vmem:[%s5387_s3 + $0x370] sm:$0xf0] }
 0x14e   :  { %2885 = vmatmul.msk.bf16.vlgmr.msra.gmra.mxu3 %vm716_vm1, %v4451_v19  ;;  %v3325_v17 = vld [vmem:[%s5387_s3 + $0x3a0] sm:$0xf0] }
 0x14f   :  { %802 = vmatpush.bf16.msra.mxu3 %v2876_v23  ;;  %v3742_v23 = vld [vmem:[%s5387_s3 + $0x154] sm:$0xf] }
 0x150   :  { %1693 = vmatpush.bf16.msra.mxu2 %v3300_v24  ;;  %1758 = vmatpush.bf16.msra.mxu0 %v3320_v25  ;;  %v2973_v24 = vld [vmem:[%s5387_s3 + $0x170] sm:$0xf0] }
 0x151   :  { %v2976_v25 = vor.u32 %v3742_v23, %v2973_v24  ;;  %2451 = vmatpush.bf16.msra.mxu1 %v3833_v40  ;;  %v3829_v24 = vld [vmem:[%s5388_s5 + $0x8] sm:$0xff] }
 0x153   :  { %803 = vmatpush.bf16.msra.mxu3 %v2844_v60  ;;  %v3157_v60 = vld [vmem:[%s5387_s3 + $0x2a0] sm:$0xf0] }
 0x154   :  { %1694 = vmatpush.bf16.msra.mxu2 %v3268_v13  ;;  %1759 = vmatpush.bf16.msra.mxu0 %v3288_v37  ;;  %v3160_v13 = vor.u32 %v3780_v59, %v3157_v60  ;;  %v3772_v37 = vld [vmem:[%s5387_s3 + $0x244] sm:$0xf]  ;;  %v3373_v60 = vld [vmem:[%s5387_s3 + $0x3f0] sm:$0xf0] }
 0x155   :  { %v3128_v42 = vor.u32 %v3772_v37, %v3125_v38  ;;  %2452 = vmatpush.bf16.msra.mxu1 %v3832_v5  ;;  %v3828_v59 = vld [vmem:[%s5388_s5] sm:$0xff]  ;;  %v3867_v37 = vld [vmem:[%s5388_s5 + $0x138] sm:$0xff] }
 0x156   :  { %3223 = vmatmul.msk.bf16.vlgmr.msrb.gmra.mxu2 %vm716_vm1, %v4617_v57  ;;  %3388 = vmatmul.msk.bf16.vlgmr.msrb.gmra.mxu0 %vm716_vm1, %v4823_v10 }
 0x157   :  { %3389 = vmatmul.msk.bf16.vlgmr.msrb.gmra.mxu1 %vm716_vm1, %v4823_v10  ;;  %804 = vmatpush.bf16.msra.mxu3 %v2812_v45 }
 0x158   :  { %1743 = vmatpush.bf16.msrb.mxu2 %v3380_v46  ;;  %v3764_v46 = vld [vmem:[%s5387_s3 + $0x204] sm:$0xf] }
 0x159   :  { %v3096_v54 = vor.u32 %v3764_v46, %v3093_v47  ;;  %2453 = vmatpush.bf16.msra.mxu1 %v3831_v12  ;;  %v825_v46 = vperm.slane %v5131_v30, 0 }
 0x15b   :  { %805 = vmatpush.bf16.msra.mxu3 %v2780_v55 }
 0x15c   :  { %1744 = vmatpush.bf16.msrb.mxu2 %v3348_v62 }
 0x15d   :  { %2454 = vmatpush.bf16.msra.mxu1 %v3830_v63  ;;  %v3848_v63 = vld [vmem:[%s5388_s5 + $0xa0] sm:$0xff] }
 0x15e   :  { %2886 = vmatmul.msk.bf16.vlgmr.msrb.gmra.mxu3 %vm716_vm1, %v4451_v19 }
 0x15f   :  { %815 = vmatpush.bf16.msrb.mxu3 %v2880_v4  ;;  %v3782_v4 = vld [vmem:[%s5387_s3 + $0x294] sm:$0xf] }
 0x160   :  { %1745 = vmatpush.bf16.msrb.mxu2 %v3316_v6  ;;  %v3173_v6 = vld [vmem:[%s5387_s3 + $0x2b0] sm:$0xf0] }
 0x161   :  { %v3176_v34 = vor.u32 %v3782_v4, %v3173_v6  ;;  %2455 = vmatpush.bf16.msra.mxu1 %v3829_v24  ;;  %v3806_v6 = vld [vmem:[%s5387_s3 + $0x354] sm:$0xf] }
 0x163   :  { %816 = vmatpush.bf16.msrb.mxu3 %v2848_v49 }
 0x164   :  { %1746 = vmatpush.bf16.msrb.mxu2 %v3284_v18 }
 0x165   :  { %2456 = vmatpush.bf16.msra.mxu1 %v3828_v59 }
 0x166   :  { %3387 = vmatmul.msk.bf16.vlgmr.msra.gmra.mxu2 %vm716_vm1, %v4823_v10  ;;  %3392 = vmatmul.msk.bf16.vlgmr.msra.gmra.mxu0 %vm716_vm1, %v4823_v10 }
 0x167   :  { %817 = vmatpush.bf16.msrb.mxu3 %v2816_v56 }
 0x168   :  { %2475 = vmatpush.bf16.msra.mxu2 %v3851_v14 }
 0x169   :  { %2501 = vmatpush.bf16.msrb.mxu1 %v3867_v37 }
 0x16b   :  { %818 = vmatpush.bf16.msrb.mxu3 %v2784_v7  ;;  %v3112_v7 = vor.u32 %v3766_v58, %v3109_v43  ;;  %v3312_v58 = vor.u32 %v3806_v6, %v3309_v33  ;;  %v3844_v33 = vld [vmem:[%s5388_s5 + $0x80] sm:$0xff] }
 0x16e   :  { %2887 = vmatmul.msk.bf16.vlgmr.msra.gmra.mxu3 %vm716_vm1, %v4451_v19 }
 0x16f   :  { %1062 = vmatpush.bf16.msra.mxu3 %v3024_v9  ;;  %v3357_v9 = vld [vmem:[%s5387_s3 + $0x3e0] sm:$0xf0] }
 0x170   :  { %v3360_v11 = vor.u32 %v3820_v8, %v3357_v9  ;;  %v3864_v8 = vld [vmem:[%s5388_s5 + $0x120] sm:$0xff]  ;;  %v828_v9 = vperm.slane %v5131_v30, 3 }
 0x173   :  { %1063 = vmatpush.bf16.msra.mxu3 %v2992_v53 }
 0x176   :  { %3391 = vmatmul.msk.bf16.vlgmr.msrb.gmra.mxu2 %vm716_vm1, %v4823_v10 }
 0x177   :  { %1064 = vmatpush.bf16.msra.mxu3 %v2960_v15 }
 0x17b   :  { %1065 = vmatpush.bf16.msra.mxu3 %v2928_v20  ;;  %v3328_v20 = vor.u32 %v3812_v16, %v3325_v17  ;;  %v3854_v16 = vld [vmem:[%s5388_s5 + $0xd0] sm:$0xff]  ;;  %v3863_v17 = vld [vmem:[%s5388_s5 + $0x118] sm:$0xff] }
 0x17e   :  { %2888 = vmatmul.msk.bf16.vlgmr.msrb.gmra.mxu3 %vm716_vm1, %v4451_v19  ;;  %v2941_v19 = vld [vmem:[%s5387_s3 + $0x130] sm:$0xf0] }
 0x17f   :  { %1114 = vmatpush.bf16.msrb.mxu3 %v3040_v21  ;;  %v2944_v29 = vor.u32 %v3734_v26, %v2941_v19  ;;  %v3293_v21 = vld [vmem:[%s5387_s3 + $0x360] sm:$0xf0] }
 0x180   :  { %v3296_v23 = vor.u32 %v3804_v0, %v3293_v21  ;;  %v3796_v26 = vld [vmem:[%s5387_s3 + $0x304] sm:$0xf] }
 0x181   :  { %v3261_v19 = vld [vmem:[%s5387_s3 + $0x320] sm:$0xf0] }
 0x182   :  { %v3264_v31 = vor.u32 %v3796_v26, %v3261_v19  ;;  %v829_v26 = vperm.slane %v5131_v30, 4  ;;  %v3847_v19 = vld [vmem:[%s5388_s5 + $0x98] sm:$0xff] }
 0x183   :  { %1115 = vmatpush.bf16.msrb.mxu3 %v3008_v22 }
 0x187   :  { %1116 = vmatpush.bf16.msrb.mxu3 %v2976_v25 }
 0x18b   :  { %1117 = vmatpush.bf16.msrb.mxu3 %v2944_v29  ;;  %v3859_v29 = vld [vmem:[%s5388_s5 + $0xf8] sm:$0xff] }
 0x18c   :  { %2488 = vmatpush.bf16.msrb.mxu0 %v3859_v29 }
 0x18e   :  { %3050 = vmatmul.msk.bf16.vlgmr.msra.gmra.mxu3 %vm716_vm1, %v4491_v28 }
 0x18f   :  { %1370 = vmatpush.bf16.msra.mxu3 %v3192_v36  ;;  %v3822_v36 = vld [vmem:[%s5387_s3 + $0x3d4] sm:$0xf] }
 0x191   :  { %v5024_v39 = vpop.f32.mrf.mxu3 }
 0x193   :  { %v5026_v41 = vpop.f32.mrf.mxu0  ;;  %1371 = vmatpush.bf16.msra.mxu3 %v3160_v13  ;;  %v3858_v13 = vld [vmem:[%s5388_s5 + $0xf0] sm:$0xff] }
 0x194   :  { %v5028_v45 = vpop.f32.mrf.mxu1  ;;  %2489 = vmatpush.bf16.msrb.mxu0 %v3858_v13 }
 0x197   :  { %1372 = vmatpush.bf16.msra.mxu3 %v3128_v42 }
 0x199   :  { %v731_v55 = vpop.f32.mrf.mxu3  ;;  %v5042_v62 = vpop.f32.mrf.mxu2 }
 0x19a   :  { %v3341_v55 = vld [vmem:[%s5387_s3 + $0x3b0] sm:$0xf0] }
 0x19b   :  { %v1095_v3 = vpop.f32.mrf.mxu0  ;;  %1373 = vmatpush.bf16.msra.mxu3 %v3096_v54  ;;  %v3376_v54 = vor.u32 %v3822_v36, %v3373_v60  ;;  %v3344_v4 = vor.u32 %v3814_v50, %v3341_v55  ;;  %v3861_v60 = vld [vmem:[%s5388_s5 + $0x108] sm:$0xff] }
 0x19c   :  { %v1108_v52 = vpop.f32.mrf.mxu1  ;;  %v3857_v3 = vld [vmem:[%s5388_s5 + $0xe8] sm:$0xff] }
 0x19d   :  { %2490 = vmatpush.bf16.msrb.mxu0 %v3857_v3  ;;  %v841_v52 = vadd.f32 %v825_v46, %v5024_v39 }
 0x19e   :  { %3054 = vmatmul.msk.bf16.vlgmr.msrb.gmra.mxu3 %vm716_vm1, %v4491_v28  ;;  %v3144_v28 = vor.u32 %v3774_v32, %v3141_v48 }
 0x19f   :  { %1422 = vmatpush.bf16.msrb.mxu3 %v3208_v44  ;;  %v3866_v44 = vld [vmem:[%s5388_s5 + $0x130] sm:$0xff]  ;;  %v1149_v39 = vadd.f32 %v5042_v62, %v841_v52 }
 0x1a0   :  { %2502 = vmatpush.bf16.msrb.mxu1 %v3866_v44  ;;  %v3277_v62 = vld [vmem:[%s5387_s3 + $0x330] sm:$0xf0] }
 0x1a1   :  { %v5064_v49 = vpop.f32.mrf.mxu3  ;;  %v1056_v18 = vpop.f32.mrf.mxu2 }
 0x1a2   :  { %v3850_v18 = vld [vmem:[%s5388_s5 + $0xb0] sm:$0xff] }
 0x1a3   :  { %v5066_v35 = vpop.f32.mrf.mxu0  ;;  %1423 = vmatpush.bf16.msrb.mxu3 %v3176_v34  ;;  %v3856_v34 = vld [vmem:[%s5388_s5 + $0xe0] sm:$0xff]  ;;  %2476 = vmatpush.bf16.msra.mxu2 %v3850_v18 }
 0x1a4   :  { %v5071_v56 = vpop.f32.mrf.mxu1  ;;  %2491 = vmatpush.bf16.msrb.mxu0 %v3856_v34 }
 0x1a7   :  { %1424 = vmatpush.bf16.msrb.mxu3 %v3144_v28  ;;  %v1457_v28 = vadd.f32 %v5071_v56, %v1149_v39  ;;  %v3855_v56 = vld [vmem:[%s5388_s5 + $0xd8] sm:$0xff] }
 0x1a8   :  { %2492 = vmatpush.bf16.msrb.mxu0 %v3855_v56 }
 0x1a9   :  { %v744_v27 = vpop.f32.mrf.mxu3  ;;  %v5088_v61 = vpop.f32.mrf.mxu2 }
 0x1aa   :  { %v3849_v27 = vld [vmem:[%s5388_s5 + $0xa8] sm:$0xff] }
 0x1ab   :  { %v1147_v53 = vpop.f32.mrf.mxu0  ;;  %1425 = vmatpush.bf16.msrb.mxu3 %v3112_v7  ;;  %v3798_v7 = vld [vmem:[%s5387_s3 + $0x314] sm:$0xf]  ;;  %2477 = vmatpush.bf16.msra.mxu2 %v3849_v27 }
 0x1ac   :  { %v1364_v15 = vpop.f32.mrf.mxu1  ;;  %2493 = vmatpush.bf16.msrb.mxu0 %v3854_v16 }
 0x1ae   :  { %3218 = vmatmul.msk.bf16.vlgmr.msra.gmra.mxu3 %vm716_vm1, %v4617_v57 }
 0x1af   :  { %1678 = vmatpush.bf16.msra.mxu3 %v3360_v11  ;;  %v3280_v11 = vor.u32 %v3798_v7, %v3277_v62  ;;  %2478 = vmatpush.bf16.msra.mxu2 %v3848_v63  ;;  %v3882_v62 = vld [vmem:[%s5388_s5 + $0x1b0] sm:$0xff] }
 0x1b1   :  { %v5110_v1 = vpop.f32.mrf.mxu3  ;;  %v1082_v2 = vpop.f32.mrf.mxu2 }
 0x1b2   :  { %v3853_v2 = vld [vmem:[%s5388_s5 + $0xc8] sm:$0xff] }
 0x1b3   :  { %v5112_v22 = vpop.f32.mrf.mxu0  ;;  %1679 = vmatpush.bf16.msra.mxu3 %v3328_v20  ;;  %2494 = vmatpush.bf16.msrb.mxu0 %v3853_v2 }
 0x1b4   :  { %v5117_v25 = vpop.f32.mrf.mxu1  ;;  %2479 = vmatpush.bf16.msra.mxu2 %v3847_v19 }
 0x1b7   :  { %1680 = vmatpush.bf16.msra.mxu3 %v3296_v23  ;;  %v3862_v23 = vld [vmem:[%s5388_s5 + $0x110] sm:$0xff] }
 0x1b9   :  { %v757_v38 = vpop.f32.mrf.mxu3  ;;  %v5148_v42 = vpop.f32.mrf.mxu2 }
 0x1ba   :  { %v3846_v38 = vld [vmem:[%s5388_s5 + $0x90] sm:$0xff] }
 0x1bb   :  { %v1403_v47 = vpop.f32.mrf.mxu0  ;;  %1681 = vmatpush.bf16.msra.mxu3 %v3264_v31  ;;  %2480 = vmatpush.bf16.msra.mxu2 %v3846_v38 }
 0x1bc   :  { %v1416_v51 = vpop.f32.mrf.mxu1 }
 0x1bd   :  { %v3860_v51 = vld [vmem:[%s5388_s5 + $0x100] sm:$0xff] }
 0x1be   :  { %3222 = vmatmul.msk.bf16.vlgmr.msrb.gmra.mxu3 %vm716_vm1, %v4617_v57  ;;  %v3865_v57 = vld [vmem:[%s5388_s5 + $0x128] sm:$0xff] }
 0x1bf   :  { %1730 = vmatpush.bf16.msrb.mxu3 %v3376_v54  ;;  %2503 = vmatpush.bf16.msrb.mxu1 %v3865_v57  ;;  %v3883_v57 = vld [vmem:[%s5388_s5 + $0x1b8] sm:$0xff] }
 0x1c1   :  { %v768_v32 = vpop.f32.mrf.mxu3  ;;  %v1134_v48 = vpop.f32.mrf.mxu2 }
 0x1c2   :  { %v844_v20 = vadd.f32 %v828_v9, %v768_v32 }
 0x1c3   :  { %v5186_v40 = vpop.f32.mrf.mxu0  ;;  %1731 = vmatpush.bf16.msrb.mxu3 %v3344_v4  ;;  %2504 = vmatpush.bf16.msrb.mxu1 %v3864_v8 }
 0x1c4   :  { %v1670_v43 = vpop.f32.mrf.mxu1  ;;  %v1152_v24 = vadd.f32 %v5026_v41, %v844_v20  ;;  %v3852_v41 = vld [vmem:[%s5388_s5 + $0xc0] sm:$0xff] }
 0x1c5   :  { %v1765_v5 = vadd.f32 %v1670_v43, %v1457_v28  ;;  %2495 = vmatpush.bf16.msrb.mxu0 %v3852_v41 }
 0x1c6   :  { %v1460_v37 = vadd.f32 %v5112_v22, %v1152_v24  ;;  %v3845_v22 = vld [vmem:[%s5388_s5 + $0x88] sm:$0xff]  ;;  %v3891_v24 = vld [vmem:[%s5388_s5 + $0x1f8] sm:$0xff] }
 0x1c7   :  { %v3393_v53 = vmul.f32 -1.442695, %v1765_v5  ;;  %1732 = vmatpush.bf16.msrb.mxu3 %v3312_v58  ;;  %2505 = vmatpush.bf16.msrb.mxu1 %v3863_v17  ;;  %v827_v58 = vperm.slane %v5131_v30, 2  ;;  %v3881_v17 = vld [vmem:[%s5388_s5 + $0x1a8] sm:$0xff] }
 0x1c8   :  { %2481 = vmatpush.bf16.msra.mxu2 %v3845_v22 }
 0x1c9   :  { %3894 = vpow2.f32 %v3393_v53  ;;  %v770_v12 = vpop.f32.mrf.mxu3  ;;  %v5204_v15 = vpop.f32.mrf.mxu2  ;;  %v843_v53 = vadd.f32 %v827_v58, %v5110_v1  ;;  %v3880_v1 = vld [vmem:[%s5388_s5 + $0x1a0] sm:$0xff]  ;;  %2540 = vmatpush.bf16.msra.mxu0 %v3891_v24 }
 0x1cb   :  { %v1455_v0 = vpop.f32.mrf.mxu0  ;;  %1733 = vmatpush.bf16.msrb.mxu3 %v3280_v11  ;;  %2506 = vmatpush.bf16.msrb.mxu1 %v3862_v23  ;;  %v1151_v20 = vadd.f32 %v5088_v61, %v843_v53  ;;  %v3886_v53 = vld [vmem:[%s5388_s5 + $0x1d0] sm:$0xff] }
 0x1cc   :  { %v1672_v21 = vpop.f32.mrf.mxu1  ;;  %2482 = vmatpush.bf16.msra.mxu2 %v3844_v33 }
 0x1cd   :  { %v1459_v0 = vadd.f32 %v5204_v15, %v1151_v20 }
 0x1ce   :  { %3386 = vmatmul.msk.bf16.vlgmr.msra.gmra.mxu3 %vm716_vm1, %v4823_v10 }
 0x1cf   :  { %v3895_v29 = vpop.eup %3894  ;;  %2507 = vmatpush.bf16.msrb.mxu1 %v3861_v60 }
 0x1d0   :  { %v1797_v31 = vadd.f32 1.0, %v3895_v29  ;;  %2527 = vmatpush.bf16.msrb.mxu2 %v3883_v57 }
 0x1d1   :  { %v781_v36 = vpop.f32.mrf.mxu3  ;;  %v1390_v59 = vpop.f32.mrf.mxu2 }
 0x1d2   :  { %3896 = vrcp.f32 %v1797_v31  ;;  %v845_v13 = vadd.f32 %v829_v26, %v781_v36  ;;  %v1816_v39 = vand.u32 2147483648, %v1797_v31  ;;  %v1814_v18 = vand.u32 2147483647, %v1797_v31  ;;  %v3879_v59 = vld [vmem:[%s5388_s5 + $0x198] sm:$0xff] }
 0x1d3   :  { %v1709_v46 = vpop.f32.mrf.mxu0  ;;  %2508 = vmatpush.bf16.msrb.mxu1 %v3860_v51  ;;  %vm1810_vm3 = vweird.f32 %v1797_v31 }
 0x1d4   :  { %v1153_v47 = vadd.f32 %v5028_v45, %v845_v13  ;;  %v1768_v54 = vadd.f32 %v1709_v46, %v1460_v37  ;;  %v1722_v50 = vpop.f32.mrf.mxu1  ;;  %v1817_v5 = vor.u32 1.1754944e-38, %v1816_v39  ;;  %vm1815_vm5 = vcmp.eq.f32.partialorder %v1814_v18, 8.507059e+37  ;;  %2528 = vmatpush.bf16.msrb.mxu2 %v3882_v62  ;;  %v3890_v37 = vld [vmem:[%s5388_s5 + $0x1f0] sm:$0xff] }
 0x1d5   :  { %v831_v13 = vperm.slane %v5131_v30, 6  ;;  %2541 = vmatpush.bf16.msra.mxu0 %v3890_v37 }
 0x1d6   :  { %v3396_v55 = vmul.f32 -1.442695, %v1768_v54  ;;  %v1461_v3 = vadd.f32 %v5117_v25, %v1153_v47 }
 0x1d8   :  { %v3897_v44 = vpop.eup %3896  ;;  %3898 = vpow2.f32 %v3396_v55  ;;  %v1769_v14 = vadd.f32 %v1722_v50, %v1461_v3  ;;  %2529 = vmatpush.bf16.msrb.mxu2 %v3881_v17  ;;  %v3878_v50 = vld [vmem:[%s5388_s5 + $0x190] sm:$0xff] }
 0x1d9   :  { %v1806_v45 = vmul.f32 %v3897_v44, %v1797_v31  ;;  %v783_v52 = vpop.f32.mrf.mxu3  ;;  %v5246_v4 = vpop.f32.mrf.mxu2  ;;  %vm1811_vm2 = vweird.f32 %v3897_v44 }
 0x1da   :  { %v3397_v6 = vmul.f32 -1.442695, %v1769_v14  ;;  %vm1812_vm4 = vmor %vm1810_vm3, %vm1811_vm2 }
 0x1db   :  { %v1807_v34 = vsub.f32 1.0, %v1806_v45  ;;  %v1711_v25 = vpop.f32.mrf.mxu0  ;;  %v3889_v45 = vld [vmem:[%s5388_s5 + $0x1e8] sm:$0xff] }
 0x1dc   :  { %3900 = vpow2.f32 %v3397_v6  ;;  %v1724_v32 = vpop.f32.mrf.mxu1  ;;  %2530 = vmatpush.bf16.msrb.mxu2 %v3880_v1  ;;  %2542 = vmatpush.bf16.msra.mxu0 %v3889_v45  ;;  %v3877_v25 = vld [vmem:[%s5388_s5 + $0x188] sm:$0xff] }
 0x1dd   :  { %v1808_v48 = vmul.f32 %v3897_v44, %v1807_v34 }
 0x1de   :  { %v3899_v28 = vpop.eup %3898  ;;  %3390 = vmatmul.msk.bf16.vlgmr.msrb.gmra.mxu3 %vm716_vm1, %v4823_v10 }
 0x1df   :  { %v1800_v43 = vadd.f32 1.0, %v3899_v28  ;;  %v1809_v7 = vadd.f32 %v3897_v44, %v1808_v48  ;;  %v3888_v28 = vld [vmem:[%s5388_s5 + $0x1e0] sm:$0xff] }
 0x1e0   :  { %2531 = vmatpush.bf16.msrb.mxu2 %v3879_v59  ;;  %2543 = vmatpush.bf16.msra.mxu0 %v3888_v28 }
 0x1e1   :  { %3902 = vrcp.f32 %v1800_v43  ;;  %v5260_v56 = vpop.f32.mrf.mxu3  ;;  %v1442_v8 = vpop.f32.mrf.mxu2  ;;  %v1813_v9 = vsel %vm1812_vm4, %v3897_v44, %v1809_v7  ;;  %v1861_v31 = vand.u32 2147483648, %v1800_v43  ;;  %v1859_v36 = vand.u32 2147483647, %v1800_v43 }
 0x1e2   :  { %v3901_v27 = vpop.eup %3900  ;;  %v1818_v10 = vsel %vm1815_vm5, %v1817_v5, %v1813_v9  ;;  %vm1855_vm7 = vweird.f32 %v1800_v43  ;;  %v3887_v5 = vld [vmem:[%s5388_s5 + $0x1d8] sm:$0xff] }
 0x1e3   :  { %v5263_v11 = vadd.f32 1.0, %v3901_v27  ;;  %v5265_v12 = vpop.f32.mrf.mxu0  ;;  %v1925_v16 = vpack.c.bf16 %v1818_v10, %v1818_v10  ;;  %v1862_v47 = vor.u32 1.1754944e-38, %v1861_v31  ;;  %vm1860_vm9 = vcmp.eq.f32.partialorder %v1859_v36, 8.507059e+37 }
 0x1e4   :  { %2532 = vmatpush.bf16.msrb.mxu2 %v3878_v50  ;;  %2544 = vmatpush.bf16.msra.mxu0 %v3887_v5  ;;  %v3839_v5 = vld [vmem:[%s5388_s5 + $0x58] sm:$0xff] }
 0x1e5   :  { %3904 = vrcp.f32 %v5263_v11  ;;  %2457 = vmatmul.bf16.vlgmr.msra.gmra.mxu1 %v1925_v16  ;;  %v1876_v54 = vand.u32 2147483648, %v5263_v11  ;;  %v1874_v3 = vand.u32 2147483647, %v5263_v11  ;;  %vm1870_vm11 = vweird.f32 %v5263_v11 }
 0x1e7   :  { %v3903_v63 = vpop.eup %3902  ;;  %v1877_v34 = vor.u32 1.1754944e-38, %v1876_v54  ;;  %vm1875_vm13 = vcmp.eq.f32.partialorder %v1874_v3, 8.507059e+37 }
 0x1e8   :  { %v1851_v21 = vmul.f32 %v3903_v63, %v1800_v43  ;;  %vm1856_vm6 = vweird.f32 %v3903_v63  ;;  %2533 = vmatpush.bf16.msrb.mxu2 %v3877_v25  ;;  %v3876_v43 = vld [vmem:[%s5388_s5 + $0x180] sm:$0xff]  ;;  %2545 = vmatpush.bf16.msra.mxu0 %v3886_v53 }
 0x1e9   :  { %v796_v2 = vpop.f32.mrf.mxu3  ;;  %v1696_v23 = vpop.f32.mrf.mxu2  ;;  %vm1857_vm8 = vmor %vm1855_vm7, %vm1856_vm6 }
 0x1ea   :  { %v1852_v26 = vsub.f32 1.0, %v1851_v21  ;;  %v1767_v19 = vadd.f32 %v1696_v23, %v1459_v0  ;;  %v3884_v2 = vld [vmem:[%s5388_s5 + $0x1c0] sm:$0xff] }
 0x1eb   :  { %v3905_v29 = vpop.eup %3904  ;;  %v1763_v61 = vpop.f32.mrf.mxu0 }
 0x1ec   :  { %v1853_v15 = vmul.f32 %v3903_v63, %v1852_v26  ;;  %v1866_v41 = vmul.f32 %v3905_v29, %v5263_v11  ;;  %v3395_v60 = vmul.f32 -1.442695, %v1767_v19  ;;  %vm1871_vm10 = vweird.f32 %v3905_v29  ;;  %2534 = vmatpush.bf16.msrb.mxu2 %v3876_v43  ;;  %v3842_v43 = vld [vmem:[%s5388_s5 + $0x70] sm:$0xff] }
 0x1ed   :  { %vm1872_vm12 = vmor %vm1870_vm11, %vm1871_vm10  ;;  %v832_v11 = vperm.slane %v5131_v30, 7 }
 0x1ee   :  { %v1867_v38 = vsub.f32 1.0, %v1866_v41  ;;  %3906 = vpow2.f32 %v3395_v60  ;;  %v1854_v46 = vadd.f32 %v3903_v63, %v1853_v15 }
 0x1f0   :  { %v1868_v51 = vmul.f32 %v3905_v29, %v1867_v38  ;;  %v1858_v55 = vsel %vm1857_vm8, %v3903_v63, %v1854_v46  ;;  %v3885_v63 = vld [vmem:[%s5388_s5 + $0x1c8] sm:$0xff] }
 0x1f1   :  { %v807_v22 = vpop.f32.mrf.mxu3  ;;  %v1698_v44 = vpop.f32.mrf.mxu2  ;;  %v1863_v14 = vsel %vm1860_vm9, %v1862_v47, %v1858_v55  ;;  %2546 = vmatpush.bf16.msra.mxu0 %v3885_v63 }
 0x1f2   :  { %v847_v52 = vadd.f32 %v831_v13, %v807_v22  ;;  %v1928_v6 = vpack.c.bf16 %v1863_v14, %v1863_v14  ;;  %v1869_v33 = vadd.f32 %v3905_v29, %v1868_v51 }
 0x1f4   :  { %v3907_v57 = vpop.eup %3906  ;;  %v1155_v39 = vadd.f32 %v5148_v42, %v847_v52  ;;  %2496 = vmatmul.bf16.vlgmr.msrb.gmra.mxu0 %v1928_v6  ;;  %v1873_v32 = vsel %vm1872_vm12, %v3905_v29, %v1869_v33 }
 0x1f5   :  { %v1799_v48 = vadd.f32 1.0, %v3907_v57  ;;  %v1878_v18 = vsel %vm1875_vm13, %v1877_v34, %v1873_v32  ;;  %2547 = vmatpush.bf16.msra.mxu0 %v3884_v2 }
 0x1f6   :  { %v1929_v58 = vpack.c.bf16 %v1878_v18, %v1878_v18  ;;  %v1463_v42 = vadd.f32 %v5246_v4, %v1155_v39  ;;  %v3843_v39 = vld [vmem:[%s5388_s5 + $0x78] sm:$0xff] }
 0x1f7   :  { %3908 = vrcp.f32 %v1799_v48  ;;  %v1846_v16 = vand.u32 2147483648, %v1799_v48  ;;  %v1844_v21 = vand.u32 2147483647, %v1799_v48  ;;  %vm1840_vm15 = vweird.f32 %v1799_v48  ;;  %2462 = vmatpush.bf16.msra.mxu3 %v3843_v39 }
 0x1f8   :  { %2509 = vmatmul.bf16.vlgmr.msrb.gmra.mxu1 %v1929_v58 }
 0x1f9   :  { %v809_v7 = vpop.f32.mrf.mxu3  ;;  %v1748_v62 = vpop.f32.mrf.mxu2  ;;  %v1847_v19 = vor.u32 1.1754944e-38, %v1846_v16  ;;  %vm1845_vm1 = vcmp.eq.f32.partialorder %v1844_v21, 8.507059e+37  ;;  %v826_v16 = vperm.slane %v5131_v30, 1 }
 0x1fa   :  { %v1771_v8 = vadd.f32 %v1748_v62, %v1463_v42  ;;  %v3841_v42 = vld [vmem:[%s5388_s5 + $0x68] sm:$0xff]  ;;  %v3840_v62 = vld [vmem:[%s5388_s5 + $0x60] sm:$0xff] }
 0x1fb   :  { %2463 = vmatpush.bf16.msra.mxu3 %v3842_v43  ;;  %v842_v63 = vadd.f32 %v826_v16, %v5064_v49  ;;  %v3870_v49 = vld [vmem:[%s5388_s5 + $0x150] sm:$0xff] }
 0x1fc   :  { %v3399_v9 = vmul.f32 -1.442695, %v1771_v8 }
 0x1fd   :  { %v3909_v27 = vpop.eup %3908 }
 0x1fe   :  { %v1836_v10 = vmul.f32 %v3909_v27, %v1799_v48  ;;  %3910 = vpow2.f32 %v3399_v9  ;;  %vm1841_vm14 = vweird.f32 %v3909_v27  ;;  %v3838_v9 = vld [vmem:[%s5388_s5 + $0x50] sm:$0xff] }
 0x1ff   :  { %vm1842_vm0 = vmor %vm1840_vm15, %vm1841_vm14  ;;  %2464 = vmatpush.bf16.msra.mxu3 %v3841_v42 }
 0x200   :  { %v1837_v4 = vsub.f32 1.0, %v1836_v10  ;;  %v3836_v10 = vld [vmem:[%s5388_s5 + $0x40] sm:$0xff] }
 0x201   :  { %v820_v17 = vpop.f32.mrf.mxu3  ;;  %v1750_v20 = vpop.f32.mrf.mxu2 }
 0x202   :  { %v1838_v1 = vmul.f32 %v3909_v27, %v1837_v4  ;;  %v848_v0 = vadd.f32 %v832_v11, %v820_v17  ;;  %v3875_v11 = vld [vmem:[%s5388_s5 + $0x178] sm:$0xff]  ;;  %v3874_v4 = vld [vmem:[%s5388_s5 + $0x170] sm:$0xff]  ;;  %v3873_v20 = vld [vmem:[%s5388_s5 + $0x168] sm:$0xff] }
 0x203   :  { %2465 = vmatpush.bf16.msra.mxu3 %v3840_v62 }
 0x204   :  { %v3911_v23 = vpop.eup %3910  ;;  %v1156_v24 = vadd.f32 %v5066_v35, %v848_v0  ;;  %v1839_v26 = vadd.f32 %v3909_v27, %v1838_v1  ;;  %v3872_v0 = vld [vmem:[%s5388_s5 + $0x160] sm:$0xff] }
 0x205   :  { %v1803_v29 = vadd.f32 1.0, %v3911_v23 }
 0x206   :  { %v1464_v31 = vadd.f32 %v5186_v40, %v1156_v24  ;;  %v1843_v61 = vsel %vm1842_vm0, %v3909_v27, %v1839_v26  ;;  %v3837_v27 = vld [vmem:[%s5388_s5 + $0x48] sm:$0xff]  ;;  %v3871_v24 = vld [vmem:[%s5388_s5 + $0x158] sm:$0xff] }
 0x207   :  { %3912 = vrcp.f32 %v1803_v29  ;;  %v1848_v36 = vsel %vm1845_vm1, %v1847_v19, %v1843_v61  ;;  %v1906_v38 = vand.u32 2147483648, %v1803_v29  ;;  %v1904_v54 = vand.u32 2147483647, %v1803_v29  ;;  %2466 = vmatpush.bf16.msra.mxu3 %v3839_v5 }
 0x208   :  { %v1772_v59 = vadd.f32 %v5265_v12, %v1464_v31  ;;  %v1927_v15 = vpack.c.bf16 %v1848_v36, %v1848_v36  ;;  %vm1900_vm3 = vweird.f32 %v1803_v29  ;;  %v830_v19 = vperm.slane %v5131_v30, 5  ;;  %v3869_v31 = vld [vmem:[%s5388_s5 + $0x148] sm:$0xff] }
 0x209   :  { %v822_v41 = vpop.f32.mrf.mxu3  ;;  %v1907_v55 = vor.u32 1.1754944e-38, %v1906_v38  ;;  %vm1905_vm5 = vcmp.eq.f32.partialorder %v1904_v54, 8.507059e+37 }
 0x20a   :  { %v3400_v60 = vmul.f32 -1.442695, %v1772_v59  ;;  %2483 = vmatmul.bf16.vlgmr.msra.gmra.mxu2 %v1927_v15  ;;  %v846_v36 = vadd.f32 %v830_v19, %v5260_v56  ;;  %v3868_v15 = vld [vmem:[%s5388_s5 + $0x140] sm:$0xff] }
 0x20b   :  { %2467 = vmatpush.bf16.msra.mxu3 %v3838_v9 }
 0x20c   :  { %3914 = vpow2.f32 %v3400_v60 }
 0x20d   :  { %v3913_v13 = vpop.eup %3912 }
 0x20e   :  { %v1896_v35 = vmul.f32 %v3913_v13, %v1803_v29  ;;  %vm1901_vm2 = vweird.f32 %v3913_v13 }
 0x20f   :  { %vm1902_vm4 = vmor %vm1900_vm3, %vm1901_vm2  ;;  %2468 = vmatpush.bf16.msra.mxu3 %v3837_v27 }
 0x210   :  { %v1897_v37 = vsub.f32 1.0, %v1896_v35 }
 0x211   :  { %v5323_v46 = vpop.f32.mrf.mxu3 }
 0x212   :  { %v3915_v47 = vpop.eup %3914  ;;  %v1898_v40 = vmul.f32 %v3913_v13, %v1897_v37  ;;  %v1150_v1 = vadd.f32 %v5323_v46, %v842_v63 }
 0x213   :  { %v1804_v50 = vadd.f32 1.0, %v3915_v47  ;;  %2469 = vmatpush.bf16.msra.mxu3 %v3836_v10  ;;  %v3893_v10 = vld [vmem:[%s5390_s6] ss:$0 sm:$0xff] }
 0x214   :  { %v1899_v51 = vadd.f32 %v3913_v13, %v1898_v40 }
 0x215   :  { %3916 = vrcp.f32 %v1804_v50  ;;  %v1921_v6 = vand.u32 2147483648, %v1804_v50  ;;  %v1919_v34 = vand.u32 2147483647, %v1804_v50  ;;  %vm1915_vm7 = vweird.f32 %v1804_v50 }
 0x216   :  { %v1903_v12 = vsel %vm1902_vm4, %v3913_v13, %v1899_v51 }
 0x217   :  { %v1908_v3 = vsel %vm1905_vm5, %v1907_v55, %v1903_v12  ;;  %v1922_v32 = vor.u32 1.1754944e-38, %v1921_v6  ;;  %vm1920_vm9 = vcmp.eq.f32.partialorder %v1919_v34, 8.507059e+37  ;;  %2514 = vmatpush.bf16.msrb.mxu3 %v3875_v11 }
 0x218   :  { %v1931_v22 = vpack.c.bf16 %v1908_v3, %v1908_v3 }
 0x219   :  { %v1069_v44 = vpop.f32.mrf.mxu3 }
 0x21a   :  { %2535 = vmatmul.bf16.vlgmr.msrb.gmra.mxu2 %v1931_v22 }
 0x21b   :  { %v3917_v14 = vpop.eup %3916  ;;  %2515 = vmatpush.bf16.msrb.mxu3 %v3874_v4 }
 0x21c   :  { %v1911_v45 = vmul.f32 %v3917_v14, %v1804_v50  ;;  %vm1916_vm6 = vweird.f32 %v3917_v14 }
 0x21d   :  { %vm1917_vm8 = vmor %vm1915_vm7, %vm1916_vm6 }
 0x21e   :  { %v1912_v52 = vsub.f32 1.0, %v1911_v45 }
 0x21f   :  { %2516 = vmatpush.bf16.msrb.mxu3 %v3873_v20 }
 0x220   :  { %v1913_v33 = vmul.f32 %v3917_v14, %v1912_v52 }
 0x221   :  { %v1119_v25 = vpop.f32.mrf.mxu3 }
 0x222   :  { %v1914_v57 = vadd.f32 %v3917_v14, %v1913_v33  ;;  %v1154_v41 = vadd.f32 %v1119_v25, %v846_v36 }
 0x223   :  { %2517 = vmatpush.bf16.msrb.mxu3 %v3872_v0 }
 0x224   :  { %v1918_v48 = vsel %vm1917_vm8, %v3917_v14, %v1914_v57 }
 0x225   :  { %v1923_v18 = vsel %vm1920_vm9, %v1922_v32, %v1918_v48 }
 0x226   :  { %v1932_v28 = vpack.c.bf16 %v1923_v18, %v1923_v18 }
 0x227   :  { %2518 = vmatpush.bf16.msrb.mxu3 %v3871_v24 }
 0x228   :  { %2548 = vmatmul.bf16.vlgmr.msra.gmra.mxu0 %v1932_v28 }
 0x229   :  { %v1121_v58 = vpop.f32.mrf.mxu3 }
 0x22b   :  { %2519 = vmatpush.bf16.msrb.mxu3 %v3870_v49 }
 0x22f   :  { %2520 = vmatpush.bf16.msrb.mxu3 %v3869_v31 }
 0x231   :  { %v1375_v7 = vpop.f32.mrf.mxu3 }
 0x232   :  { %v1458_v21 = vadd.f32 %v1375_v7, %v1150_v1 }
 0x233   :  { %2521 = vmatpush.bf16.msrb.mxu3 %v3868_v15 }
 0x239   :  { %v1377_v8 = vpop.f32.mrf.mxu3 }
 0x241   :  { %v1427_v53 = vpop.f32.mrf.mxu3 }
 0x242   :  { %v1462_v60 = vadd.f32 %v1427_v53, %v1154_v41 }
 0x249   :  { %v1429_v17 = vpop.f32.mrf.mxu3 }
 0x251   :  { %v1683_v2 = vpop.f32.mrf.mxu3 }
 0x252   :  { %v1766_v23 = vadd.f32 %v1683_v2, %v1458_v21 }
 0x254   :  { %v3394_v26 = vmul.f32 -1.442695, %v1766_v23 }
 0x256   :  { %3918 = vpow2.f32 %v3394_v26 }
 0x259   :  { %v1685_v29 = vpop.f32.mrf.mxu3 }
 0x25c   :  { %v3919_v61 = vpop.eup %3918 }
 0x25d   :  { %v1798_v59 = vadd.f32 1.0, %v3919_v61 }
 0x25f   :  { %3920 = vrcp.f32 %v1798_v59  ;;  %v1831_v40 = vand.u32 2147483648, %v1798_v59  ;;  %v1829_v51 = vand.u32 2147483647, %v1798_v59  ;;  %vm1825_vm11 = vweird.f32 %v1798_v59 }
 0x261   :  { %v1735_v13 = vpop.f32.mrf.mxu3  ;;  %v1832_v3 = vor.u32 1.1754944e-38, %v1831_v40  ;;  %vm1830_vm13 = vcmp.eq.f32.partialorder %v1829_v51, 8.507059e+37 }
 0x262   :  { %v1770_v30 = vadd.f32 %v1735_v13, %v1462_v60  ;;  %v2458_v35 = vpop.f32.mrf.mxu1 }
 0x263   :  { %v2459_v4 = vadd.f32 %v3893_v10, %v2458_v35 }
 0x264   :  { %v3398_v37 = vmul.f32 -1.442695, %v1770_v30 }
 0x265   :  { %v3921_v38 = vpop.eup %3920 }
 0x266   :  { %v1821_v46 = vmul.f32 %v3921_v38, %v1798_v59  ;;  %3922 = vpow2.f32 %v3398_v37  ;;  %vm1826_vm10 = vweird.f32 %v3921_v38 }
 0x267   :  { %vm1827_vm12 = vmor %vm1825_vm11, %vm1826_vm10 }
 0x268   :  { %v1822_v47 = vsub.f32 1.0, %v1821_v46 }
 0x269   :  { %v1737_v56 = vpop.f32.mrf.mxu3 }
 0x26a   :  { %v1823_v54 = vmul.f32 %v3921_v38, %v1822_v47  ;;  %v2460_v50 = vpop.f32.mrf.mxu1 }
 0x26c   :  { %v3923_v55 = vpop.eup %3922  ;;  %v1824_v12 = vadd.f32 %v3921_v38, %v1823_v54 }
 0x26d   :  { %v1802_v22 = vadd.f32 1.0, %v3923_v55 }
 0x26e   :  { %v1828_v44 = vsel %vm1827_vm12, %v3921_v38, %v1824_v12 }
 0x26f   :  { %3924 = vrcp.f32 %v1802_v22  ;;  %v1833_v14 = vsel %vm1830_vm13, %v1832_v3, %v1828_v44  ;;  %v1891_v57 = vand.u32 2147483648, %v1802_v22  ;;  %v1889_v48 = vand.u32 2147483647, %v1802_v22 }
 0x270   :  { %v1926_v45 = vpack.c.bf16 %v1833_v14, %v1833_v14  ;;  %vm1885_vm15 = vweird.f32 %v1802_v22 }
 0x271   :  { %v2497_v52 = vpop.f32.mrf.mxu0  ;;  %v1892_v28 = vor.u32 1.1754944e-38, %v1891_v57  ;;  %vm1890_vm1 = vcmp.eq.f32.partialorder %v1889_v48, 8.507059e+37 }
 0x272   :  { %2470 = vmatmul.bf16.vlgmr.msra.gmra.mxu3 %v1926_v45 }
 0x275   :  { %v3925_v6 = vpop.eup %3924  ;;  %v2510_v33 = vpop.f32.mrf.mxu1 }
 0x276   :  { %v1881_v34 = vmul.f32 %v3925_v6, %v1802_v22  ;;  %vm1886_vm14 = vweird.f32 %v3925_v6 }
 0x277   :  { %vm1887_vm0 = vmor %vm1885_vm15, %vm1886_vm14 }
 0x278   :  { %v1882_v25 = vsub.f32 1.0, %v1881_v34 }
 0x279   :  { %v2499_v39 = vpop.f32.mrf.mxu0 }
 0x27a   :  { %v1883_v32 = vmul.f32 %v3925_v6, %v1882_v25 }
 0x27c   :  { %v1884_v18 = vadd.f32 %v3925_v6, %v1883_v32 }
 0x27d   :  { %v2512_v58 = vpop.f32.mrf.mxu1 }
 0x27e   :  { %v1888_v43 = vsel %vm1887_vm0, %v3925_v6, %v1884_v18 }
 0x27f   :  { %v1893_v42 = vsel %vm1890_vm1, %v1892_v28, %v1888_v43 }
 0x280   :  { %v1930_v7 = vpack.c.bf16 %v1893_v42, %v1893_v42 }
 0x282   :  { %2522 = vmatmul.bf16.vlgmr.msrb.gmra.mxu3 %v1930_v7 }
 0x28d   :  { %v2484_v62 = vpop.f32.mrf.mxu2 }
 0x295   :  { %v2486_v5 = vpop.f32.mrf.mxu2 }
 0x29d   :  { %v2536_v8 = vpop.f32.mrf.mxu2 }
 0x2a5   :  { %v2538_v9 = vpop.f32.mrf.mxu2  ;;  %v2549_v27 = vpop.f32.mrf.mxu0 }
 0x2ad   :  { %v2551_v53 = vpop.f32.mrf.mxu0 }
 0x2f5   :  { %v2471_v11 = vpop.f32.mrf.mxu3 }
 0x2f6   :  { %v2472_v16 = vadd.f32 %v2471_v11, %v2459_v4 }
 0x2f8   :  { %v2485_v17 = vadd.f32 %v2484_v62, %v2472_v16 }
 0x2fa   :  { %v2498_v63 = vadd.f32 %v2497_v52, %v2485_v17 }
 0x2fc   :  { %v2511_v1 = vadd.f32 %v2510_v33, %v2498_v63 }
 0x2fd   :  { %v2473_v20 = vpop.f32.mrf.mxu3 }
 0x305   :  { %v2523_v0 = vpop.f32.mrf.mxu3 }
 0x306   :  { %v2524_v21 = vadd.f32 %v2523_v0, %v2511_v1 }
 0x308   :  { %v2537_v2 = vadd.f32 %v2536_v8, %v2524_v21 }
 0x30a   :  { %v2550_v23 = vadd.f32 %v2549_v27, %v2537_v2 }
 0x30c   :  { %v3657_v24 = vmul.f32 -1.442695, %v2550_v23 }
 0x30d   :  { %v2525_v26 = vpop.f32.mrf.mxu3 }
 0x30e   :  { %3926 = vpow2.f32 %v3657_v24 }
 0x314   :  { %v3927_v49 = vpop.eup %3926 }
 0x315   :  { %v2556_v19 = vadd.f32 1.0, %v3927_v49 }
 0x317   :  { %3928 = vrcp.f32 %v2556_v19  ;;  %v2568_v36 = vand.u32 2147483648, %v2556_v19  ;;  %v2566_v15 = vand.u32 2147483647, %v2556_v19  ;;  %vm2562_vm3 = vweird.f32 %v2556_v19 }
 0x319   :  { %v2569_v60 = vor.u32 1.1754944e-38, %v2568_v36  ;;  %vm2567_vm5 = vcmp.eq.f32.partialorder %v2566_v15, 8.507059e+37 }
 0x31d   :  { %v3929_v29 = vpop.eup %3928 }
 0x31e   :  { %v2558_v31 = vmul.f32 %v3929_v29, %v2556_v19  ;;  %vm2563_vm2 = vweird.f32 %v3929_v29 }
 0x31f   :  { %vm2564_vm4 = vmor %vm2562_vm3, %vm2563_vm2 }
 0x320   :  { %v2559_v61 = vsub.f32 1.0, %v2558_v31 }
 0x322   :  { %v2560_v59 = vmul.f32 %v3929_v29, %v2559_v61 }
 0x324   :  { %v2561_v41 = vadd.f32 %v3929_v29, %v2560_v59 }
 0x326   :  { %v2565_v13 = vsel %vm2564_vm4, %v3929_v29, %v2561_v41 }
 0x327   :  { %v2570_v30 = vsel %vm2567_vm5, %v2569_v60, %v2565_v13 }
 0x328   :  { %2572 = vst [vmem:[%s5391_s7] sm:$0xff] %v2570_v30 }

</bundles_post_ra>
